<compile_context>
chip_gen: v5e
topology: v5e:2x2
jax: 0.10.0
libtpu: 0.0.40
codegen_flags: <defaults>
</compile_context>

<pallas_src>
import numpy as np
import jax
import jax.numpy as jnp
from jax.experimental import pallas as pl
from jax.experimental.pallas import tpu as pltpu

BN_EPS = 1e-5
MID = 256                            # internal channel width of CFF
_VMEM_LIMIT = 32 * 1024 * 1024       # scoped-VMEM cap; safe on v5e/v6e/v7x
_ACT_BUDGET = 20 * 1024 * 1024       # activation budget for the fused kernel
                                     # (leaves room for ~7 MiB of conv3 weights)


# --------------------------------------------------------------------------- kernels
def _conv3x3_bn_relu_kernel(xp_ref, w_ref, b_ref, o_ref):
    """3x3 conv (pad 1) + folded BN + ReLU for one batch image, in-kernel im2col.

    xp_ref: (1, H+2, W+2, Cin) bf16 zero-padded image
    w_ref:  (9*Cin, Cout)      bf16 (BN scale folded), rows ordered (ky, kx, ci)
    b_ref:  (1, Cout)          f32 folded BN bias
    o_ref:  (1, H, W, Cout)    bf16
    """
    H, W, Cout = o_ref.shape[1], o_ref.shape[2], o_ref.shape[3]
    Cin = xp_ref.shape[3]
    xp = xp_ref[0]                                   # (H+2, W+2, Cin)

    acc = jnp.zeros((H * W, Cout), jnp.float32)
    for tap in range(9):                             # per-tap K=Cin accumulating dots
        dy, dx = tap // 3, tap % 3
        patch = xp[dy:dy + H, dx:dx + W, :].reshape(H * W, Cin)
        acc = acc + jnp.dot(patch, w_ref[tap * Cin:(tap + 1) * Cin, :],
                            preferred_element_type=jnp.float32)

    out = jnp.maximum(acc + b_ref[...], 0.0)
    o_ref[0] = out.reshape(H, W, Cout).astype(o_ref.dtype)


def _fused_mul_conv_kernel(lp_hbm, dp_hbm, rp_hbm, wx_ref, wy_ref, wz_ref,
                           b_ref, o_ref, lbuf, dbuf, rbuf, sem):
    """Fused: products (l*d, l*r, r*d) + 3x3 conv3 + folded BN + ReLU.

    lp/dp/rp_hbm: (N, H+2, W+2, C) bf16 zero-padded feature maps, left in HBM
                  (memory_space=pl.ANY); the halo row-window is DMA'd manually.
    wx/wy/wz_ref: (9*C, Cout) bf16 Cin-slices of conv3 weight (BN folded)
    b_ref:        (1, Cout)   f32
    o_ref:        (1, th, W, Cout) f32 output row tile
    lbuf/dbuf/rbuf: (th+2, W+2, C) bf16 VMEM halo scratch
    sem:          DMA semaphores, shape (3,)
    """
    n = pl.program_id(0)
    t = pl.program_id(1)
    th, W, Cout = o_ref.shape[1], o_ref.shape[2], o_ref.shape[3]
    C = lbuf.shape[2]

    r0 = t * th
    if th % 8 == 0:
        r0 = pl.multiple_of(r0, 8)

    # Self-contained per-step halo DMA (megacore-safe; no cross-step prefetch).
    copies = [
        pltpu.make_async_copy(src.at[n, pl.ds(r0, th + 2)], dst, sem.at[k])
        for k, (src, dst) in enumerate(
            ((lp_hbm, lbuf), (dp_hbm, dbuf), (rp_hbm, rbuf)))
    ]
    for cp in copies:
        cp.start()
    for cp in copies:
        cp.wait()

    lp = lbuf[...]
    dp = dbuf[...]
    rp = rbuf[...]

    acc = jnp.zeros((th * W, Cout), jnp.float32)
    # 3 products x 9 taps = 27 per-tap K=C(=256) accumulating MXU dots; the
    # 9x-wide im2col patch is never materialized.
    for prod, w_ref in ((lp * dp, wx_ref), (lp * rp, wy_ref), (rp * dp, wz_ref)):
        for tap in range(9):
            dy, dx = tap // 3, tap % 3
            patch = prod[dy:dy + th, dx:dx + W, :].reshape(th * W, C)
            acc = acc + jnp.dot(patch, w_ref[tap * C:(tap + 1) * C, :],
                                preferred_element_type=jnp.float32)

    out = jnp.maximum(acc + b_ref[...], 0.0)
    o_ref[0] = out.reshape(th, W, Cout).astype(o_ref.dtype)


# --------------------------------------------------------------------------- wrappers
def conv3x3_bn_relu(x_nhwc, w2d_bf16, bias):
    """3x3 conv (stride 1, pad 1) + folded BN + ReLU; one batch image per grid step.

    x_nhwc: (N,H,W,Cin) f32; w2d_bf16: (9*Cin,Cout) bf16 (BN scale folded);
    bias: (Cout,) f32.  Returns (N,H,W,Cout) bf16.
    """
    N, H, W, Cin = x_nhwc.shape
    K, Cout = w2d_bf16.shape
    assert K == 9 * Cin

    xp = jnp.pad(x_nhwc.astype(jnp.bfloat16), ((0, 0), (1, 1), (1, 1), (0, 0)))
    bias2 = bias.reshape(1, Cout).astype(jnp.float32)

    # TODO(synk): for very large H*W a row-tiled (halo) variant would bound VMEM
    # better; one image per step is ample at these feature-map sizes.
    out = pl.pallas_call(
        _conv3x3_bn_relu_kernel,
        out_shape=jax.ShapeDtypeStruct((N, H, W, Cout), jnp.bfloat16),
        grid_spec=pltpu.PrefetchScalarGridSpec(
            num_scalar_prefetch=0,
            grid=(N,),
            in_specs=[
                pl.BlockSpec((1, H + 2, W + 2, Cin), lambda n: (n, 0, 0, 0)),
                pl.BlockSpec((K, Cout), lambda n: (0, 0)),
                pl.BlockSpec((1, Cout), lambda n: (0, 0)),
            ],
            out_specs=pl.BlockSpec((1, H, W, Cout), lambda n: (n, 0, 0, 0)),
        ),
        compiler_params=pltpu.CompilerParams(
            dimension_semantics=("parallel",),
            vmem_limit_bytes=_VMEM_LIMIT),
    )(xp, w2d_bf16, bias2)
    return out


def _pick_row_tile(n_batch, H, W, C, Cout, budget=_ACT_BUDGET):
    """Largest 8-aligned row tile dividing H that fits the VMEM budget and
    (preferably) leaves >= 2 grid steps for the two v7x TensorCores."""
    cands = [t for t in (128, 64, 48, 32, 24, 16, 8) if H % t == 0] or [H]

    def est(th):
        halo = 3 * (th + 2) * (W + 2) * C * 2        # bf16 DMA scratch
        outb = 2 * th * W * Cout * 4                 # double-buffered f32 out tile
        accb = th * W * Cout * 4                     # f32 accumulator
        tmps = 3 * (th + 2) * (W + 2) * C * 2        # product / shifted-slice temps
        return halo + outb + accb + tmps

    fits = [t for t in cands if est(t) <= budget] or [min(cands)]
    pref = [t for t in fits if n_batch * (H // t) >= 2]
    return max(pref) if pref else max(fits)


def fused_mul_conv_bn_relu(l, d, r, w3_slices_bf16, bias):
    """relu(bn3(conv3(concat([l*d, l*r, r*d], ch)))) without materializing the concat.

    l, d, r: (N,H,W,256) bf16 (d, r already resized to l's spatial size).
    w3_slices_bf16: 3-tuple of (9*256, 256) bf16 weight slices (BN scale folded).
    Returns (N,H,W,256) f32.
    """
    N, H, W, C = l.shape
    wx, wy, wz = w3_slices_bf16
    Cout = wx.shape[1]
    th = _pick_row_tile(N, H, W, C, Cout)
    nt = H // th

    pad = lambda x: jnp.pad(x.astype(jnp.bfloat16),
                            ((0, 0), (1, 1), (1, 1), (0, 0)))
    lp, dp, rp = pad(l), pad(d), pad(r)
    bias2 = bias.reshape(1, Cout).astype(jnp.float32)

    out = pl.pallas_call(
        _fused_mul_conv_kernel,
        out_shape=jax.ShapeDtypeStruct((N, H, W, Cout), jnp.float32),
        grid_spec=pltpu.PrefetchScalarGridSpec(
            num_scalar_prefetch=0,
            grid=(N, nt),
            in_specs=[
                pl.BlockSpec(memory_space=pl.ANY),      # lp stays in HBM
                pl.BlockSpec(memory_space=pl.ANY),      # dp stays in HBM
                pl.BlockSpec(memory_space=pl.ANY),      # rp stays in HBM
                pl.BlockSpec((9 * C, Cout), lambda n, t: (0, 0)),
                pl.BlockSpec((9 * C, Cout), lambda n, t: (0, 0)),
                pl.BlockSpec((9 * C, Cout), lambda n, t: (0, 0)),
                pl.BlockSpec((1, Cout), lambda n, t: (0, 0)),
            ],
            out_specs=pl.BlockSpec((1, th, W, Cout), lambda n, t: (n, t, 0, 0)),
            scratch_shapes=[
                pltpu.VMEM((th + 2, W + 2, C), jnp.bfloat16),
                pltpu.VMEM((th + 2, W + 2, C), jnp.bfloat16),
                pltpu.VMEM((th + 2, W + 2, C), jnp.bfloat16),
                pltpu.SemaphoreType.DMA((3,)),
            ],
        ),
        compiler_params=pltpu.CompilerParams(
            dimension_semantics=("parallel", "parallel"),
            vmem_limit_bytes=_VMEM_LIMIT),
    )(lp, dp, rp, wx, wy, wz, bias2)
    return out


# --------------------------------------------------------------------------- params
def _kaiming_conv(key, cin, cout):
    """Kaiming-normal (fan_in, relu) conv weight in HWIO layout + zero bias."""
    fan_in = cin * 9
    std = np.sqrt(2.0 / fan_in)
    w = jax.random.normal(key, (3, 3, cin, cout), jnp.float32) * std
    b = jnp.zeros((cout,), jnp.float32)
    return w, b


def _fold_bn(conv_b, gamma, beta, mean, var, eps=BN_EPS):
    scale = gamma / jnp.sqrt(var + eps)
    bias = beta + (conv_b - mean) * scale
    return scale, bias


def init_cff_params(key, c_left, c_down, c_right):
    ks = jax.random.split(key, 4)
    params = {}
    for name, k, cin in (("0", ks[0], c_left), ("1", ks[1], c_down),
                         ("2", ks[2], c_right), ("3", ks[3], 3 * MID)):
        w, b = _kaiming_conv(k, cin, MID)
        gamma = jnp.ones((MID,), jnp.float32)
        beta = jnp.zeros((MID,), jnp.float32)
        mean = jnp.zeros((MID,), jnp.float32)
        var = jnp.ones((MID,), jnp.float32)
        scale, bias = _fold_bn(b, gamma, beta, mean, var)
        w_scaled = w * scale                       # fold BN scale into weights
        p = {"w_hwio_scaled": w_scaled, "bias": bias}
        if name != "3":
            p["w2d_bf16"] = w_scaled.reshape(9 * cin, MID).astype(jnp.bfloat16)
        else:
            p["w3_slices_bf16"] = tuple(
                w_scaled[:, :, i * MID:(i + 1) * MID, :]
                .reshape(9 * MID, MID).astype(jnp.bfloat16)
                for i in range(3))
        params[name] = p
    return params


# --------------------------------------------------------------------------- forward
def cff_forward(left_nchw, down_nchw, right_nchw, params):
    """Pallas implementation of CFF.forward. NCHW in, NCHW out (float32)."""
    to_nhwc = lambda x: jnp.transpose(x, (0, 2, 3, 1))
    left, down, right = map(to_nhwc, (left_nchw, down_nchw, right_nchw))
    N, Hl, Wl, _ = left.shape

    l = conv3x3_bn_relu(left, params["0"]["w2d_bf16"], params["0"]["bias"])
    d = conv3x3_bn_relu(down, params["1"]["w2d_bf16"], params["1"]["bias"])
    r = conv3x3_bn_relu(right, params["2"]["w2d_bf16"], params["2"]["bias"])

    # TODO(synk): bilinear upsample kept in XLA (jax.image.resize, bf16); folding
    # it into the fused kernel would save one more HBM round trip of d and r.
    d = jax.image.resize(d, (N, Hl, Wl, MID), method="bilinear")
    r = jax.image.resize(r, (N, Hl, Wl, MID), method="bilinear")

    out = fused_mul_conv_bn_relu(l, d, r, params["3"]["w3_slices_bf16"],
                                 params["3"]["bias"])
    return jnp.transpose(out, (0, 3, 1, 2))  # back to NCHW


# --------------------------------------------------------------------------- reference (pure JAX, same bf16 precision choices)
def _conv_bn_relu_ref(x, p):
    y = jax.lax.conv_general_dilated(
        x.astype(jnp.bfloat16), p["w_hwio_scaled"].astype(jnp.bfloat16),
        window_strides=(1, 1), padding="SAME",
        dimension_numbers=("NHWC", "HWIO", "NHWC"),
        preferred_element_type=jnp.float32)
    return jnp.maximum(y + p["bias"], 0.0).astype(jnp.bfloat16)


def cff_reference(left_nchw, down_nchw, right_nchw, params):
    to_nhwc = lambda x: jnp.transpose(x, (0, 2, 3, 1))
    left, down, right = map(to_nhwc, (left_nchw, down_nchw, right_nchw))
    N, Hl, Wl, _ = left.shape
    l = _conv_bn_relu_ref(left, params["0"])
    d = _conv_bn_relu_ref(down, params["1"])
    r = _conv_bn_relu_ref(right, params["2"])
    d = jax.image.resize(d, (N, Hl, Wl, MID), method="bilinear")
    r = jax.image.resize(r, (N, Hl, Wl, MID), method="bilinear")
    fused = jnp.concatenate([l * d, l * r, r * d], axis=-1)       # bf16
    y = jax.lax.conv_general_dilated(
        fused, params["3"]["w_hwio_scaled"].astype(jnp.bfloat16),
        window_strides=(1, 1), padding="SAME",
        dimension_numbers=("NHWC", "HWIO", "NHWC"),
        preferred_element_type=jnp.float32)
    out = jnp.maximum(y + params["3"]["bias"], 0.0)
    return jnp.transpose(out, (0, 3, 1, 2))


# --------------------------------------------------------------------------- main
if __name__ == "__main__":
    key = jax.random.PRNGKey(0)
    k_left, k_down, k_right, k_param = jax.random.split(key, 4)

    N = 2
    C_LEFT, C_DOWN, C_RIGHT = 8, 16, 32
    HL = WL = 16           # left spatial size
    HD = WD = 8            # down / right spatial size (exercises bilinear upsample)

    left = jax.random.normal(k_left, (N, C_LEFT, HL, WL), jnp.float32)
    down = jax.random.normal(k_down, (N, C_DOWN, HD, WD), jnp.float32)
    right = jax.random.normal(k_right, (N, C_RIGHT, HD, WD), jnp.float32)

    params = init_cff_params(k_param, C_LEFT, C_DOWN, C_RIGHT)

    out = jax.block_until_ready(cff_forward(left, down, right, params))
    ref = jax.block_until_ready(cff_reference(left, down, right, params))

    np.testing.assert_allclose(np.asarray(out), np.asarray(ref), rtol=2e-2, atol=2e-2)
    assert out.shape == (N, MID, HL, WL)
    print("KERNEL_OK")
</pallas_src>

<mosaic_0001>
module attributes {stable_mosaic.version = 11 : i64} {
  func.func @_conv3x3_bn_relu_kernel(%arg0: i32, %arg1: memref<1x18x18x8xbf16, #tpu.memory_space<vmem>>, %arg2: memref<72x256xbf16, #tpu.memory_space<vmem>>, %arg3: memref<1x256xf32, #tpu.memory_space<vmem>>, %arg4: memref<1x16x16x256xbf16, #tpu.memory_space<vmem>>) attributes {dimension_semantics = [#tpu.dimension_semantics<parallel>], iteration_bounds = array<i64: 2>, scalar_prefetch = 0 : i64, scratch_operands = 0 : i64, tpu.core_type = #tpu.core_type<tc>, window_params = [{transform_indices = @transform_0, window_bounds = array<i64: 1, 18, 18, 8>}, {pipeline_mode = #tpu.pipeline_mode<synchronous>, transform_indices = @transform_1, window_bounds = array<i64: 72, 256>}, {pipeline_mode = #tpu.pipeline_mode<synchronous>, transform_indices = @transform_2, window_bounds = array<i64: 1, 256>}, {transform_indices = @transform_3, window_bounds = array<i64: 1, 16, 16, 256>}]} {
    %c0 = arith.constant 0 : index
    %c0_0 = arith.constant 0 : index
    %c0_1 = arith.constant 0 : index
    %c0_2 = arith.constant 0 : index
    %0 = vector.load %arg1[%c0, %c0_0, %c0_1, %c0_2] : memref<1x18x18x8xbf16, #tpu.memory_space<vmem>>, vector<1x18x18x8xbf16>
    %1 = vector.shape_cast %0 : vector<1x18x18x8xbf16> to vector<18x18x8xbf16>
    %cst = arith.constant 0.000000e+00 : f32
    %2 = vector.broadcast %cst : f32 to vector<256x256xf32>
    %3 = vector.extract_strided_slice %1 {offsets = [0, 0, 0], sizes = [16, 16, 8], strides = [1, 1, 1]} : vector<18x18x8xbf16> to vector<16x16x8xbf16>
    %4 = vector.shape_cast %3 : vector<16x16x8xbf16> to vector<256x8xbf16>
    %c0_3 = arith.constant 0 : index
    %c0_4 = arith.constant 0 : index
    %5 = vector.load %arg2[%c0_3, %c0_4] : memref<72x256xbf16, #tpu.memory_space<vmem>>, vector<8x256xbf16>
    %cst_5 = arith.constant dense<0.000000e+00> : vector<256x256xf32>
    %6 = tpu.matmul %4, %5, %cst_5 {dimension_numbers = #tpu.dot_dimension_numbers<[1], [0], [0], [1], [0, 0, 1, 1], [], []>} : vector<256x8xbf16>, vector<8x256xbf16>, vector<256x256xf32> -> vector<256x256xf32>
    %7 = arith.addf %2, %6 : vector<256x256xf32>
    %8 = vector.extract_strided_slice %1 {offsets = [0, 1, 0], sizes = [16, 16, 8], strides = [1, 1, 1]} : vector<18x18x8xbf16> to vector<16x16x8xbf16>
    %9 = vector.shape_cast %8 : vector<16x16x8xbf16> to vector<256x8xbf16>
    %c8 = arith.constant 8 : index
    %c0_6 = arith.constant 0 : index
    %10 = vector.load %arg2[%c8, %c0_6] : memref<72x256xbf16, #tpu.memory_space<vmem>>, vector<8x256xbf16>
    %cst_7 = arith.constant dense<0.000000e+00> : vector<256x256xf32>
    %11 = tpu.matmul %9, %10, %cst_7 {dimension_numbers = #tpu.dot_dimension_numbers<[1], [0], [0], [1], [0, 0, 1, 1], [], []>} : vector<256x8xbf16>, vector<8x256xbf16>, vector<256x256xf32> -> vector<256x256xf32>
    %12 = arith.addf %7, %11 : vector<256x256xf32>
    %13 = vector.extract_strided_slice %1 {offsets = [0, 2, 0], sizes = [16, 16, 8], strides = [1, 1, 1]} : vector<18x18x8xbf16> to vector<16x16x8xbf16>
    %14 = vector.shape_cast %13 : vector<16x16x8xbf16> to vector<256x8xbf16>
    %c16 = arith.constant 16 : index
    %c0_8 = arith.constant 0 : index
    %15 = vector.load %arg2[%c16, %c0_8] : memref<72x256xbf16, #tpu.memory_space<vmem>>, vector<8x256xbf16>
    %cst_9 = arith.constant dense<0.000000e+00> : vector<256x256xf32>
    %16 = tpu.matmul %14, %15, %cst_9 {dimension_numbers = #tpu.dot_dimension_numbers<[1], [0], [0], [1], [0, 0, 1, 1], [], []>} : vector<256x8xbf16>, vector<8x256xbf16>, vector<256x256xf32> -> vector<256x256xf32>
    %17 = arith.addf %12, %16 : vector<256x256xf32>
    %18 = vector.extract_strided_slice %1 {offsets = [1, 0, 0], sizes = [16, 16, 8], strides = [1, 1, 1]} : vector<18x18x8xbf16> to vector<16x16x8xbf16>
    %19 = vector.shape_cast %18 : vector<16x16x8xbf16> to vector<256x8xbf16>
    %c24 = arith.constant 24 : index
    %c0_10 = arith.constant 0 : index
    %20 = vector.load %arg2[%c24, %c0_10] : memref<72x256xbf16, #tpu.memory_space<vmem>>, vector<8x256xbf16>
    %cst_11 = arith.constant dense<0.000000e+00> : vector<256x256xf32>
    %21 = tpu.matmul %19, %20, %cst_11 {dimension_numbers = #tpu.dot_dimension_numbers<[1], [0], [0], [1], [0, 0, 1, 1], [], []>} : vector<256x8xbf16>, vector<8x256xbf16>, vector<256x256xf32> -> vector<256x256xf32>
    %22 = arith.addf %17, %21 : vector<256x256xf32>
    %23 = vector.extract_strided_slice %1 {offsets = [1, 1, 0], sizes = [16, 16, 8], strides = [1, 1, 1]} : vector<18x18x8xbf16> to vector<16x16x8xbf16>
    %24 = vector.shape_cast %23 : vector<16x16x8xbf16> to vector<256x8xbf16>
    %c32 = arith.constant 32 : index
    %c0_12 = arith.constant 0 : index
    %25 = vector.load %arg2[%c32, %c0_12] : memref<72x256xbf16, #tpu.memory_space<vmem>>, vector<8x256xbf16>
    %cst_13 = arith.constant dense<0.000000e+00> : vector<256x256xf32>
    %26 = tpu.matmul %24, %25, %cst_13 {dimension_numbers = #tpu.dot_dimension_numbers<[1], [0], [0], [1], [0, 0, 1, 1], [], []>} : vector<256x8xbf16>, vector<8x256xbf16>, vector<256x256xf32> -> vector<256x256xf32>
    %27 = arith.addf %22, %26 : vector<256x256xf32>
    %28 = vector.extract_strided_slice %1 {offsets = [1, 2, 0], sizes = [16, 16, 8], strides = [1, 1, 1]} : vector<18x18x8xbf16> to vector<16x16x8xbf16>
    %29 = vector.shape_cast %28 : vector<16x16x8xbf16> to vector<256x8xbf16>
    %c40 = arith.constant 40 : index
    %c0_14 = arith.constant 0 : index
    %30 = vector.load %arg2[%c40, %c0_14] : memref<72x256xbf16, #tpu.memory_space<vmem>>, vector<8x256xbf16>
    %cst_15 = arith.constant dense<0.000000e+00> : vector<256x256xf32>
    %31 = tpu.matmul %29, %30, %cst_15 {dimension_numbers = #tpu.dot_dimension_numbers<[1], [0], [0], [1], [0, 0, 1, 1], [], []>} : vector<256x8xbf16>, vector<8x256xbf16>, vector<256x256xf32> -> vector<256x256xf32>
    %32 = arith.addf %27, %31 : vector<256x256xf32>
    %33 = vector.extract_strided_slice %1 {offsets = [2, 0, 0], sizes = [16, 16, 8], strides = [1, 1, 1]} : vector<18x18x8xbf16> to vector<16x16x8xbf16>
    %34 = vector.shape_cast %33 : vector<16x16x8xbf16> to vector<256x8xbf16>
    %c48 = arith.constant 48 : index
    %c0_16 = arith.constant 0 : index
    %35 = vector.load %arg2[%c48, %c0_16] : memref<72x256xbf16, #tpu.memory_space<vmem>>, vector<8x256xbf16>
    %cst_17 = arith.constant dense<0.000000e+00> : vector<256x256xf32>
    %36 = tpu.matmul %34, %35, %cst_17 {dimension_numbers = #tpu.dot_dimension_numbers<[1], [0], [0], [1], [0, 0, 1, 1], [], []>} : vector<256x8xbf16>, vector<8x256xbf16>, vector<256x256xf32> -> vector<256x256xf32>
    %37 = arith.addf %32, %36 : vector<256x256xf32>
    %38 = vector.extract_strided_slice %1 {offsets = [2, 1, 0], sizes = [16, 16, 8], strides = [1, 1, 1]} : vector<18x18x8xbf16> to vector<16x16x8xbf16>
    %39 = vector.shape_cast %38 : vector<16x16x8xbf16> to vector<256x8xbf16>
    %c56 = arith.constant 56 : index
    %c0_18 = arith.constant 0 : index
    %40 = vector.load %arg2[%c56, %c0_18] : memref<72x256xbf16, #tpu.memory_space<vmem>>, vector<8x256xbf16>
    %cst_19 = arith.constant dense<0.000000e+00> : vector<256x256xf32>
    %41 = tpu.matmul %39, %40, %cst_19 {dimension_numbers = #tpu.dot_dimension_numbers<[1], [0], [0], [1], [0, 0, 1, 1], [], []>} : vector<256x8xbf16>, vector<8x256xbf16>, vector<256x256xf32> -> vector<256x256xf32>
    %42 = arith.addf %37, %41 : vector<256x256xf32>
    %43 = vector.extract_strided_slice %1 {offsets = [2, 2, 0], sizes = [16, 16, 8], strides = [1, 1, 1]} : vector<18x18x8xbf16> to vector<16x16x8xbf16>
    %44 = vector.shape_cast %43 : vector<16x16x8xbf16> to vector<256x8xbf16>
    %c64 = arith.constant 64 : index
    %c0_20 = arith.constant 0 : index
    %45 = vector.load %arg2[%c64, %c0_20] : memref<72x256xbf16, #tpu.memory_space<vmem>>, vector<8x256xbf16>
    %cst_21 = arith.constant dense<0.000000e+00> : vector<256x256xf32>
    %46 = tpu.matmul %44, %45, %cst_21 {dimension_numbers = #tpu.dot_dimension_numbers<[1], [0], [0], [1], [0, 0, 1, 1], [], []>} : vector<256x8xbf16>, vector<8x256xbf16>, vector<256x256xf32> -> vector<256x256xf32>
    %47 = arith.addf %42, %46 : vector<256x256xf32>
    %c0_22 = arith.constant 0 : index
    %c0_23 = arith.constant 0 : index
    %48 = vector.load %arg3[%c0_22, %c0_23] : memref<1x256xf32, #tpu.memory_space<vmem>>, vector<1x256xf32>
    %49 = vector.broadcast %48 : vector<1x256xf32> to vector<256x256xf32>
    %50 = arith.addf %47, %49 : vector<256x256xf32>
    %cst_24 = arith.constant 0.000000e+00 : f32
    %51 = vector.broadcast %cst_24 : f32 to vector<256x256xf32>
    %52 = arith.maximumf %50, %51 : vector<256x256xf32>
    %53 = vector.shape_cast %52 : vector<256x256xf32> to vector<16x16x256xf32>
    %54 = arith.truncf %53 : vector<16x16x256xf32> to vector<16x16x256xbf16>
    %c0_25 = arith.constant 0 : index
    %c0_26 = arith.constant 0 : index
    %c0_27 = arith.constant 0 : index
    %c0_28 = arith.constant 0 : index
    %55 = vector.load %arg4[%c0_25, %c0_26, %c0_27, %c0_28] : memref<1x16x16x256xbf16, #tpu.memory_space<vmem>>, vector<1x16x16x256xbf16>
    %56 = vector.shape_cast %55 : vector<1x16x16x256xbf16> to vector<16x16x256xbf16>
    %57 = vector.shape_cast %54 : vector<16x16x256xbf16> to vector<1x16x16x256xbf16>
    tpu.vector_store %arg4[%c0_25, %c0_26, %c0_27, %c0_28], %57 {strides = array<i32>} : memref<1x16x16x256xbf16, #tpu.memory_space<vmem>>, vector<1x16x16x256xbf16>,
    return
  }
  func.func @transform_0(%arg0: i32) -> (i32, i32, i32, i32) {
    %c0_i32 = arith.constant 0 : i32
    %c0_i32_0 = arith.constant 0 : i32
    %c0_i32_1 = arith.constant 0 : i32
    %c0_i32_2 = arith.constant 0 : i32
    return %arg0, %c0_i32, %c0_i32_0, %c0_i32_1 : i32, i32, i32, i32
  }
  func.func @transform_1(%arg0: i32) -> (i32, i32) {
    %c0_i32 = arith.constant 0 : i32
    %c0_i32_0 = arith.constant 0 : i32
    %c0_i32_1 = arith.constant 0 : i32
    return %c0_i32, %c0_i32_0 : i32, i32
  }
  func.func @transform_2(%arg0: i32) -> (i32, i32) {
    %c0_i32 = arith.constant 0 : i32
    %c0_i32_0 = arith.constant 0 : i32
    %c0_i32_1 = arith.constant 0 : i32
    return %c0_i32, %c0_i32_0 : i32, i32
  }
  func.func @transform_3(%arg0: i32) -> (i32, i32, i32, i32) {
    %c0_i32 = arith.constant 0 : i32
    %c0_i32_0 = arith.constant 0 : i32
    %c0_i32_1 = arith.constant 0 : i32
    %c0_i32_2 = arith.constant 0 : i32
    return %arg0, %c0_i32, %c0_i32_0, %c0_i32_1 : i32, i32, i32, i32
  }
}

</mosaic_0001>

<bundles_post_ra>
// kernel: tpu_custom_call.1
= control target key start
LH: loop header
LB: loop body
LE: loop exit
PB: predicated region body
PF: predicated region fallthrough
CT: control target
= control target key end

     0   :  { %8 = vsyncpa [#allocation3], 0  ;;  %s6249_s0 = inlined_call_operand.vmem [shape: bf16[2,18,18,8], index: 0, kind: input, shape index: {}]   ;;  %s6250_s1 = inlined_call_operand.vmem [shape: bf16[72,256], index: 1, kind: input, shape index: {}]   ;;  %s6251_s2 = inlined_call_operand.vmem [shape: f32[1,256], index: 2, kind: input, shape index: {}]   ;;  %s6252_s3 = inlined_call_operand.hbm [shape: bf16[2,16,16,256], index: 3, kind: output, shape index: {}]  }
   0x1   :  { %10 = vsyncpa [#allocation3 + $0x1], 0  ;;  %s4163_s12 = smov 0   ;;  %s4165_s13 = smov 0  }
   0x2   :  { %s4167_s14 = smov 0   ;;  %s4169_s15 = smov 0  }
   0x3 LB: > { %s4184_s16 = sadd.s32 4294967295, %s4139_s15   ;;  %s3602_s17 = sadd.s32 4294967294, %s4139_s15   ;;  %s4139_s15 = sphi %s4169_s15, %s6694_s15   ;;  %s4135_s14 = sphi %s4167_s14, %s6693_s14   ;;  %s4131_s13 = sphi %s4165_s13, %s6692_s13   ;;  %s4127_s12 = sphi %s4163_s12, %s6691_s12  }
   0x4   : > { %s4188_s18 = sadd.s32 1, %s4139_s15   ;;  %s91_s19 = sadd.s32 1, %s4135_s14 }
   0x5   : > { %s88_s20 = ssub.s32 %s4139_s15, %s4188_s18  ;;  %p101_p0 = scmp.ne.s32.totalorder %s4135_s14, %s4131_s13 }
   0x6   : > { %p89_p1 = scmp.eq.s32.totalorder %s88_s20, 0  ;;  %p102_p2 = scmp.eq.s32.totalorder %s4184_s16, 1 }
   0x7   : > { %p107_p3 = scmp.ne.s32.totalorder %s4131_s13, %s4127_s12  ;;  %p108_p4 = scmp.eq.s32.totalorder %s3602_s17, 1 }
   0x8   : > { %s4199_s21 = scalar_select %p89_p1, %s4135_s14, %s91_s19  }
   0x9   : > { %p4201_p5 = por %p102_p2, %p101_p0  ;;  %p4205_p6 = por %p108_p4, %p107_p3 }
   0xa   : > { %p3605_p7 = scmp.ge.s32.totalorder %s4139_s15, 1  ;;  %p140_p8 = scmp.lt.s32.totalorder %s4139_s15, 3 }
   0xc   : > { %p141_p9 = pnand %p3605_p7, %p140_p8 }
   0xe   : > { %144 = sbr.rel (%p141_p9) target bundleno = 1333 (0x535), region = 32 }
  0x13   : > { %v612_v0 = vld [vmem:[%s6250_s1 + $0x8] sm:$0xff]  ;;  %p164_p10 = scmp.lt.s32.totalorder %s4184_s16, 1  ;;  %vm715_vm0 = vcmask 1043456   ;;  %v224_v3 = vld [vmem:[%s6250_s1] sm:$0xff]  ;;  %v1348_v4 = vld [vmem:[%s6250_s1 + $0x10] sm:$0xff]  ;;  %vm666_vm3 = vcmask 64512  }
  0x14   : > { %v662_v1 = vunpack.c.l.b16 %v612_v0  ;;  %v663_v2 = vunpack.c.h.b16 %v612_v0  ;;  %v981_v5 = vunpack.c.l.b16 %v224_v3  ;;  %v982_v6 = vunpack.c.h.b16 %v224_v3  ;;  %s4097_s26 = scalar_lea.hbm %s6252_s3, 512 }
  0x15   : > { %s165_s30 = scalar_select %p164_p10, %s4184_s16, 1  ;;  %v1398_v7 = vunpack.c.l.b16 %v1348_v4  ;;  %v1399_v8 = vunpack.c.h.b16 %v1348_v4  ;;  %vm225_vm1 = vsmask.f32 3328  ;;  %vm226_vm2 = vsmask.f32 7440 }
  0x16   : > { %v664_v9 = vpack.c.b16 %v662_v1, %v662_v1  ;;  %v665_v10 = vpack.c.b16 %v663_v2, %v663_v2  ;;  %v983_v11 = vpack.c.b16 %v981_v5, %v981_v5  ;;  %v984_v12 = vpack.c.b16 %v982_v6, %v982_v6  ;;  %vm4258_vm4 = vmor %vm225_vm1, %vm226_vm2 }
  0x17   : > { %s4012_s4 = smul.u32 216, %s165_s30  ;;  %v1400_v13 = vpack.c.b16 %v1398_v7, %v1398_v7  ;;  %v1401_v14 = vpack.c.b16 %v1399_v8, %v1399_v8  ;;  %v6359_v46 = vmov 0  ;;  %vm1233_vm5 = vcmask 1042432  }
  0x18   : > { %v717_v15 = vsel %vm715_vm0, %v664_v9, 0  ;;  %v720_v16 = vsel %vm715_vm0, %v665_v10, 0  ;;  %v1034_v17 = vsel %vm715_vm0, %v983_v11, 0  ;;  %v1037_v18 = vsel %vm715_vm0, %v984_v12, 0 }
  0x19   : > { %729 = vmatpush.bf16.msra.mxu0 %v717_v15  ;;  %4010 = vmatpush.bf16.msra.mxu2 %v717_v15  ;;  %s4227_s7 = scalar_lea.vmem %s6249_s0, %s4012_s4  ;;  %v1451_v19 = vsel %vm715_vm0, %v1400_v13, 0  ;;  %v1454_v20 = vsel %vm715_vm0, %v1401_v14, 0  ;;  %v6360_v46 = vsel %vm4258_vm4, 4294967295, %v6359_v46  ;;  %vm1234_vm6 = vcmask 1046532   ;;  %s161_s4 = sand.u32 1, %s4131_s13  }
  0x1a   : > { %818 = vmatpush.bf16.msra.mxu1 %v720_v16  ;;  %4011 = vmatpush.bf16.msra.mxu3 %v720_v16  ;;  %v4234_v21 = vld [vmem:[%s4227_s7] sm:$0xf]  ;;  %v4237_v22 = vld [vmem:[%s4227_s7 + $0x4] sm:$0xf]  ;;  %v4240_v23 = vld [vmem:[%s4227_s7 + $0x8] sm:$0x1] }
  0x1b   : > { %v229_v24 = vshrl.u32 %v4234_v21, 16  ;;  %v232_v25 = vshll.u32 %v4234_v21, 16  ;;  %v238_v26 = vshll.u32 %v4237_v22, 16  ;;  %v242_v27 = vshrl.u32 %v4237_v22, 16  ;;  %v194_v28 = vld [vmem:[%s4227_s7 + $0x60] sm:$0xf]  ;;  %vm4594_vm7 = vmor %vm1233_vm5, %vm1234_vm6 }
  0x1c   : > { %v248_v29 = vshll.u32 %v4240_v23, 16  ;;  %v195_v30 = vld [vmem:[%s4227_s7 + $0x64] sm:$0xf]  ;;  %v196_v31 = vld [vmem:[%s4227_s7 + $0x68] sm:$0x1]  ;;  %v421_v38 = vshrl.u32 %v194_v28, 16 }
  0x1d   : > { %1046 = vmatpush.bf16.msrb.mxu2 %v1034_v17  ;;  %1463 = vmatpush.bf16.msrb.mxu0 %v1451_v19  ;;  %v231_v32 = vrot.slane %v229_v24, 4  ;;  %v234_v33 = vrot.slane %v232_v25, 5  ;;  %v240_v34 = vrot.slane %v238_v26, 5  ;;  %v244_v35 = vrot.slane %v242_v27, 4  ;;  %v4251_v36 = vld [vmem:[%s4227_s7 + $0xc] sm:$0xf] }
  0x1e   : > { %1135 = vmatpush.bf16.msrb.mxu3 %v1037_v18  ;;  %1552 = vmatpush.bf16.msrb.mxu1 %v1454_v20  ;;  %v250_v37 = vrot.slane %v248_v29, 5  ;;  %v424_v39 = vshll.u32 %v194_v28, 16  ;;  %v430_v40 = vshll.u32 %v195_v30, 16  ;;  %v434_v43 = vshrl.u32 %v195_v30, 16  ;;  %v4254_v45 = vld [vmem:[%s4227_s7 + $0x10] sm:$0xf] }
  0x1f   : > { %v235_v41 = vor.u32 %v234_v33, %v231_v32  ;;  %v245_v42 = vor.u32 %v244_v35, %v240_v34  ;;  %v440_v44 = vshll.u32 %v196_v31, 16  ;;  %6361 = vst [vmem:[#allocation5_spill] sm:$0xff] %v6360_v46  ;;  %v423_v47 = vrot.slane %v421_v38, 4  ;;  %v4264_v56 = vld [vmem:[%s4227_s7 + $0x14] sm:$0x1]  ;;  %s3606_s5 = sshll.u32 %s161_s4, 8 }
  0x20   : > { %v426_v48 = vrot.slane %v424_v39, 5  ;;  %v432_v49 = vrot.slane %v430_v40, 5  ;;  %v253_v50 = vshrl.u32 %v4251_v36, 16  ;;  %v436_v53 = vrot.slane %v434_v43, 4  ;;  %v197_v0 = vld [vmem:[%s4227_s7 + $0x6c] sm:$0xf] }
  0x21   : > { %v236_v51 = vrot.slane %v235_v41, 4  ;;  %v246_v52 = vrot.slane %v245_v42, 4  ;;  %v442_v54 = vrot.slane %v440_v44, 5  ;;  %v256_v58 = vshll.u32 %v4251_v36, 16  ;;  %v198_v12 = vld [vmem:[%s4227_s7 + $0x70] sm:$0xf] }
  0x22   : > { %v427_v55 = vor.u32 %v426_v48, %v423_v47  ;;  %v255_v57 = vrot.slane %v253_v50, 4  ;;  %v262_v59 = vshll.u32 %v4254_v45, 16  ;;  %v437_v62 = vor.u32 %v436_v53, %v432_v49  ;;  %v199_v13 = vld [vmem:[%s4227_s7 + $0x74] sm:$0x1]  ;;  %v4284_v26 = vld [vmem:[%s4227_s7 + $0x18] sm:$0xf] }
  0x23   : > { %v241_v60 = vsel %vm4258_vm4, %v236_v51, %v240_v34  ;;  %v251_v61 = vsel %vm4258_vm4, %v246_v52, %v250_v37  ;;  %v266_v63 = vshrl.u32 %v4254_v45, 16  ;;  %v258_v4 = vrot.slane %v256_v58, 5  ;;  %v4291_v34 = vld [vmem:[%s4227_s7 + $0x1c] sm:$0xf]  ;;  %v200_v42 = vld [vmem:[%s4227_s7 + $0x78] sm:$0xf] }
  0x24   : > { %v613_v1 = vunpack.c.l.b16 %v241_v60  ;;  %v614_v2 = vunpack.c.l.b16 %v251_v61  ;;  %v428_v3 = vrot.slane %v427_v55, 4  ;;  %v438_v5 = vrot.slane %v437_v62, 4  ;;  %v201_v55 = vld [vmem:[%s4227_s7 + $0x7c] sm:$0xf]  ;;  %s6000_s6 = scalar_lea.vmem [#allocation2], %s3606_s5  ;;  %s3525_s17 = scalar_lea.sflag [#allocation3], %s161_s4 }
  0x25   : > { %v264_v6 = vrot.slane %v262_v59, 5  ;;  %v268_v7 = vrot.slane %v266_v63, 4  ;;  %v272_v8 = vshll.u32 %v4264_v56, 16  ;;  %v259_v11 = vor.u32 %v258_v4, %v255_v57  ;;  %v4310_v63 = vld [vmem:[%s4227_s7 + $0x20] sm:$0x1] }
  0x26   : > { %v645_v9 = vpack.c.b16 %v614_v2, %v613_v1  ;;  %v433_v10 = vsel %vm4258_vm4, %v428_v3, %v432_v49  ;;  %v445_v14 = vshrl.u32 %v197_v0, 16  ;;  %v443_v15 = vsel %vm4258_vm4, %v438_v5, %v442_v54 }
  0x27   : > { %v629_v16 = vunpack.c.l.b16 %v433_v10  ;;  %v269_v17 = vor.u32 %v268_v7, %v264_v6  ;;  %v274_v18 = vrot.slane %v272_v8, 5  ;;  %v630_v19 = vunpack.c.l.b16 %v443_v15 }
  0x28   : > { %3608 = vmatmul.msk.bf16.vlgmr.msra.gmra.mxu0 %vm666_vm3, %v645_v9  ;;  %3624 = vmatmul.msk.bf16.vlgmr.msra.gmra.mxu1 %vm666_vm3, %v645_v9  ;;  %v260_v20 = vrot.slane %v259_v11, 4  ;;  %v447_v24 = vrot.slane %v445_v14, 4  ;;  %v448_v25 = vshll.u32 %v197_v0, 16  ;;  %v454_v28 = vshll.u32 %v198_v12, 16 }
  0x29   : > { %v270_v27 = vrot.slane %v269_v17, 4  ;;  %v458_v29 = vshrl.u32 %v198_v12, 16  ;;  %v464_v30 = vshll.u32 %v199_v13, 16  ;;  %v4286_v31 = vpack.c.b16 %v630_v19, %v629_v16  ;;  %v4316_v12 = vld [vmem:[%s4227_s7 + $0x80] sm:$0x1] }
  0x2a   : > { %v265_v32 = vsel %vm4258_vm4, %v260_v20, %v264_v6  ;;  %v450_v33 = vrot.slane %v448_v25, 5  ;;  %v456_v37 = vrot.slane %v454_v28, 5  ;;  %v277_v39 = vshrl.u32 %v4284_v26, 16 }
  0x2b   : > { %6362 = vst [vmem:[#allocation6_spill] sm:$0xff] %v4286_v31  ;;  %v275_v35 = vsel %vm4258_vm4, %v270_v27, %v274_v18  ;;  %v460_v38 = vrot.slane %v458_v29, 4  ;;  %3616 = vmatmul.msk.bf16.vlgmr.msra.gmra.mxu2 %vm666_vm3, %v4286_v31  ;;  %3632 = vmatmul.msk.bf16.vlgmr.msra.gmra.mxu3 %vm666_vm3, %v4286_v31  ;;  %v466_v41 = vrot.slane %v464_v30, 5  ;;  %v280_v44 = vshll.u32 %v4284_v26, 16  ;;  %v4325_v18 = vld [vmem:[%s4227_s7 + $0x24] sm:$0xf] }
  0x2c   : > { %v451_v40 = vor.u32 %v450_v33, %v447_v24  ;;  %v286_v47 = vshll.u32 %v4291_v34, 16  ;;  %v290_v48 = vshrl.u32 %v4291_v34, 16  ;;  %v615_v49 = vunpack.c.l.b16 %v265_v32  ;;  %v4329_v24 = vld [vmem:[%s4227_s7 + $0x28] sm:$0xf]  ;;  %v4504_v31 = vld [vmem:[%s4227_s7 + $0xb0] sm:$0x1] }
  0x2d   : > { %v461_v43 = vor.u32 %v460_v38, %v456_v37  ;;  %v616_v50 = vunpack.c.l.b16 %v275_v35  ;;  %v279_v53 = vrot.slane %v277_v39, 4  ;;  %v282_v54 = vrot.slane %v280_v44, 5  ;;  %v203_v38 = vld [vmem:[%s4227_s7 + $0x84] sm:$0xf]  ;;  %v4345_v39 = vld [vmem:[%s4227_s7 + $0x88] sm:$0xf] }
  0x2e   : > { %v452_v51 = vrot.slane %v451_v40, 4  ;;  %v469_v57 = vshrl.u32 %v200_v42, 16  ;;  %v288_v58 = vrot.slane %v286_v47, 5  ;;  %v292_v59 = vrot.slane %v290_v48, 4  ;;  %v4350_v44 = vld [vmem:[%s4227_s7 + $0x2c] sm:$0x1] }
  0x2f   : > { %v462_v52 = vrot.slane %v461_v43, 4  ;;  %v472_v60 = vshll.u32 %v200_v42, 16  ;;  %v478_v0 = vshll.u32 %v201_v55, 16  ;;  %v482_v1 = vshrl.u32 %v201_v55, 16 }
  0x30   : > { %v457_v61 = vsel %vm4258_vm4, %v452_v51, %v456_v37  ;;  %v4312_v2 = vpack.c.b16 %v616_v50, %v615_v49  ;;  %v283_v3 = vor.u32 %v282_v54, %v279_v53  ;;  %v471_v4 = vrot.slane %v469_v57, 4 }
  0x31   : > { %v467_v62 = vsel %vm4258_vm4, %v462_v52, %v466_v41  ;;  %v474_v5 = vrot.slane %v472_v60, 5  ;;  %v631_v6 = vunpack.c.l.b16 %v457_v61  ;;  %v293_v8 = vor.u32 %v292_v59, %v288_v58 }
  0x32   : > { %6363 = vst [vmem:[#allocation7_spill] sm:$0xff] %v4312_v2  ;;  %v632_v7 = vunpack.c.l.b16 %v467_v62  ;;  %v296_v9 = vshll.u32 %v4310_v63, 16  ;;  %v480_v10 = vrot.slane %v478_v0, 5  ;;  %v484_v11 = vrot.slane %v482_v1, 4  ;;  %v4360_v0 = vld [vmem:[%s4227_s7 + $0x8c] sm:$0x1] }
  0x33   : > { %v284_v13 = vrot.slane %v283_v3, 4  ;;  %v475_v14 = vor.u32 %v474_v5, %v471_v4  ;;  %v294_v16 = vrot.slane %v293_v8, 4  ;;  %v488_v20 = vshll.u32 %v4316_v12, 16  ;;  %v4363_v5 = vld [vmem:[%s4227_s7 + $0x30] sm:$0xf] }
  0x34   : > { %v4320_v15 = vpack.c.b16 %v632_v7, %v631_v6  ;;  %v298_v17 = vrot.slane %v296_v9, 5  ;;  %v485_v19 = vor.u32 %v484_v11, %v480_v10  ;;  %v301_v28 = vshrl.u32 %v4325_v18, 16  ;;  %v4366_v6 = vld [vmem:[%s4227_s7 + $0x34] sm:$0xf] }
  0x35   : > { %v289_v25 = vsel %vm4258_vm4, %v284_v13, %v288_v58  ;;  %v476_v27 = vrot.slane %v475_v14, 4  ;;  %v304_v30 = vshll.u32 %v4325_v18, 16  ;;  %v310_v32 = vshll.u32 %v4329_v24, 16 }
  0x36   : > { %6364 = vst [vmem:[#allocation8_spill] sm:$0xff] %v4320_v15  ;;  %v299_v29 = vsel %vm4258_vm4, %v294_v16, %v298_v17  ;;  %v314_v33 = vshrl.u32 %v4329_v24, 16  ;;  %v486_v35 = vrot.slane %v485_v19, 4  ;;  %v490_v37 = vrot.slane %v488_v20, 5 }
  0x37   : > { %v617_v40 = vunpack.c.l.b16 %v289_v25  ;;  %v618_v41 = vunpack.c.l.b16 %v299_v29  ;;  %v481_v42 = vsel %vm4258_vm4, %v476_v27, %v480_v10  ;;  %v303_v43 = vrot.slane %v301_v28, 4  ;;  %v4384_v27 = vld [vmem:[%s4227_s7 + $0x90] sm:$0xf]  ;;  %v4387_v28 = vld [vmem:[%s4227_s7 + $0x94] sm:$0xf] }
  0x38   : > { %3609 = vmatmul.msk.bf16.gmra.mxu0 %vm666_vm3, %v4312_v2  ;;  %3625 = vmatmul.msk.bf16.gmra.mxu1 %vm666_vm3, %v4312_v2  ;;  %v306_v47 = vrot.slane %v304_v30, 5  ;;  %v312_v48 = vrot.slane %v310_v32, 5  ;;  %v316_v49 = vrot.slane %v314_v33, 4  ;;  %v493_v50 = vshrl.u32 %v203_v38, 16 }
  0x39   : > { %v491_v51 = vsel %vm4258_vm4, %v486_v35, %v490_v37  ;;  %v496_v52 = vshll.u32 %v203_v38, 16  ;;  %v502_v53 = vshll.u32 %v4345_v39, 16  ;;  %v506_v54 = vshrl.u32 %v4345_v39, 16 }
  0x3a   : > { %v4356_v55 = vpack.c.b16 %v618_v41, %v617_v40  ;;  %v320_v57 = vshll.u32 %v4350_v44, 16  ;;  %v633_v58 = vunpack.c.l.b16 %v481_v42  ;;  %v634_v59 = vunpack.c.l.b16 %v491_v51  ;;  %v4394_v41 = vld [vmem:[%s4227_s7 + $0x38] sm:$0x1] }
  0x3b   : > { %3617 = vmatmul.msk.bf16.gmra.mxu2 %vm666_vm3, %v4320_v15  ;;  %3633 = vmatmul.msk.bf16.gmra.mxu3 %vm666_vm3, %v4320_v15  ;;  %v307_v60 = vor.u32 %v306_v47, %v303_v43  ;;  %v495_v61 = vrot.slane %v493_v50, 4  ;;  %v317_v62 = vor.u32 %v316_v49, %v312_v48  ;;  %v498_v1 = vrot.slane %v496_v52, 5 }
  0x3c   : > { %6365 = vst [vmem:[#allocation9_spill] sm:$0xff] %v4356_v55  ;;  %v504_v3 = vrot.slane %v502_v53, 5  ;;  %v508_v4 = vrot.slane %v506_v54, 4  ;;  %v4370_v7 = vpack.c.b16 %v634_v59, %v633_v58  ;;  %v322_v8 = vrot.slane %v320_v57, 5 }
  0x3d   : > { %v512_v9 = vshll.u32 %v4360_v0, 16  ;;  %v308_v10 = vrot.slane %v307_v60, 4  ;;  %v318_v11 = vrot.slane %v317_v62, 4  ;;  %v499_v13 = vor.u32 %v498_v1, %v495_v61 }
  0x3e   : > { %6366 = vst [vmem:[#allocation10_spill] sm:$0xff] %v4370_v7  ;;  %v509_v14 = vor.u32 %v508_v4, %v504_v3  ;;  %v325_v16 = vshrl.u32 %v4363_v5, 16  ;;  %v328_v17 = vshll.u32 %v4363_v5, 16  ;;  %v334_v19 = vshll.u32 %v4366_v6, 16 }
  0x3f   : > { %v338_v20 = vshrl.u32 %v4366_v6, 16  ;;  %v514_v25 = vrot.slane %v512_v9, 5  ;;  %v313_v29 = vsel %vm4258_vm4, %v308_v10, %v312_v48  ;;  %v323_v30 = vsel %vm4258_vm4, %v318_v11, %v322_v8  ;;  %v4408_v8 = vld [vmem:[%s4227_s7 + $0x98] sm:$0x1] }
  0x40   : > { %v500_v32 = vrot.slane %v499_v13, 4  ;;  %v510_v33 = vrot.slane %v509_v14, 4  ;;  %v327_v35 = vrot.slane %v325_v16, 4  ;;  %v330_v37 = vrot.slane %v328_v17, 5  ;;  %v4418_v17 = vld [vmem:[%s4227_s7 + $0x3c] sm:$0xf] }
  0x41   : > { %v336_v38 = vrot.slane %v334_v19, 5  ;;  %v340_v40 = vrot.slane %v338_v20, 4  ;;  %v517_v42 = vshrl.u32 %v4384_v27, 16  ;;  %v520_v43 = vshll.u32 %v4384_v27, 16  ;;  %v4421_v19 = vld [vmem:[%s4227_s7 + $0x40] sm:$0xf] }
  0x42   : > { %v526_v47 = vshll.u32 %v4387_v28, 16  ;;  %v530_v48 = vshrl.u32 %v4387_v28, 16  ;;  %v619_v49 = vunpack.c.l.b16 %v313_v29  ;;  %v620_v50 = vunpack.c.l.b16 %v323_v30 }
  0x43   : > { %v505_v51 = vsel %vm4258_vm4, %v500_v32, %v504_v3  ;;  %v515_v52 = vsel %vm4258_vm4, %v510_v33, %v514_v25  ;;  %v331_v53 = vor.u32 %v330_v37, %v327_v35  ;;  %v341_v54 = vor.u32 %v340_v40, %v336_v38  ;;  %v4436_v40 = vld [vmem:[%s4227_s7 + $0x9c] sm:$0xf] }
  0x44   : > { %v344_v57 = vshll.u32 %v4394_v41, 16  ;;  %v519_v58 = vrot.slane %v517_v42, 4  ;;  %v522_v59 = vrot.slane %v520_v43, 5  ;;  %v528_v60 = vrot.slane %v526_v47, 5  ;;  %v4439_v42 = vld [vmem:[%s4227_s7 + $0xa0] sm:$0xf] }
  0x45   : > { %v532_v61 = vrot.slane %v530_v48, 4  ;;  %v4405_v62 = vpack.c.b16 %v620_v50, %v619_v49  ;;  %v635_v1 = vunpack.c.l.b16 %v505_v51  ;;  %v636_v4 = vunpack.c.l.b16 %v515_v52 }
  0x46   : > { %v332_v3 = vrot.slane %v331_v53, 4  ;;  %v346_v9 = vrot.slane %v344_v57, 5  ;;  %v342_v10 = vrot.slane %v341_v54, 4  ;;  %v523_v11 = vor.u32 %v522_v59, %v519_v58  ;;  %v4446_v54 = vld [vmem:[%s4227_s7 + $0x44] sm:$0x1] }
  0x47   : > { %6367 = vst [vmem:[#allocation11_spill] sm:$0xff] %v4405_v62  ;;  %v533_v13 = vor.u32 %v532_v61, %v528_v60  ;;  %v536_v14 = vshll.u32 %v4408_v8, 16  ;;  %v4413_v16 = vpack.c.b16 %v636_v4, %v635_v1  ;;  %v349_v33 = vshrl.u32 %v4418_v17, 16 }
  0x48   : > { %3610 = vmatmul.msk.bf16.gmra.mxu0 %vm666_vm3, %v4356_v55  ;;  %3626 = vmatmul.msk.bf16.gmra.mxu1 %vm666_vm3, %v4356_v55  ;;  %v337_v20 = vsel %vm4258_vm4, %v332_v3, %v336_v38  ;;  %v347_v25 = vsel %vm4258_vm4, %v342_v10, %v346_v9  ;;  %v524_v29 = vrot.slane %v523_v11, 4  ;;  %v352_v35 = vshll.u32 %v4418_v17, 16 }
  0x49   : > { %6368 = vst [vmem:[#allocation12_spill] sm:$0xff] %v4413_v16  ;;  %v534_v30 = vrot.slane %v533_v13, 4  ;;  %v538_v32 = vrot.slane %v536_v14, 5  ;;  %v358_v37 = vshll.u32 %v4421_v19, 16  ;;  %v362_v38 = vshrl.u32 %v4421_v19, 16 }
  0x4a   : > { %v621_v43 = vunpack.c.l.b16 %v337_v20  ;;  %v622_v47 = vunpack.c.l.b16 %v347_v25  ;;  %v529_v48 = vsel %vm4258_vm4, %v524_v29, %v528_v60  ;;  %v351_v50 = vrot.slane %v349_v33, 4  ;;  %v4456_v25 = vld [vmem:[%s4227_s7 + $0xa4] sm:$0x1]  ;;  %v4459_v29 = vld [vmem:[%s4227_s7 + $0x48] sm:$0xf] }
  0x4b   : > { %3618 = vmatmul.msk.bf16.gmra.mxu2 %vm666_vm3, %v4370_v7  ;;  %3634 = vmatmul.msk.bf16.gmra.mxu3 %vm666_vm3, %v4370_v7  ;;  %v539_v49 = vsel %vm4258_vm4, %v534_v30, %v538_v32  ;;  %v354_v51 = vrot.slane %v352_v35, 5  ;;  %v360_v52 = vrot.slane %v358_v37, 5  ;;  %v364_v53 = vrot.slane %v362_v38, 4  ;;  %v4462_v30 = vld [vmem:[%s4227_s7 + $0x4c] sm:$0xf] }
  0x4c   : > { %v541_v57 = vshrl.u32 %v4436_v40, 16  ;;  %v544_v58 = vshll.u32 %v4436_v40, 16  ;;  %v550_v59 = vshll.u32 %v4439_v42, 16  ;;  %v554_v60 = vshrl.u32 %v4439_v42, 16 }
  0x4d   : > { %v4452_v61 = vpack.c.b16 %v622_v47, %v621_v43  ;;  %v637_v1 = vunpack.c.l.b16 %v529_v48  ;;  %v638_v4 = vunpack.c.l.b16 %v539_v49  ;;  %v355_v3 = vor.u32 %v354_v51, %v351_v50 }
  0x4e   : > { %v365_v9 = vor.u32 %v364_v53, %v360_v52  ;;  %v368_v10 = vshll.u32 %v4446_v54, 16  ;;  %v543_v11 = vrot.slane %v541_v57, 4  ;;  %v546_v13 = vrot.slane %v544_v58, 5  ;;  %v4482_v57 = vld [vmem:[%s4227_s7 + $0xa8] sm:$0xf] }
  0x4f   : > { %6369 = vst [vmem:[#allocation13_spill] sm:$0xff] %v4452_v61  ;;  %v552_v14 = vrot.slane %v550_v59, 5  ;;  %v556_v20 = vrot.slane %v554_v60, 4  ;;  %v4466_v32 = vpack.c.b16 %v638_v4, %v637_v1  ;;  %v356_v33 = vrot.slane %v355_v3, 4  ;;  %v4485_v58 = vld [vmem:[%s4227_s7 + $0xac] sm:$0xf] }
  0x50   : > { %v370_v35 = vrot.slane %v368_v10, 5  ;;  %v366_v37 = vrot.slane %v365_v9, 4  ;;  %v547_v38 = vor.u32 %v546_v13, %v543_v11  ;;  %v560_v47 = vshll.u32 %v4456_v25, 16  ;;  %v4490_v13 = vld [vmem:[%s4227_s7 + $0x50] sm:$0x1] }
  0x51   : > { %6370 = vst [vmem:[#allocation14_spill] sm:$0xff] %v4466_v32  ;;  %v557_v43 = vor.u32 %v556_v20, %v552_v14  ;;  %v373_v48 = vshrl.u32 %v4459_v29, 16  ;;  %v376_v49 = vshll.u32 %v4459_v29, 16  ;;  %v382_v50 = vshll.u32 %v4462_v30, 16 }
  0x52   : > { %v386_v51 = vshrl.u32 %v4462_v30, 16  ;;  %v361_v53 = vsel %vm4258_vm4, %v356_v33, %v360_v52  ;;  %v371_v59 = vsel %vm4258_vm4, %v366_v37, %v370_v35  ;;  %v548_v60 = vrot.slane %v547_v38, 4 }
  0x53   : > { %v558_v1 = vrot.slane %v557_v43, 4  ;;  %v562_v4 = vrot.slane %v560_v47, 5  ;;  %v375_v3 = vrot.slane %v373_v48, 4  ;;  %v378_v9 = vrot.slane %v376_v49, 5 }
  0x54   : > { %v384_v10 = vrot.slane %v382_v50, 5  ;;  %v388_v11 = vrot.slane %v386_v51, 4  ;;  %v565_v20 = vshrl.u32 %v4482_v57, 16  ;;  %v568_v52 = vshll.u32 %v4482_v57, 16 }
  0x55   : > { %v574_v33 = vshll.u32 %v4485_v58, 16  ;;  %v624_v35 = vunpack.c.l.b16 %v371_v59  ;;  %v553_v37 = vsel %vm4258_vm4, %v548_v60, %v552_v14  ;;  %v563_v38 = vsel %vm4258_vm4, %v558_v1, %v562_v4 }
  0x56   : > { %v379_v43 = vor.u32 %v378_v9, %v375_v3  ;;  %v389_v47 = vor.u32 %v388_v11, %v384_v10  ;;  %v392_v48 = vshll.u32 %v4490_v13, 16  ;;  %v567_v49 = vrot.slane %v565_v20, 4 }
  0x57   : > { %v570_v50 = vrot.slane %v568_v52, 5  ;;  %v576_v51 = vrot.slane %v574_v33, 5  ;;  %v640_v59 = vunpack.c.l.b16 %v563_v38  ;;  %v584_v3 = vshll.u32 %v4504_v31, 16 }
  0x58   : > { %3611 = vmatmul.msk.bf16.gmra.mxu0 %vm666_vm3, %v4405_v62  ;;  %3627 = vmatmul.msk.bf16.gmra.mxu1 %vm666_vm3, %v4405_v62  ;;  %v380_v14 = vrot.slane %v379_v43, 4  ;;  %v394_v60 = vrot.slane %v392_v48, 5  ;;  %v4532_v43 = vld [vmem:[%s4227_s7 + $0xb4] sm:$0xf] }
  0x59   : > { %v571_v1 = vor.u32 %v570_v50, %v567_v49  ;;  %v586_v33 = vrot.slane %v584_v3, 5  ;;  %v592_v3 = vshll.u32 %v4532_v43, 16 }
  0x5a   : > { %v385_v11 = vsel %vm4258_vm4, %v380_v14, %v384_v10 }
  0x5b   : > { %3619 = vmatmul.msk.bf16.gmra.mxu2 %vm666_vm3, %v4413_v16  ;;  %3635 = vmatmul.msk.bf16.gmra.mxu3 %vm666_vm3, %v4413_v16  ;;  %v623_v16 = vunpack.c.l.b16 %v361_v53  ;;  %v639_v53 = vunpack.c.l.b16 %v553_v37  ;;  %v572_v20 = vrot.slane %v571_v1, 4  ;;  %v4542_v1 = vld [vmem:[%s4227_s7 + $0x5c] sm:$0x1] }
  0x5d   : > { %v4501_v15 = vpack.c.b16 %v624_v35, %v623_v16  ;;  %v4509_v9 = vpack.c.b16 %v640_v59, %v639_v53  ;;  %v4514_v16 = vld [vmem:[%s4227_s7 + $0x54] sm:$0xf]  ;;  %v577_v49 = vsel %vm4258_vm4, %v572_v20, %v576_v51 }
  0x5e   : > { %v397_v35 = vshrl.u32 %v4514_v16, 16  ;;  %v400_v37 = vshll.u32 %v4514_v16, 16 }
  0x5f   : > { %6371 = vst [vmem:[#allocation15_spill] sm:$0xff] %v4501_v15 }
  0x60   : > { %6372 = vst [vmem:[#allocation16_spill] sm:$0xff] %v4509_v9  ;;  %v399_v53 = vrot.slane %v397_v35, 4  ;;  %v402_v59 = vrot.slane %v400_v37, 5  ;;  %v416_v35 = vshll.u32 %v4542_v1, 16  ;;  %v4552_v37 = vld [vmem:[%s4227_s7 + $0xbc] sm:$0x1] }
  0x68   : > { %3612 = vmatmul.msk.bf16.gmra.mxu0 %vm666_vm3, %v4452_v61  ;;  %3628 = vmatmul.msk.bf16.gmra.mxu1 %vm666_vm3, %v4452_v61  ;;  %v390_v61 = vrot.slane %v389_v47, 4  ;;  %v625_v47 = vunpack.c.l.b16 %v385_v11 }
  0x6b   : > { %3620 = vmatmul.msk.bf16.gmra.mxu2 %vm666_vm3, %v4466_v32  ;;  %3636 = vmatmul.msk.bf16.gmra.mxu3 %vm666_vm3, %v4466_v32  ;;  %v578_v32 = vshrl.u32 %v4485_v58, 16 }
  0x6d   : > { %v580_v7 = vrot.slane %v578_v32, 4  ;;  %v4517_v32 = vld [vmem:[%s4227_s7 + $0x58] sm:$0xf] }
  0x6e   : > { %v406_v38 = vshll.u32 %v4517_v32, 16  ;;  %v410_v10 = vshrl.u32 %v4517_v32, 16 }
  0x6f   : > { %v581_v4 = vor.u32 %v580_v7, %v576_v51  ;;  %v395_v7 = vsel %vm4258_vm4, %v390_v61, %v394_v60  ;;  %v4535_v61 = vld [vmem:[%s4227_s7 + $0xb8] sm:$0xf] }
  0x70   : > { %v626_v48 = vunpack.c.l.b16 %v395_v7  ;;  %v408_v14 = vrot.slane %v406_v38, 5  ;;  %v412_v60 = vrot.slane %v410_v10, 4  ;;  %v598_v11 = vshll.u32 %v4535_v61, 16 }
  0x71   : > { %v582_v52 = vrot.slane %v581_v4, 4  ;;  %v589_v4 = vshrl.u32 %v4532_v43, 16  ;;  %v602_v7 = vshrl.u32 %v4535_v61, 16  ;;  %v594_v10 = vrot.slane %v592_v3, 5  ;;  %v1698_v3 = vld [vmem:[%s6250_s1 + $0x18] sm:$0xff] }
  0x72   : > { %v4548_v20 = vpack.c.b16 %v626_v48, %v625_v47 }
  0x73   : > { %v587_v50 = vsel %vm4258_vm4, %v582_v52, %v586_v33  ;;  %v403_v52 = vor.u32 %v402_v59, %v399_v53  ;;  %v413_v33 = vor.u32 %v412_v60, %v408_v14  ;;  %v591_v38 = vrot.slane %v589_v4, 4 }
  0x74   : > { %v642_v51 = vunpack.c.l.b16 %v587_v50  ;;  %6373 = vst [vmem:[#allocation17_spill] sm:$0xff] %v4548_v20  ;;  %v604_v62 = vrot.slane %v602_v7, 4  ;;  %v608_v50 = vshll.u32 %v4552_v37, 16 }
  0x75   : > { %v404_v47 = vrot.slane %v403_v52, 4  ;;  %v414_v48 = vrot.slane %v413_v33, 4  ;;  %v595_v53 = vor.u32 %v594_v10, %v591_v38 }
  0x76   : > { %v610_v4 = vrot.slane %v608_v50, 5 }
  0x78   : > { %3613 = vmatmul.msk.bf16.gmra.mxu0 %vm666_vm3, %v4501_v15  ;;  %3629 = vmatmul.msk.bf16.gmra.mxu1 %vm666_vm3, %v4501_v15  ;;  %v600_v15 = vrot.slane %v598_v11, 5  ;;  %v596_v11 = vrot.slane %v595_v53, 4 }
  0x7a   : > { %v605_v59 = vor.u32 %v604_v62, %v600_v15  ;;  %v1705_v62 = vunpack.c.l.b16 %v1698_v3 }
  0x7b   : > { %3621 = vmatmul.msk.bf16.gmra.mxu2 %vm666_vm3, %v4509_v9  ;;  %3637 = vmatmul.msk.bf16.gmra.mxu3 %vm666_vm3, %v4509_v9  ;;  %v641_v9 = vunpack.c.l.b16 %v577_v49  ;;  %v418_v49 = vrot.slane %v416_v35, 5 }
  0x7c   : > { %v606_v7 = vrot.slane %v605_v59, 4  ;;  %v1707_v35 = vpack.c.b16 %v1705_v62, %v1705_v62 }
  0x7d   : > { %v4554_v55 = vpack.c.b16 %v642_v51, %v641_v9  ;;  %v409_v9 = vsel %vm4258_vm4, %v404_v47, %v408_v14  ;;  %v419_v60 = vsel %vm4258_vm4, %v414_v48, %v418_v49  ;;  %v1706_v51 = vunpack.c.h.b16 %v1698_v3  ;;  %v1984_v14 = vld [vmem:[%s6250_s1 + $0x20] sm:$0xff] }
  0x7e   : > { %v627_v52 = vunpack.c.l.b16 %v409_v9  ;;  %v628_v33 = vunpack.c.l.b16 %v419_v60  ;;  %v1989_v10 = vunpack.c.l.b16 %v1984_v14  ;;  %v1990_v47 = vunpack.c.h.b16 %v1984_v14 }
  0x7f   : > { %6374 = vst [vmem:[#allocation18_spill] sm:$0xff] %v4554_v55  ;;  %v1708_v38 = vpack.c.b16 %v1706_v51, %v1706_v51  ;;  %v601_v48 = vsel %vm4258_vm4, %v596_v11, %v600_v15  ;;  %v611_v49 = vsel %vm4258_vm4, %v606_v7, %v610_v4  ;;  %v1713_v50 = vsel %vm715_vm0, %v1707_v35, 0 }
  0x80   : > { %1725 = vmatpush.bf16.msra.mxu2 %v1713_v50  ;;  %v1991_v59 = vpack.c.b16 %v1989_v10, %v1989_v10  ;;  %v1992_v9 = vpack.c.b16 %v1990_v47, %v1990_v47  ;;  %v4581_v60 = vpack.c.b16 %v628_v33, %v627_v52  ;;  %v643_v3 = vunpack.c.l.b16 %v601_v48 }
  0x81   : > { %v1716_v53 = vsel %vm715_vm0, %v1708_v38, 0  ;;  %v644_v62 = vunpack.c.l.b16 %v611_v49  ;;  %v1238_v15 = vrot.slane %v4237_v22, 5  ;;  %v1241_v11 = vrot.slane %v4240_v23, 5  ;;  %v3991_v49 = vld [vmem:[%s4227_s7] sm:$0xff] }
  0x82   : > { %1814 = vmatpush.bf16.msra.mxu3 %v1716_v53  ;;  %6375 = vst [vmem:[#allocation19_spill] sm:$0xff] %v4581_v60  ;;  %v1997_v51 = vsel %vm715_vm0, %v1991_v59, 0  ;;  %v2000_v14 = vsel %vm715_vm0, %v1992_v9, 0  ;;  %v3736_v7 = vrot.slane %v4234_v21, 9  ;;  %v6377_v22 = vmov 0 }
  0x83   : > { %2009 = vmatpush.bf16.msra.mxu0 %v1997_v51  ;;  %2098 = vmatpush.bf16.msra.mxu1 %v2000_v14  ;;  %v4588_v4 = vpack.c.b16 %v644_v62, %v643_v3  ;;  %v1240_v52 = vrot.slane %v1238_v15, 4  ;;  %v6378_v22 = vsel %vm4594_vm7, 4294967295, %v6377_v22  ;;  %v1245_v48 = vrot.slane %v4254_v45, 5 }
  0x84   : > { %6379 = vst [vmem:[#allocation21_spill] sm:$0xff] %v6378_v22  ;;  %v1239_v33 = vsel %vm4594_vm7, %v3736_v7, %v1238_v15  ;;  %v3737_v50 = vrot.slane %v4251_v36, 9  ;;  %v1248_v59 = vrot.slane %v4264_v56, 5 }
  0x85   : > { %6376 = vst [vmem:[#allocation20_spill] sm:$0xff] %v4588_v4  ;;  %v1242_v35 = vsel %vm4594_vm7, %v1240_v52, %v1241_v11  ;;  %v1349_v23 = vunpack.c.l.b16 %v1239_v33  ;;  %v1247_v53 = vrot.slane %v1245_v48, 4  ;;  %v1252_v52 = vrot.slane %v4291_v34, 5 }
  0x86   : > { %v1350_v38 = vunpack.c.l.b16 %v1242_v35  ;;  %v1246_v45 = vsel %vm4594_vm7, %v3737_v50, %v1245_v48  ;;  %v1255_v48 = vrot.slane %v4310_v63, 5 }
  0x87   : > { %v1249_v62 = vsel %vm4594_vm7, %v1247_v53, %v1248_v59  ;;  %v1351_v56 = vunpack.c.l.b16 %v1246_v45 }
  0x88   : > { %3614 = vmatmul.msk.bf16.gmra.mxu0 %vm666_vm3, %v4548_v20  ;;  %3630 = vmatmul.msk.bf16.gmra.mxu1 %vm666_vm3, %v4548_v20  ;;  %v1381_v21 = vpack.c.b16 %v1350_v38, %v1349_v23  ;;  %v1352_v14 = vunpack.c.l.b16 %v1249_v62  ;;  %v4642_v23 = vld [vmem:[%s4227_s7 + $0xc] sm:$0xff]  ;;  %v3738_v38 = vrot.slane %v4284_v26, 9 }
  0x89   : > { %6385 = vst [vmem:[#allocation27_spill] sm:$0xff] %v4642_v23 }
  0x8a   : > { %v4630_v15 = vpack.c.b16 %v1352_v14, %v1351_v56  ;;  %v1253_v50 = vsel %vm4594_vm7, %v3738_v38, %v1252_v52  ;;  %v4678_v38 = vld [vmem:[%s4227_s7 + $0x18] sm:$0xff] }
  0x8b   : > { %3622 = vmatmul.msk.bf16.gmra.mxu2 %vm666_vm3, %v4554_v55  ;;  %3638 = vmatmul.msk.bf16.gmra.mxu3 %vm666_vm3, %v4554_v55  ;;  %v1353_v59 = vunpack.c.l.b16 %v1253_v50  ;;  %6391 = vst [vmem:[#allocation33_spill] sm:$0xff] %v4678_v38  ;;  %v1262_v50 = vrot.slane %v4350_v44, 5 }
  0x8c   : > { %6382 = vst [vmem:[#allocation24_spill] sm:$0xff] %v4630_v15 }
  0x98   : > { %3615 = vmatmul.msk.bf16.gmra.mxu0 %vm666_vm3, %v4581_v60  ;;  %3631 = vmatmul.msk.bf16.gmra.mxu1 %vm666_vm3, %v4581_v60 }
  0x9b   : > { %3623 = vmatmul.msk.bf16.gmra.mxu2 %vm666_vm3, %v4588_v4  ;;  %3639 = vmatmul.msk.bf16.gmra.mxu3 %vm666_vm3, %v4588_v4 }
  0xa5   : > { %v4606_v10 = vpop.f32.mrf.mxu0  ;;  %v4608_v47 = vpop.f32.mrf.mxu1 }
  0xa8   : > { %3752 = vmatmul.msk.bf16.vlgmr.msrb.gmra.mxu0 %vm666_vm3, %v1381_v21  ;;  %3768 = vmatmul.msk.bf16.vlgmr.msrb.gmra.mxu1 %vm666_vm3, %v1381_v21  ;;  %v1254_v21 = vrot.slane %v1252_v52, 4 }
  0xaa   : > { %v1256_v26 = vsel %vm4594_vm7, %v1254_v21, %v1255_v48  ;;  %v3739_v21 = vrot.slane %v4325_v18, 9 }
  0xab   : > { %3704 = vmatmul.msk.bf16.vlgmr.msrb.gmra.mxu2 %vm666_vm3, %v3991_v49  ;;  %3720 = vmatmul.msk.bf16.vlgmr.msrb.gmra.mxu3 %vm666_vm3, %v3991_v49  ;;  %v1354_v45 = vunpack.c.l.b16 %v1256_v26 }
  0xad   : > { %v4618_v9 = vpop.f32.mrf.mxu0  ;;  %v4620_v3 = vpop.f32.mrf.mxu1  ;;  %v4666_v62 = vpack.c.b16 %v1354_v45, %v1353_v59 }
  0xae   : > { %v4626_v51 = vpop.f32.mrf.mxu2  ;;  %v4628_v36 = vpop.f32.mrf.mxu3 }
  0xaf   : > { %6380 = vst [vmem:[#allocation22_spill] sm:$0xff] %v4626_v51  ;;  %v4057_v51 = vld [vmem:[%s4227_s7 + $0x70] sm:$0xf] }
  0xb0   : > { %6381 = vst [vmem:[#allocation23_spill] sm:$0xff] %v4628_v36 }
  0xb1   : > { %6388 = vst [vmem:[#allocation30_spill] sm:$0xff] %v4666_v62 }
  0xb5   : > { %v4632_v11 = vpop.f32.mrf.mxu0  ;;  %v4634_v7 = vpop.f32.mrf.mxu1 }
  0xb6   : > { %v4637_v33 = vpop.f32.mrf.mxu2  ;;  %v4639_v35 = vpop.f32.mrf.mxu3 }
  0xb7   : > { %6383 = vst [vmem:[#allocation25_spill] sm:$0xff] %v4637_v33 }
  0xb8   : > { %6384 = vst [vmem:[#allocation26_spill] sm:$0xff] %v4639_v35  ;;  %3753 = vmatmul.msk.bf16.gmra.mxu0 %vm666_vm3, %v4630_v15  ;;  %3769 = vmatmul.msk.bf16.gmra.mxu1 %vm666_vm3, %v4630_v15  ;;  %v1259_v15 = vrot.slane %v4329_v24, 5 }
  0xba   : > { %v1261_v48 = vrot.slane %v1259_v15, 4  ;;  %v1260_v59 = vsel %vm4594_vm7, %v3739_v21, %v1259_v15  ;;  %v4714_v21 = vld [vmem:[%s4227_s7 + $0x24] sm:$0xff] }
  0xbb   : > { %3705 = vmatmul.msk.bf16.gmra.mxu2 %vm666_vm3, %v4642_v23  ;;  %3721 = vmatmul.msk.bf16.gmra.mxu3 %vm666_vm3, %v4642_v23  ;;  %6397 = vst [vmem:[#allocation39_spill] sm:$0xff] %v4714_v21  ;;  %v1301_v23 = vrot.slane %v4057_v51, 5 }
  0xbc   : > { %v1263_v18 = vsel %vm4594_vm7, %v1261_v48, %v1262_v50  ;;  %v1269_v48 = vrot.slane %v4394_v41, 5 }
  0xbd   : > { %v4654_v34 = vpop.f32.mrf.mxu0  ;;  %v4656_v49 = vpop.f32.mrf.mxu1  ;;  %v1356_v4 = vunpack.c.l.b16 %v1263_v18 }
  0xbe   : > { %v4662_v53 = vpop.f32.mrf.mxu2  ;;  %v4664_v63 = vpop.f32.mrf.mxu3  ;;  %v6451_v22 = vld [vmem:[#allocation25_spill] sm:$0xff] }
  0xbf   : > { %6386 = vst [vmem:[#allocation28_spill] sm:$0xff] %v4662_v53 }
  0xc0   : > { %6387 = vst [vmem:[#allocation29_spill] sm:$0xff] %v4664_v63 }
  0xc5   : > { %v4668_v56 = vpop.f32.mrf.mxu0  ;;  %v4670_v14 = vpop.f32.mrf.mxu1 }
  0xc6   : > { %v4673_v46 = vpop.f32.mrf.mxu2  ;;  %v4675_v52 = vpop.f32.mrf.mxu3 }
  0xc7   : > { %6389 = vst [vmem:[#allocation31_spill] sm:$0xff] %v4673_v46 }
  0xc8   : > { %6390 = vst [vmem:[#allocation32_spill] sm:$0xff] %v4675_v52  ;;  %3754 = vmatmul.msk.bf16.gmra.mxu0 %vm666_vm3, %v4666_v62  ;;  %3770 = vmatmul.msk.bf16.gmra.mxu1 %vm666_vm3, %v4666_v62  ;;  %v1355_v62 = vunpack.c.l.b16 %v1260_v59  ;;  %v1266_v52 = vrot.slane %v4366_v6, 5 }
  0xca   : > { %v4702_v55 = vpack.c.b16 %v1356_v4, %v1355_v62  ;;  %v3740_v4 = vrot.slane %v4363_v5, 9  ;;  %v1268_v62 = vrot.slane %v1266_v52, 4 }
  0xcb   : > { %3706 = vmatmul.msk.bf16.gmra.mxu2 %vm666_vm3, %v4678_v38  ;;  %3722 = vmatmul.msk.bf16.gmra.mxu3 %vm666_vm3, %v4678_v38 }
  0xcc   : > { %6394 = vst [vmem:[#allocation36_spill] sm:$0xff] %v4702_v55  ;;  %v1267_v59 = vsel %vm4594_vm7, %v3740_v4, %v1266_v52  ;;  %v1270_v5 = vsel %vm4594_vm7, %v1268_v62, %v1269_v48  ;;  %v4750_v4 = vld [vmem:[%s4227_s7 + $0x30] sm:$0xff]  ;;  %v1276_v62 = vrot.slane %v4446_v54, 5 }
  0xcd   : > { %v4690_v24 = vpop.f32.mrf.mxu0  ;;  %v4692_v26 = vpop.f32.mrf.mxu1  ;;  %6403 = vst [vmem:[#allocation45_spill] sm:$0xff] %v4750_v4 }
  0xce   : > { %v4698_v45 = vpop.f32.mrf.mxu2  ;;  %v4700_v44 = vpop.f32.mrf.mxu3 }
  0xcf   : > { %6392 = vst [vmem:[#allocation34_spill] sm:$0xff] %v4698_v45 }
  0xd0   : > { %6393 = vst [vmem:[#allocation35_spill] sm:$0xff] %v4700_v44 }
  0xd5   : > { %v4704_v60 = vpop.f32.mrf.mxu0  ;;  %v4706_v20 = vpop.f32.mrf.mxu1 }
  0xd6   : > { %v4709_v46 = vpop.f32.mrf.mxu2  ;;  %v4711_v15 = vpop.f32.mrf.mxu3 }
  0xd7   : > { %6395 = vst [vmem:[#allocation37_spill] sm:$0xff] %v4709_v46 }
  0xd8   : > { %6396 = vst [vmem:[#allocation38_spill] sm:$0xff] %v4711_v15  ;;  %3755 = vmatmul.msk.bf16.gmra.mxu0 %vm666_vm3, %v4702_v55  ;;  %3771 = vmatmul.msk.bf16.gmra.mxu1 %vm666_vm3, %v4702_v55  ;;  %v1357_v55 = vunpack.c.l.b16 %v1267_v59  ;;  %v1358_v15 = vunpack.c.l.b16 %v1270_v5 }
  0xda   : > { %v4738_v46 = vpack.c.b16 %v1358_v15, %v1357_v55  ;;  %v3741_v55 = vrot.slane %v4418_v17, 9 }
  0xdb   : > { %3707 = vmatmul.msk.bf16.gmra.mxu2 %vm666_vm3, %v4714_v21  ;;  %3723 = vmatmul.msk.bf16.gmra.mxu3 %vm666_vm3, %v4714_v21  ;;  %v1273_v21 = vrot.slane %v4421_v19, 5 }
  0xdc   : > { %6400 = vst [vmem:[#allocation42_spill] sm:$0xff] %v4738_v46 }
  0xdd   : > { %v4726_v6 = vpop.f32.mrf.mxu0  ;;  %v4728_v50 = vpop.f32.mrf.mxu1  ;;  %v1275_v15 = vrot.slane %v1273_v21, 4  ;;  %v1274_v59 = vsel %vm4594_vm7, %v3741_v55, %v1273_v21  ;;  %v4786_v55 = vld [vmem:[%s4227_s7 + $0x3c] sm:$0xff] }
  0xde   : > { %v4734_v18 = vpop.f32.mrf.mxu2  ;;  %v4736_v41 = vpop.f32.mrf.mxu3  ;;  %6409 = vst [vmem:[#allocation51_spill] sm:$0xff] %v4786_v55 }
  0xdf   : > { %6398 = vst [vmem:[#allocation40_spill] sm:$0xff] %v4734_v18  ;;  %v1277_v17 = vsel %vm4594_vm7, %v1275_v15, %v1276_v62  ;;  %v1283_v15 = vrot.slane %v4490_v13, 5 }
  0xe0   : > { %6399 = vst [vmem:[#allocation41_spill] sm:$0xff] %v4736_v41 }
  0xe5   : > { %v4740_v44 = vpop.f32.mrf.mxu0  ;;  %v4742_v45 = vpop.f32.mrf.mxu1 }
  0xe6   : > { %v4745_v63 = vpop.f32.mrf.mxu2  ;;  %v4747_v52 = vpop.f32.mrf.mxu3 }
  0xe7   : > { %6401 = vst [vmem:[#allocation43_spill] sm:$0xff] %v4745_v63 }
  0xe8   : > { %6402 = vst [vmem:[#allocation44_spill] sm:$0xff] %v4747_v52  ;;  %3756 = vmatmul.msk.bf16.gmra.mxu0 %vm666_vm3, %v4738_v46  ;;  %3772 = vmatmul.msk.bf16.gmra.mxu1 %vm666_vm3, %v4738_v46  ;;  %v1359_v46 = vunpack.c.l.b16 %v1274_v59  ;;  %v1360_v52 = vunpack.c.l.b16 %v1277_v17 }
  0xea   : > { %v4774_v63 = vpack.c.b16 %v1360_v52, %v1359_v46  ;;  %v3742_v46 = vrot.slane %v4459_v29, 9 }
  0xeb   : > { %3708 = vmatmul.msk.bf16.gmra.mxu2 %vm666_vm3, %v4750_v4  ;;  %3724 = vmatmul.msk.bf16.gmra.mxu3 %vm666_vm3, %v4750_v4  ;;  %v1280_v4 = vrot.slane %v4462_v30, 5 }
  0xec   : > { %6406 = vst [vmem:[#allocation48_spill] sm:$0xff] %v4774_v63 }
  0xed   : > { %v4762_v19 = vpop.f32.mrf.mxu0  ;;  %v4764_v48 = vpop.f32.mrf.mxu1  ;;  %v1282_v52 = vrot.slane %v1280_v4, 4  ;;  %v1281_v59 = vsel %vm4594_vm7, %v3742_v46, %v1280_v4  ;;  %v4822_v46 = vld [vmem:[%s4227_s7 + $0x48] sm:$0xff] }
  0xee   : > { %v4770_v5 = vpop.f32.mrf.mxu2  ;;  %v4772_v54 = vpop.f32.mrf.mxu3  ;;  %6415 = vst [vmem:[#allocation57_spill] sm:$0xff] %v4822_v46 }
  0xef   : > { %6404 = vst [vmem:[#allocation46_spill] sm:$0xff] %v4770_v5  ;;  %v1284_v29 = vsel %vm4594_vm7, %v1282_v52, %v1283_v15  ;;  %v1290_v52 = vrot.slane %v4542_v1, 5 }
  0xf0   : > { %6405 = vst [vmem:[#allocation47_spill] sm:$0xff] %v4772_v54 }
  0xf5   : > { %v4776_v41 = vpop.f32.mrf.mxu0  ;;  %v4778_v18 = vpop.f32.mrf.mxu1 }
  0xf6   : > { %v4781_v53 = vpop.f32.mrf.mxu2  ;;  %v4783_v21 = vpop.f32.mrf.mxu3 }
  0xf7   : > { %6407 = vst [vmem:[#allocation49_spill] sm:$0xff] %v4781_v53 }
  0xf8   : > { %6408 = vst [vmem:[#allocation50_spill] sm:$0xff] %v4783_v21  ;;  %3757 = vmatmul.msk.bf16.gmra.mxu0 %vm666_vm3, %v4774_v63  ;;  %3773 = vmatmul.msk.bf16.gmra.mxu1 %vm666_vm3, %v4774_v63  ;;  %v1361_v63 = vunpack.c.l.b16 %v1281_v59  ;;  %v1362_v21 = vunpack.c.l.b16 %v1284_v29 }
  0xfa   : > { %v4810_v53 = vpack.c.b16 %v1362_v21, %v1361_v63  ;;  %v3743_v63 = vrot.slane %v4514_v16, 9 }
  0xfb   : > { %3709 = vmatmul.msk.bf16.gmra.mxu2 %vm666_vm3, %v4786_v55  ;;  %3725 = vmatmul.msk.bf16.gmra.mxu3 %vm666_vm3, %v4786_v55  ;;  %v1287_v55 = vrot.slane %v4517_v32, 5 }
  0xfc   : > { %6412 = vst [vmem:[#allocation54_spill] sm:$0xff] %v4810_v53 }
  0xfd   : > { %v4798_v30 = vpop.f32.mrf.mxu0  ;;  %v4800_v62 = vpop.f32.mrf.mxu1  ;;  %v1289_v21 = vrot.slane %v1287_v55, 4  ;;  %v1288_v59 = vsel %vm4594_vm7, %v3743_v63, %v1287_v55 }
  0xfe   : > { %v4806_v17 = vpop.f32.mrf.mxu2  ;;  %v4808_v13 = vpop.f32.mrf.mxu3 }
  0xff   : > { %6410 = vst [vmem:[#allocation52_spill] sm:$0xff] %v4806_v17  ;;  %v1291_v16 = vsel %vm4594_vm7, %v1289_v21, %v1290_v52  ;;  %v4858_v21 = vld [vmem:[%s4227_s7 + $0x54] sm:$0xff] }
 0x100   : > { %6411 = vst [vmem:[#allocation53_spill] sm:$0xff] %v4808_v13 }
 0x101   : > { %6425 = vst [vmem:[#allocation67_spill] sm:$0xff] %v4858_v21 }
 0x105   : > { %v4812_v54 = vpop.f32.mrf.mxu0  ;;  %v4814_v5 = vpop.f32.mrf.mxu1 }
 0x106   : > { %v4817_v38 = vpop.f32.mrf.mxu2  ;;  %v4819_v4 = vpop.f32.mrf.mxu3 }
 0x107   : > { %6413 = vst [vmem:[#allocation55_spill] sm:$0xff] %v4817_v38 }
 0x108   : > { %6414 = vst [vmem:[#allocation56_spill] sm:$0xff] %v4819_v4  ;;  %3758 = vmatmul.msk.bf16.gmra.mxu0 %vm666_vm3, %v4810_v53  ;;  %3774 = vmatmul.msk.bf16.gmra.mxu1 %vm666_vm3, %v4810_v53  ;;  %v1363_v53 = vunpack.c.l.b16 %v1288_v59  ;;  %v1364_v4 = vunpack.c.l.b16 %v1291_v16  ;;  %v4056_v59 = vld [vmem:[%s4227_s7 + $0x68] sm:$0x1] }
 0x109   : > { %v1297_v16 = vrot.slane %v4056_v59, 5 }
 0x10a   : > { %v4846_v38 = vpack.c.b16 %v1364_v4, %v1363_v53  ;;  %v4055_v53 = vld [vmem:[%s4227_s7 + $0x60] sm:$0xf] }
 0x10b   : > { %3710 = vmatmul.msk.bf16.gmra.mxu2 %vm666_vm3, %v4822_v46  ;;  %3726 = vmatmul.msk.bf16.gmra.mxu3 %vm666_vm3, %v4822_v46  ;;  %v4054_v46 = vld [vmem:[%s4227_s7 + $0x64] sm:$0xf]  ;;  %v3744_v4 = vrot.slane %v4055_v53, 9 }
 0x10c   : > { %6420 = vst [vmem:[#allocation62_spill] sm:$0xff] %v4846_v38  ;;  %v1294_v35 = vrot.slane %v4054_v46, 5 }
 0x10d   : > { %v4834_v32 = vpop.f32.mrf.mxu0  ;;  %v4836_v15 = vpop.f32.mrf.mxu1 }
 0x10e   : > { %6416 = vst [vmem:[#allocation58_spill] sm:$0xff] %v4834_v32  ;;  %v4842_v29 = vpop.f32.mrf.mxu2  ;;  %v4844_v1 = vpop.f32.mrf.mxu3  ;;  %v1296_v52 = vrot.slane %v1294_v35, 4 }
 0x10f   : > { %6417 = vst [vmem:[#allocation59_spill] sm:$0xff] %v4836_v15 }
 0x110   : > { %6418 = vst [vmem:[#allocation60_spill] sm:$0xff] %v4842_v29  ;;  %v1298_v53 = vsel %vm4594_vm7, %v1296_v52, %v1297_v16 }
 0x111   : > { %6419 = vst [vmem:[#allocation61_spill] sm:$0xff] %v4844_v1  ;;  %v1366_v29 = vunpack.c.l.b16 %v1298_v53 }
 0x115   : > { %v4848_v13 = vpop.f32.mrf.mxu0  ;;  %v4850_v17 = vpop.f32.mrf.mxu1 }
 0x116   : > { %6421 = vst [vmem:[#allocation63_spill] sm:$0xff] %v4848_v13  ;;  %v4853_v55 = vpop.f32.mrf.mxu2  ;;  %v4855_v63 = vpop.f32.mrf.mxu3  ;;  %v4060_v13 = vld [vmem:[%s4227_s7 + $0x7c] sm:$0xf] }
 0x117   : > { %6422 = vst [vmem:[#allocation64_spill] sm:$0xff] %v4850_v17 }
 0x118   : > { %6423 = vst [vmem:[#allocation65_spill] sm:$0xff] %v4853_v55  ;;  %3759 = vmatmul.msk.bf16.gmra.mxu0 %vm666_vm3, %v4846_v38  ;;  %3775 = vmatmul.msk.bf16.gmra.mxu1 %vm666_vm3, %v4846_v38  ;;  %v1295_v38 = vsel %vm4594_vm7, %v3744_v4, %v1294_v35  ;;  %v4890_v4 = vld [vmem:[%s4227_s7 + $0x60] sm:$0xff] }
 0x119   : > { %6424 = vst [vmem:[#allocation66_spill] sm:$0xff] %v4855_v63  ;;  %v1365_v1 = vunpack.c.l.b16 %v1295_v38  ;;  %v4058_v38 = vld [vmem:[%s4227_s7 + $0x6c] sm:$0xf] }
 0x11a   : > { %6433 = vst [vmem:[#allocation75_spill] sm:$0xff] %v4890_v4  ;;  %v3745_v52 = vrot.slane %v4058_v38, 9 }
 0x11b   : > { %3711 = vmatmul.msk.bf16.gmra.mxu2 %vm666_vm3, %v4858_v21  ;;  %3727 = vmatmul.msk.bf16.gmra.mxu3 %vm666_vm3, %v4858_v21  ;;  %v4882_v21 = vpack.c.b16 %v1366_v29, %v1365_v1  ;;  %v1303_v29 = vrot.slane %v1301_v23, 4  ;;  %v4059_v1 = vld [vmem:[%s4227_s7 + $0x74] sm:$0x1] }
 0x11c   : > { %v1304_v16 = vrot.slane %v4059_v1, 5 }
 0x11d   : > { %v4870_v46 = vpop.f32.mrf.mxu0  ;;  %v4872_v63 = vpop.f32.mrf.mxu1  ;;  %6430 = vst [vmem:[#allocation72_spill] sm:$0xff] %v4882_v21 }
 0x11e   : > { %6426 = vst [vmem:[#allocation68_spill] sm:$0xff] %v4870_v46  ;;  %v4878_v55 = vpop.f32.mrf.mxu2  ;;  %v4880_v59 = vpop.f32.mrf.mxu3 }
 0x11f   : > { %6427 = vst [vmem:[#allocation69_spill] sm:$0xff] %v4872_v63 }
 0x120   : > { %6428 = vst [vmem:[#allocation70_spill] sm:$0xff] %v4878_v55 }
 0x121   : > { %6429 = vst [vmem:[#allocation71_spill] sm:$0xff] %v4880_v59 }
 0x125   : > { %v1465_v33 = vpop.f32.mrf.mxu0  ;;  %v1554_v36 = vpop.f32.mrf.mxu1 }
 0x126   : > { %v4885_v2 = vpop.f32.mrf.mxu2  ;;  %v4887_v35 = vpop.f32.mrf.mxu3 }
 0x127   : > { %6431 = vst [vmem:[#allocation73_spill] sm:$0xff] %v4885_v2 }
 0x128   : > { %6432 = vst [vmem:[#allocation74_spill] sm:$0xff] %v4887_v35  ;;  %3760 = vmatmul.msk.bf16.gmra.mxu0 %vm666_vm3, %v4882_v21  ;;  %3776 = vmatmul.msk.bf16.gmra.mxu1 %vm666_vm3, %v4882_v21  ;;  %v1302_v35 = vsel %vm4594_vm7, %v3745_v52, %v1301_v23  ;;  %v1305_v21 = vsel %vm4594_vm7, %v1303_v29, %v1304_v16  ;;  %v1308_v29 = vrot.slane %v4060_v13, 5 }
 0x129   : > { %v1367_v55 = vunpack.c.l.b16 %v1302_v35  ;;  %v1368_v63 = vunpack.c.l.b16 %v1305_v21 }
 0x12b   : > { %3712 = vmatmul.msk.bf16.gmra.mxu2 %vm666_vm3, %v4890_v4  ;;  %3728 = vmatmul.msk.bf16.gmra.mxu3 %vm666_vm3, %v4890_v4  ;;  %v4912_v17 = vpack.c.b16 %v1368_v63, %v1367_v55  ;;  %v1311_v55 = vrot.slane %v4316_v12, 5 }
 0x12d   : > { %v1467_v51 = vpop.f32.mrf.mxu0  ;;  %v1556_v53 = vpop.f32.mrf.mxu1  ;;  %6434 = vst [vmem:[#allocation76_spill] sm:$0xff] %v4912_v17 }
 0x12e   : > { %v1048_v2 = vpop.f32.mrf.mxu2  ;;  %v1137_v38 = vpop.f32.mrf.mxu3 }
 0x12f   : > { %v1049_v1 = vadd.f32 %v1048_v2, %v4606_v10  ;;  %v1138_v59 = vadd.f32 %v1137_v38, %v4608_v47  ;;  %v4918_v10 = vld [vmem:[%s4227_s7 + $0x6c] sm:$0xff]  ;;  %v4061_v47 = vld [vmem:[%s4227_s7 + $0x78] sm:$0xf] }
 0x131   : > { %v4908_v4 = vadd.f32 %v1465_v33, %v1049_v1  ;;  %v4910_v46 = vadd.f32 %v1554_v36, %v1138_v59  ;;  %v3746_v36 = vrot.slane %v4061_v47, 9  ;;  %v1310_v33 = vrot.slane %v1308_v29, 4 }
 0x132   : > { %v1315_v47 = vrot.slane %v4345_v39, 5 }
 0x133   : > { %v1312_v21 = vsel %vm4594_vm7, %v1310_v33, %v1311_v55 }
 0x135   : > { %v1470_v23 = vpop.f32.mrf.mxu0  ;;  %v1559_v52 = vpop.f32.mrf.mxu1 }
 0x136   : > { %v1050_v16 = vpop.f32.mrf.mxu2  ;;  %v1139_v15 = vpop.f32.mrf.mxu3 }
 0x137   : > { %v1051_v32 = vadd.f32 %v1050_v16, %v4618_v9  ;;  %v1140_v2 = vadd.f32 %v1139_v15, %v4620_v3  ;;  %v1309_v15 = vsel %vm4594_vm7, %v3746_v36, %v1308_v29 }
 0x138   : > { %3761 = vmatmul.msk.bf16.gmra.mxu0 %vm666_vm3, %v4912_v17  ;;  %3777 = vmatmul.msk.bf16.gmra.mxu1 %vm666_vm3, %v4912_v17  ;;  %v6461_v17 = vld [vmem:[#allocation11_spill] sm:$0xff] }
 0x139   : > { %v4926_v13 = vadd.f32 %v1467_v51, %v1051_v32  ;;  %v4928_v63 = vadd.f32 %v1556_v53, %v1140_v2  ;;  %v1369_v51 = vunpack.c.l.b16 %v1309_v15  ;;  %v1370_v53 = vunpack.c.l.b16 %v1312_v21 }
 0x13a   : > { %v1317_v15 = vrot.slane %v1315_v47, 4  ;;  %v1318_v21 = vrot.slane %v4360_v0, 5 }
 0x13b   : > { %3713 = vmatmul.msk.bf16.gmra.mxu2 %vm666_vm3, %v4918_v10  ;;  %3729 = vmatmul.msk.bf16.gmra.mxu3 %vm666_vm3, %v4918_v10  ;;  %v4944_v16 = vpack.c.b16 %v1370_v53, %v1369_v51 }
 0x13d   : > { %v1472_v9 = vpop.f32.mrf.mxu0  ;;  %v1561_v3 = vpop.f32.mrf.mxu1  ;;  %6435 = vst [vmem:[#allocation77_spill] sm:$0xff] %v4944_v16 }
 0x13e   : > { %v1053_v59 = vpop.f32.mrf.mxu2  ;;  %v1142_v12 = vpop.f32.mrf.mxu3 }
 0x13f   : > { %v1054_v32 = vadd.f32 %v1053_v59, %v4632_v11  ;;  %v1143_v35 = vadd.f32 %v1142_v12, %v4634_v7  ;;  %v4950_v7 = vld [vmem:[%s4227_s7 + $0x78] sm:$0xff] }
 0x141   : > { %v4940_v38 = vadd.f32 %v1470_v23, %v1054_v32  ;;  %v4942_v1 = vadd.f32 %v1559_v52, %v1143_v35  ;;  %v4062_v23 = vld [vmem:[%s4227_s7 + $0x84] sm:$0xf]  ;;  %v1319_v32 = vsel %vm4594_vm7, %v1317_v15, %v1318_v21 }
 0x142   : > { %v3747_v52 = vrot.slane %v4062_v23, 9  ;;  %v1372_v53 = vunpack.c.l.b16 %v1319_v32  ;;  %v1322_v23 = vrot.slane %v4387_v28, 5 }
 0x144   : > { %v1316_v12 = vsel %vm4594_vm7, %v3747_v52, %v1315_v47 }
 0x145   : > { %v1475_v29 = vpop.f32.mrf.mxu0  ;;  %v1564_v2 = vpop.f32.mrf.mxu1  ;;  %v1371_v51 = vunpack.c.l.b16 %v1316_v12 }
 0x146   : > { %v1055_v36 = vpop.f32.mrf.mxu2  ;;  %v1144_v33 = vpop.f32.mrf.mxu3 }
 0x147   : > { %v1056_v55 = vadd.f32 %v1055_v36, %v4654_v34  ;;  %v1145_v11 = vadd.f32 %v1144_v33, %v4656_v49 }
 0x148   : > { %3762 = vmatmul.msk.bf16.gmra.mxu0 %vm666_vm3, %v4944_v16  ;;  %3778 = vmatmul.msk.bf16.gmra.mxu1 %vm666_vm3, %v4944_v16  ;;  %v6460_v16 = vld [vmem:[#allocation32_spill] sm:$0xff] }
 0x149   : > { %v4958_v39 = vadd.f32 %v1472_v9, %v1056_v55  ;;  %v4960_v59 = vadd.f32 %v1561_v3, %v1145_v11  ;;  %v4976_v55 = vpack.c.b16 %v1372_v53, %v1371_v51 }
 0x14b   : > { %3714 = vmatmul.msk.bf16.gmra.mxu2 %vm666_vm3, %v4950_v7  ;;  %3730 = vmatmul.msk.bf16.gmra.mxu3 %vm666_vm3, %v4950_v7  ;;  %6436 = vst [vmem:[#allocation78_spill] sm:$0xff] %v4976_v55 }
 0x14d   : > { %v1477_v34 = vpop.f32.mrf.mxu0  ;;  %v1566_v49 = vpop.f32.mrf.mxu1 }
 0x14e   : > { %v1058_v35 = vpop.f32.mrf.mxu2  ;;  %v1147_v0 = vpop.f32.mrf.mxu3 }
 0x14f   : > { %v1059_v9 = vadd.f32 %v1058_v35, %v4668_v56  ;;  %v1148_v3 = vadd.f32 %v1147_v0, %v4670_v14  ;;  %v4982_v35 = vld [vmem:[%s4227_s7 + $0x84] sm:$0xff]  ;;  %v3748_v14 = vrot.slane %v4384_v27, 9 }
 0x151   : > { %v4972_v36 = vadd.f32 %v1475_v29, %v1059_v9  ;;  %v4974_v33 = vadd.f32 %v1564_v2, %v1148_v3  ;;  %v1324_v29 = vrot.slane %v1322_v23, 4  ;;  %v1325_v2 = vrot.slane %v4408_v8, 5 }
 0x152   : > { %v1323_v32 = vsel %vm4594_vm7, %v3748_v14, %v1322_v23 }
 0x153   : > { %v1326_v27 = vsel %vm4594_vm7, %v1324_v29, %v1325_v2  ;;  %v1373_v9 = vunpack.c.l.b16 %v1323_v32  ;;  %v5014_v2 = vld [vmem:[%s4227_s7 + $0x90] sm:$0xff] }
 0x154   : > { %v1374_v3 = vunpack.c.l.b16 %v1326_v27 }
 0x155   : > { %v1480_v11 = vpop.f32.mrf.mxu0  ;;  %v1569_v47 = vpop.f32.mrf.mxu1 }
 0x156   : > { %v1060_v52 = vpop.f32.mrf.mxu2  ;;  %v1149_v15 = vpop.f32.mrf.mxu3 }
 0x157   : > { %v1061_v21 = vadd.f32 %v1060_v52, %v4690_v24  ;;  %v1150_v56 = vadd.f32 %v1149_v15, %v4692_v26  ;;  %v5008_v52 = vpack.c.b16 %v1374_v3, %v1373_v9 }
 0x158   : > { %3763 = vmatmul.msk.bf16.gmra.mxu0 %vm666_vm3, %v4976_v55  ;;  %3779 = vmatmul.msk.bf16.gmra.mxu1 %vm666_vm3, %v4976_v55 }
 0x159   : > { %v4990_v28 = vadd.f32 %v1477_v34, %v1061_v21  ;;  %v4992_v12 = vadd.f32 %v1566_v49, %v1150_v56  ;;  %6437 = vst [vmem:[#allocation79_spill] sm:$0xff] %v5008_v52  ;;  %v1329_v21 = vrot.slane %v4439_v42, 5 }
 0x15b   : > { %3715 = vmatmul.msk.bf16.gmra.mxu2 %vm666_vm3, %v4982_v35  ;;  %3731 = vmatmul.msk.bf16.gmra.mxu3 %vm666_vm3, %v4982_v35 }
 0x15d   : > { %v1482_v24 = vpop.f32.mrf.mxu0  ;;  %v1571_v26 = vpop.f32.mrf.mxu1 }
 0x15e   : > { %v1063_v0 = vpop.f32.mrf.mxu2  ;;  %v1152_v8 = vpop.f32.mrf.mxu3 }
 0x15f   : > { %v1064_v34 = vadd.f32 %v1063_v0, %v4704_v60  ;;  %v1153_v49 = vadd.f32 %v1152_v8, %v4706_v20  ;;  %v3749_v20 = vrot.slane %v4436_v40, 9 }
 0x161   : > { %v5004_v51 = vadd.f32 %v1480_v11, %v1064_v34  ;;  %v5006_v53 = vadd.f32 %v1569_v47, %v1153_v49  ;;  %v1331_v11 = vrot.slane %v1329_v21, 4  ;;  %v1332_v47 = vrot.slane %v4456_v25, 5 }
 0x162   : > { %v1330_v27 = vsel %vm4594_vm7, %v3749_v20, %v1329_v21 }
 0x163   : > { %v1333_v40 = vsel %vm4594_vm7, %v1331_v11, %v1332_v47  ;;  %v1375_v8 = vunpack.c.l.b16 %v1330_v27  ;;  %v5046_v11 = vld [vmem:[%s4227_s7 + $0x9c] sm:$0xff] }
 0x164   : > { %v1376_v34 = vunpack.c.l.b16 %v1333_v40 }
 0x165   : > { %v1485_v15 = vpop.f32.mrf.mxu0  ;;  %v1574_v23 = vpop.f32.mrf.mxu1 }
 0x166   : > { %v1065_v56 = vpop.f32.mrf.mxu2  ;;  %v1154_v14 = vpop.f32.mrf.mxu3  ;;  %v5040_v3 = vpack.c.b16 %v1376_v34, %v1375_v8 }
 0x167   : > { %v1066_v29 = vadd.f32 %v1065_v56, %v4726_v6  ;;  %v1155_v60 = vadd.f32 %v1154_v14, %v4728_v50  ;;  %v1336_v14 = vrot.slane %v4485_v58, 5 }
 0x168   : > { %3764 = vmatmul.msk.bf16.gmra.mxu0 %vm666_vm3, %v5008_v52  ;;  %3780 = vmatmul.msk.bf16.gmra.mxu1 %vm666_vm3, %v5008_v52  ;;  %6438 = vst [vmem:[#allocation80_spill] sm:$0xff] %v5040_v3  ;;  %v6459_v52 = vld [vmem:[#allocation31_spill] sm:$0xff] }
 0x169   : > { %v5022_v42 = vadd.f32 %v1482_v24, %v1066_v29  ;;  %v5024_v32 = vadd.f32 %v1571_v26, %v1155_v60 }
 0x16b   : > { %3716 = vmatmul.msk.bf16.gmra.mxu2 %vm666_vm3, %v5014_v2  ;;  %3732 = vmatmul.msk.bf16.gmra.mxu3 %vm666_vm3, %v5014_v2 }
 0x16d   : > { %v1487_v6 = vpop.f32.mrf.mxu0  ;;  %v1576_v50 = vpop.f32.mrf.mxu1 }
 0x16e   : > { %v1068_v0 = vpop.f32.mrf.mxu2  ;;  %v1157_v25 = vpop.f32.mrf.mxu3 }
 0x16f   : > { %v1069_v24 = vadd.f32 %v1068_v0, %v4740_v44  ;;  %v1158_v26 = vadd.f32 %v1157_v25, %v4742_v45  ;;  %v3750_v45 = vrot.slane %v4482_v57, 9 }
 0x171   : > { %v5036_v49 = vadd.f32 %v1485_v15, %v1069_v24  ;;  %v5038_v9 = vadd.f32 %v1574_v23, %v1158_v26  ;;  %v1338_v15 = vrot.slane %v1336_v14, 4  ;;  %v1339_v23 = vrot.slane %v4504_v31, 5 }
 0x172   : > { %v1337_v27 = vsel %vm4594_vm7, %v3750_v45, %v1336_v14  ;;  %v5078_v45 = vld [vmem:[%s4227_s7 + $0xa8] sm:$0xff] }
 0x173   : > { %v1340_v57 = vsel %vm4594_vm7, %v1338_v15, %v1339_v23  ;;  %v1377_v0 = vunpack.c.l.b16 %v1337_v27 }
 0x174   : > { %v1378_v25 = vunpack.c.l.b16 %v1340_v57 }
 0x175   : > { %v1490_v56 = vpop.f32.mrf.mxu0  ;;  %v1579_v21 = vpop.f32.mrf.mxu1 }
 0x176   : > { %v1070_v29 = vpop.f32.mrf.mxu2  ;;  %v1159_v60 = vpop.f32.mrf.mxu3  ;;  %v5072_v8 = vpack.c.b16 %v1378_v25, %v1377_v0 }
 0x177   : > { %v1071_v20 = vadd.f32 %v1070_v29, %v4762_v19  ;;  %v1160_v44 = vadd.f32 %v1159_v60, %v4764_v48  ;;  %v1343_v29 = vrot.slane %v4535_v61, 5 }
 0x178   : > { %3765 = vmatmul.msk.bf16.gmra.mxu0 %vm666_vm3, %v5040_v3  ;;  %3781 = vmatmul.msk.bf16.gmra.mxu1 %vm666_vm3, %v5040_v3  ;;  %6439 = vst [vmem:[#allocation81_spill] sm:$0xff] %v5072_v8  ;;  %v6453_v3 = vld [vmem:[#allocation9_spill] sm:$0xff] }
 0x179   : > { %v5054_v58 = vadd.f32 %v1487_v6, %v1071_v20  ;;  %v5056_v47 = vadd.f32 %v1576_v50, %v1160_v44 }
 0x17b   : > { %3717 = vmatmul.msk.bf16.gmra.mxu2 %vm666_vm3, %v5046_v11  ;;  %3733 = vmatmul.msk.bf16.gmra.mxu3 %vm666_vm3, %v5046_v11 }
 0x17d   : > { %v1492_v19 = vpop.f32.mrf.mxu0  ;;  %v1581_v48 = vpop.f32.mrf.mxu1 }
 0x17e   : > { %v1073_v40 = vpop.f32.mrf.mxu2  ;;  %v1162_v31 = vpop.f32.mrf.mxu3 }
 0x17f   : > { %v1074_v6 = vadd.f32 %v1073_v40, %v4776_v41  ;;  %v1163_v50 = vadd.f32 %v1162_v31, %v4778_v18  ;;  %v3751_v18 = vrot.slane %v4532_v43, 9 }
 0x181   : > { %v5068_v24 = vadd.f32 %v1490_v56, %v1074_v6  ;;  %v5070_v26 = vadd.f32 %v1579_v21, %v1163_v50  ;;  %v1345_v56 = vrot.slane %v1343_v29, 4  ;;  %v1346_v21 = vrot.slane %v4552_v37, 5 }
 0x182   : > { %v1344_v43 = vsel %vm4594_vm7, %v3751_v18, %v1343_v29 }
 0x183   : > { %v1347_v37 = vsel %vm4594_vm7, %v1345_v56, %v1346_v21  ;;  %v1379_v0 = vunpack.c.l.b16 %v1344_v43 }
 0x184   : > { %v1380_v25 = vunpack.c.l.b16 %v1347_v37 }
 0x185   : > { %v1495_v34 = vpop.f32.mrf.mxu0  ;;  %v1584_v14 = vpop.f32.mrf.mxu1 }
 0x186   : > { %v1075_v60 = vpop.f32.mrf.mxu2  ;;  %v1164_v20 = vpop.f32.mrf.mxu3  ;;  %v5112_v21 = vpack.c.b16 %v1380_v25, %v1379_v0 }
 0x187   : > { %v1076_v44 = vadd.f32 %v1075_v60, %v4798_v30  ;;  %v1165_v41 = vadd.f32 %v1164_v20, %v4800_v62  ;;  %v2252_v30 = vld [vmem:[%s6250_s1 + $0x28] sm:$0xff]  ;;  %v2512_v60 = vld [vmem:[%s6250_s1 + $0x30] sm:$0xff] }
 0x188   : > { %3766 = vmatmul.msk.bf16.gmra.mxu0 %vm666_vm3, %v5072_v8  ;;  %3782 = vmatmul.msk.bf16.gmra.mxu1 %vm666_vm3, %v5072_v8  ;;  %6440 = vst [vmem:[#allocation82_spill] sm:$0xff] %v5112_v21  ;;  %v6452_v8 = vld [vmem:[#allocation26_spill] sm:$0xff] }
 0x189   : > { %v5086_v61 = vadd.f32 %v1492_v19, %v1076_v44  ;;  %v5088_v15 = vadd.f32 %v1581_v48, %v1165_v41  ;;  %v2257_v19 = vunpack.c.l.b16 %v2252_v30  ;;  %v2258_v48 = vunpack.c.h.b16 %v2252_v30 }
 0x18a   : > { %v2519_v44 = vunpack.c.l.b16 %v2512_v60  ;;  %v2520_v41 = vunpack.c.h.b16 %v2512_v60 }
 0x18b   : > { %3718 = vmatmul.msk.bf16.gmra.mxu2 %vm666_vm3, %v5078_v45  ;;  %3734 = vmatmul.msk.bf16.gmra.mxu3 %vm666_vm3, %v5078_v45  ;;  %v2259_v40 = vpack.c.b16 %v2257_v19, %v2257_v19  ;;  %v2260_v31 = vpack.c.b16 %v2258_v48, %v2258_v48 }
 0x18c   : > { %v2522_v56 = vpack.c.b16 %v2520_v41, %v2520_v41  ;;  %v6444_v41 = vld [vmem:[#allocation64_spill] sm:$0xff] }
 0x18d   : > { %v1497_v62 = vpop.f32.mrf.mxu0  ;;  %v1586_v23 = vpop.f32.mrf.mxu1  ;;  %v2265_v29 = vsel %vm715_vm0, %v2259_v40, 0  ;;  %v2268_v20 = vsel %vm715_vm0, %v2260_v31, 0 }
 0x18e   : > { %v1078_v27 = vpop.f32.mrf.mxu2  ;;  %v1167_v57 = vpop.f32.mrf.mxu3  ;;  %2277 = vmatpush.bf16.msrb.mxu2 %v2265_v29  ;;  %2366 = vmatpush.bf16.msrb.mxu3 %v2268_v20  ;;  %v2530_v19 = vsel %vm715_vm0, %v2522_v56, 0  ;;  %v6443_v20 = vld [vmem:[#allocation63_spill] sm:$0xff] }
 0x18f   : > { %v1079_v6 = vadd.f32 %v1078_v27, %v4812_v54  ;;  %v1168_v50 = vadd.f32 %v1167_v57, %v4814_v5  ;;  %v2521_v5 = vpack.c.b16 %v2519_v44, %v2519_v44  ;;  %2628 = vmatpush.bf16.msrb.mxu1 %v2530_v19  ;;  %v6441_v57 = vld [vmem:[#allocation58_spill] sm:$0xff] }
 0x191   : > { %v5108_v18 = vadd.f32 %v1495_v34, %v1079_v6  ;;  %v5110_v54 = vadd.f32 %v1584_v14, %v1168_v50  ;;  %v2527_v37 = vsel %vm715_vm0, %v2521_v5, 0  ;;  %v6442_v34 = vld [vmem:[#allocation59_spill] sm:$0xff] }
 0x192   : > { %2539 = vmatpush.bf16.msrb.mxu0 %v2527_v37  ;;  %v5119_v14 = vld [vmem:[%s4227_s7 + $0xb4] sm:$0xff] }
 0x195   : > { %v1500_v30 = vpop.f32.mrf.mxu0  ;;  %v1589_v43 = vpop.f32.mrf.mxu1 }
 0x196   : > { %v1080_v48 = vpop.f32.mrf.mxu2  ;;  %v1169_v27 = vpop.f32.mrf.mxu3 }
 0x197   : > { %v1081_v40 = vadd.f32 %v1080_v48, %v6441_v57  ;;  %v1170_v31 = vadd.f32 %v1169_v27, %v6442_v34  ;;  %v6445_v27 = vld [vmem:[#allocation68_spill] sm:$0xff] }
 0x198   : > { %3767 = vmatmul.msk.bf16.gmra.mxu0 %vm666_vm3, %v5112_v21  ;;  %3783 = vmatmul.msk.bf16.gmra.mxu1 %vm666_vm3, %v5112_v21 }
 0x199   : > { %v5125_v6 = vadd.f32 %v1497_v62, %v1081_v40  ;;  %v5127_v50 = vadd.f32 %v1586_v23, %v1170_v31  ;;  %v6446_v40 = vld [vmem:[#allocation69_spill] sm:$0xff]  ;;  %v6447_v31 = vld [vmem:[#allocation7_spill] sm:$0xff] }
 0x19b   : > { %3719 = vmatmul.msk.bf16.gmra.mxu2 %vm666_vm3, %v5119_v14  ;;  %3735 = vmatmul.msk.bf16.gmra.mxu3 %vm666_vm3, %v5119_v14 }
 0x19d   : > { %v1502_v0 = vpop.f32.mrf.mxu0  ;;  %v1591_v25 = vpop.f32.mrf.mxu1 }
 0x19e   : > { %v1083_v60 = vpop.f32.mrf.mxu2  ;;  %v1172_v29 = vpop.f32.mrf.mxu3 }
 0x19f   : > { %v1084_v44 = vadd.f32 %v1083_v60, %v6443_v20  ;;  %v1173_v5 = vadd.f32 %v1172_v29, %v6444_v41 }
 0x1a1   : > { %v5135_v56 = vadd.f32 %v1500_v30, %v1084_v44  ;;  %v5137_v62 = vadd.f32 %v1589_v43, %v1173_v5  ;;  %v6448_v43 = vld [vmem:[#allocation27_spill] sm:$0xff]  ;;  %v6449_v5 = vld [vmem:[#allocation22_spill] sm:$0xff] }
 0x1a5   : > { %v1505_v23 = vpop.f32.mrf.mxu0  ;;  %v1594_v37 = vpop.f32.mrf.mxu1 }
 0x1a6   : > { %v1085_v19 = vpop.f32.mrf.mxu2  ;;  %v1174_v48 = vpop.f32.mrf.mxu3 }
 0x1a7   : > { %v1086_v57 = vadd.f32 %v1085_v19, %v6445_v27  ;;  %v1175_v34 = vadd.f32 %v1174_v48, %v6446_v40  ;;  %v6450_v48 = vld [vmem:[#allocation23_spill] sm:$0xff] }
 0x1a8   : > { %3820 = vmatmul.msk.bf16.vlgmr.msra.gmra.mxu0 %vm666_vm3, %v6447_v31  ;;  %3836 = vmatmul.msk.bf16.vlgmr.msra.gmra.mxu1 %vm666_vm3, %v6447_v31 }
 0x1a9   : > { %v5145_v60 = vadd.f32 %v1502_v0, %v1086_v57  ;;  %v5147_v30 = vadd.f32 %v1591_v25, %v1175_v34 }
 0x1ab   : > { %3788 = vmatmul.msk.bf16.vlgmr.msra.gmra.mxu2 %vm666_vm3, %v6448_v43  ;;  %3804 = vmatmul.msk.bf16.vlgmr.msra.gmra.mxu3 %vm666_vm3, %v6448_v43 }
 0x1ad   : > { %v1507_v29 = vpop.f32.mrf.mxu0  ;;  %v1596_v20 = vpop.f32.mrf.mxu1 }
 0x1ae   : > { %v1088_v44 = vpop.f32.mrf.mxu2  ;;  %v1177_v41 = vpop.f32.mrf.mxu3 }
 0x1af   : > { %v1089_v19 = vadd.f32 %v1088_v44, %v6449_v5  ;;  %v1178_v27 = vadd.f32 %v1177_v41, %v6450_v48 }
 0x1b1   : > { %v5155_v40 = vadd.f32 %v1505_v23, %v1089_v19  ;;  %v5157_v0 = vadd.f32 %v1594_v37, %v1178_v27  ;;  %v6454_v37 = vld [vmem:[#allocation33_spill] sm:$0xff]  ;;  %v6455_v19 = vld [vmem:[#allocation28_spill] sm:$0xff] }
 0x1b2   : > { %v6456_v27 = vld [vmem:[#allocation29_spill] sm:$0xff] }
 0x1b5   : > { %v1510_v25 = vpop.f32.mrf.mxu0  ;;  %v1599_v57 = vpop.f32.mrf.mxu1 }
 0x1b6   : > { %v1090_v34 = vpop.f32.mrf.mxu2  ;;  %v1179_v31 = vpop.f32.mrf.mxu3 }
 0x1b7   : > { %v1091_v21 = vadd.f32 %v1090_v34, %v6451_v22  ;;  %v1180_v43 = vadd.f32 %v1179_v31, %v6452_v8 }
 0x1b8   : > { %3821 = vmatmul.msk.bf16.gmra.mxu0 %vm666_vm3, %v6453_v3  ;;  %3837 = vmatmul.msk.bf16.gmra.mxu1 %vm666_vm3, %v6453_v3 }
 0x1b9   : > { %v5165_v44 = vadd.f32 %v1507_v29, %v1091_v21  ;;  %v5167_v23 = vadd.f32 %v1596_v20, %v1180_v43 }
 0x1bb   : > { %3789 = vmatmul.msk.bf16.gmra.mxu2 %vm666_vm3, %v6454_v37  ;;  %3805 = vmatmul.msk.bf16.gmra.mxu3 %vm666_vm3, %v6454_v37 }
 0x1bd   : > { %v1512_v41 = vpop.f32.mrf.mxu0  ;;  %v1601_v22 = vpop.f32.mrf.mxu1 }
 0x1be   : > { %v1093_v5 = vpop.f32.mrf.mxu2  ;;  %v1182_v8 = vpop.f32.mrf.mxu3 }
 0x1bf   : > { %v1094_v48 = vadd.f32 %v1093_v5, %v6455_v19  ;;  %v1183_v34 = vadd.f32 %v1182_v8, %v6456_v27  ;;  %v6466_v27 = vld [vmem:[#allocation35_spill] sm:$0xff] }
 0x1c1   : > { %v5175_v31 = vadd.f32 %v1510_v25, %v1094_v48  ;;  %v5177_v21 = vadd.f32 %v1599_v57, %v1183_v34  ;;  %v6464_v57 = vld [vmem:[#allocation39_spill] sm:$0xff] }
 0x1c3   : > { %6457 = vst [vmem:[#allocation58_spill] sm:$0xff] %v5175_v31  ;;  %v6471_v31 = vld [vmem:[#allocation13_spill] sm:$0xff] }
 0x1c4   : > { %6458 = vst [vmem:[#allocation59_spill] sm:$0xff] %v5177_v21  ;;  %v6470_v21 = vld [vmem:[#allocation38_spill] sm:$0xff] }
 0x1c5   : > { %v1515_v29 = vpop.f32.mrf.mxu0  ;;  %v1604_v20 = vpop.f32.mrf.mxu1 }
 0x1c6   : > { %v1095_v43 = vpop.f32.mrf.mxu2  ;;  %v1184_v3 = vpop.f32.mrf.mxu3 }
 0x1c7   : > { %v1096_v55 = vadd.f32 %v1095_v43, %v6459_v52  ;;  %v1185_v37 = vadd.f32 %v1184_v3, %v6460_v16  ;;  %v6465_v3 = vld [vmem:[#allocation34_spill] sm:$0xff] }
 0x1c8   : > { %3822 = vmatmul.msk.bf16.gmra.mxu0 %vm666_vm3, %v6461_v17  ;;  %3838 = vmatmul.msk.bf16.gmra.mxu1 %vm666_vm3, %v6461_v17 }
 0x1c9   : > { %v5185_v5 = vadd.f32 %v1512_v41, %v1096_v55  ;;  %v5187_v25 = vadd.f32 %v1601_v22, %v1185_v37 }
 0x1cb   : > { %6462 = vst [vmem:[#allocation63_spill] sm:$0xff] %v5185_v5  ;;  %3790 = vmatmul.msk.bf16.gmra.mxu2 %vm666_vm3, %v6464_v57  ;;  %3806 = vmatmul.msk.bf16.gmra.mxu3 %vm666_vm3, %v6464_v57 }
 0x1cc   : > { %6463 = vst [vmem:[#allocation64_spill] sm:$0xff] %v5187_v25  ;;  %v6469_v25 = vld [vmem:[#allocation37_spill] sm:$0xff] }
 0x1cd   : > { %v1517_v8 = vpop.f32.mrf.mxu0  ;;  %v1606_v52 = vpop.f32.mrf.mxu1 }
 0x1ce   : > { %v1098_v19 = vpop.f32.mrf.mxu2  ;;  %v1187_v16 = vpop.f32.mrf.mxu3 }
 0x1cf   : > { %v1099_v48 = vadd.f32 %v1098_v19, %v6465_v3  ;;  %v1188_v34 = vadd.f32 %v1187_v16, %v6466_v27  ;;  %v6476_v27 = vld [vmem:[#allocation41_spill] sm:$0xff] }
 0x1d1   : > { %v5195_v43 = vadd.f32 %v1515_v29, %v1099_v48  ;;  %v5197_v55 = vadd.f32 %v1604_v20, %v1188_v34  ;;  %v6474_v20 = vld [vmem:[#allocation45_spill] sm:$0xff] }
 0x1d3   : > { %6467 = vst [vmem:[#allocation68_spill] sm:$0xff] %v5195_v43  ;;  %v6481_v43 = vld [vmem:[#allocation15_spill] sm:$0xff] }
 0x1d4   : > { %6468 = vst [vmem:[#allocation69_spill] sm:$0xff] %v5197_v55  ;;  %v6480_v55 = vld [vmem:[#allocation44_spill] sm:$0xff] }
 0x1d5   : > { %v1520_v41 = vpop.f32.mrf.mxu0  ;;  %v1609_v22 = vpop.f32.mrf.mxu1 }
 0x1d6   : > { %v1100_v37 = vpop.f32.mrf.mxu2  ;;  %v1189_v17 = vpop.f32.mrf.mxu3 }
 0x1d7   : > { %v1101_v5 = vadd.f32 %v1100_v37, %v6469_v25  ;;  %v1190_v57 = vadd.f32 %v1189_v17, %v6470_v21  ;;  %v6475_v21 = vld [vmem:[#allocation40_spill] sm:$0xff] }
 0x1d8   : > { %3823 = vmatmul.msk.bf16.gmra.mxu0 %vm666_vm3, %v6471_v31  ;;  %3839 = vmatmul.msk.bf16.gmra.mxu1 %vm666_vm3, %v6471_v31 }
 0x1d9   : > { %v5205_v19 = vadd.f32 %v1517_v8, %v1101_v5  ;;  %v5207_v29 = vadd.f32 %v1606_v52, %v1190_v57 }
 0x1db   : > { %6472 = vst [vmem:[#allocation7_spill] sm:$0xff] %v5205_v19  ;;  %3791 = vmatmul.msk.bf16.gmra.mxu2 %vm666_vm3, %v6474_v20  ;;  %3807 = vmatmul.msk.bf16.gmra.mxu3 %vm666_vm3, %v6474_v20 }
 0x1dc   : > { %6473 = vst [vmem:[#allocation27_spill] sm:$0xff] %v5207_v29  ;;  %v6479_v29 = vld [vmem:[#allocation43_spill] sm:$0xff] }
 0x1dd   : > { %v1522_v16 = vpop.f32.mrf.mxu0  ;;  %v1611_v25 = vpop.f32.mrf.mxu1 }
 0x1de   : > { %v1103_v3 = vpop.f32.mrf.mxu2  ;;  %v1192_v17 = vpop.f32.mrf.mxu3 }
 0x1df   : > { %v1104_v48 = vadd.f32 %v1103_v3, %v6475_v21  ;;  %v1193_v34 = vadd.f32 %v1192_v17, %v6476_v27  ;;  %v6486_v27 = vld [vmem:[#allocation47_spill] sm:$0xff] }
 0x1e1   : > { %v5215_v37 = vadd.f32 %v1520_v41, %v1104_v48  ;;  %v5217_v5 = vadd.f32 %v1609_v22, %v1193_v34  ;;  %v6484_v22 = vld [vmem:[#allocation51_spill] sm:$0xff] }
 0x1e3   : > { %6477 = vst [vmem:[#allocation22_spill] sm:$0xff] %v5215_v37  ;;  %v6491_v37 = vld [vmem:[#allocation17_spill] sm:$0xff] }
 0x1e4   : > { %6478 = vst [vmem:[#allocation23_spill] sm:$0xff] %v5217_v5  ;;  %v6490_v5 = vld [vmem:[#allocation50_spill] sm:$0xff] }
 0x1e5   : > { %v1525_v8 = vpop.f32.mrf.mxu0  ;;  %v1614_v52 = vpop.f32.mrf.mxu1 }
 0x1e6   : > { %v1105_v57 = vpop.f32.mrf.mxu2  ;;  %v1194_v31 = vpop.f32.mrf.mxu3 }
 0x1e7   : > { %v1106_v19 = vadd.f32 %v1105_v57, %v6479_v29  ;;  %v1195_v20 = vadd.f32 %v1194_v31, %v6480_v55  ;;  %v6485_v55 = vld [vmem:[#allocation46_spill] sm:$0xff] }
 0x1e8   : > { %3824 = vmatmul.msk.bf16.gmra.mxu0 %vm666_vm3, %v6481_v43  ;;  %3840 = vmatmul.msk.bf16.gmra.mxu1 %vm666_vm3, %v6481_v43 }
 0x1e9   : > { %v5225_v3 = vadd.f32 %v1522_v16, %v1106_v19  ;;  %v5227_v41 = vadd.f32 %v1611_v25, %v1195_v20 }
 0x1eb   : > { %6482 = vst [vmem:[#allocation25_spill] sm:$0xff] %v5225_v3  ;;  %3792 = vmatmul.msk.bf16.gmra.mxu2 %vm666_vm3, %v6484_v22  ;;  %3808 = vmatmul.msk.bf16.gmra.mxu3 %vm666_vm3, %v6484_v22 }
 0x1ec   : > { %6483 = vst [vmem:[#allocation26_spill] sm:$0xff] %v5227_v41  ;;  %v6489_v41 = vld [vmem:[#allocation49_spill] sm:$0xff] }
 0x1ed   : > { %v1527_v17 = vpop.f32.mrf.mxu0  ;;  %v1616_v29 = vpop.f32.mrf.mxu1 }
 0x1ee   : > { %v1108_v21 = vpop.f32.mrf.mxu2  ;;  %v1197_v31 = vpop.f32.mrf.mxu3 }
 0x1ef   : > { %v1109_v48 = vadd.f32 %v1108_v21, %v6485_v55  ;;  %v1198_v34 = vadd.f32 %v1197_v31, %v6486_v27  ;;  %v6496_v27 = vld [vmem:[#allocation53_spill] sm:$0xff] }
 0x1f1   : > { %v5235_v57 = vadd.f32 %v1525_v8, %v1109_v48  ;;  %v5237_v19 = vadd.f32 %v1614_v52, %v1198_v34  ;;  %v6494_v52 = vld [vmem:[#allocation57_spill] sm:$0xff] }
 0x1f3   : > { %6487 = vst [vmem:[#allocation33_spill] sm:$0xff] %v5235_v57  ;;  %v6501_v57 = vld [vmem:[#allocation19_spill] sm:$0xff] }
 0x1f4   : > { %6488 = vst [vmem:[#allocation28_spill] sm:$0xff] %v5237_v19  ;;  %v6500_v19 = vld [vmem:[#allocation56_spill] sm:$0xff] }
 0x1f5   : > { %v1530_v16 = vpop.f32.mrf.mxu0  ;;  %v1619_v25 = vpop.f32.mrf.mxu1 }
 0x1f6   : > { %v1110_v20 = vpop.f32.mrf.mxu2  ;;  %v1199_v43 = vpop.f32.mrf.mxu3 }
 0x1f7   : > { %v1111_v3 = vadd.f32 %v1110_v20, %v6489_v41  ;;  %v1200_v22 = vadd.f32 %v1199_v43, %v6490_v5  ;;  %v6495_v5 = vld [vmem:[#allocation52_spill] sm:$0xff] }
 0x1f8   : > { %3825 = vmatmul.msk.bf16.gmra.mxu0 %vm666_vm3, %v6491_v37  ;;  %3841 = vmatmul.msk.bf16.gmra.mxu1 %vm666_vm3, %v6491_v37 }
 0x1f9   : > { %v5245_v21 = vadd.f32 %v1527_v17, %v1111_v3  ;;  %v5247_v8 = vadd.f32 %v1616_v29, %v1200_v22 }
 0x1fb   : > { %6492 = vst [vmem:[#allocation29_spill] sm:$0xff] %v5245_v21  ;;  %3793 = vmatmul.msk.bf16.gmra.mxu2 %vm666_vm3, %v6494_v52  ;;  %3809 = vmatmul.msk.bf16.gmra.mxu3 %vm666_vm3, %v6494_v52 }
 0x1fc   : > { %6493 = vst [vmem:[#allocation31_spill] sm:$0xff] %v5247_v8  ;;  %v6499_v8 = vld [vmem:[#allocation55_spill] sm:$0xff] }
 0x1fd   : > { %v1532_v31 = vpop.f32.mrf.mxu0  ;;  %v1621_v41 = vpop.f32.mrf.mxu1 }
 0x1fe   : > { %v1113_v55 = vpop.f32.mrf.mxu2  ;;  %v1202_v43 = vpop.f32.mrf.mxu3 }
 0x1ff   : > { %v1114_v48 = vadd.f32 %v1113_v55, %v6495_v5  ;;  %v1203_v34 = vadd.f32 %v1202_v43, %v6496_v27  ;;  %v6506_v27 = vld [vmem:[#allocation61_spill] sm:$0xff] }
 0x201   : > { %v5255_v20 = vadd.f32 %v1530_v16, %v1114_v48  ;;  %v5257_v3 = vadd.f32 %v1619_v25, %v1203_v34  ;;  %v6504_v25 = vld [vmem:[#allocation67_spill] sm:$0xff] }
 0x203   : > { %6497 = vst [vmem:[#allocation32_spill] sm:$0xff] %v5255_v20  ;;  %v6511_v20 = vld [vmem:[#allocation6_spill] sm:$0xff] }
 0x204   : > { %6498 = vst [vmem:[#allocation39_spill] sm:$0xff] %v5257_v3  ;;  %v6510_v3 = vld [vmem:[#allocation66_spill] sm:$0xff] }
 0x205   : > { %v1535_v17 = vpop.f32.mrf.mxu0  ;;  %v1624_v29 = vpop.f32.mrf.mxu1 }
 0x206   : > { %v1115_v22 = vpop.f32.mrf.mxu2  ;;  %v1204_v37 = vpop.f32.mrf.mxu3 }
 0x207   : > { %v1116_v21 = vadd.f32 %v1115_v22, %v6499_v8  ;;  %v1205_v52 = vadd.f32 %v1204_v37, %v6500_v19  ;;  %v6505_v19 = vld [vmem:[#allocation60_spill] sm:$0xff] }
 0x208   : > { %3826 = vmatmul.msk.bf16.gmra.mxu0 %vm666_vm3, %v6501_v57  ;;  %3842 = vmatmul.msk.bf16.gmra.mxu1 %vm666_vm3, %v6501_v57 }
 0x209   : > { %v5265_v55 = vadd.f32 %v1532_v31, %v1116_v21  ;;  %v5267_v16 = vadd.f32 %v1621_v41, %v1205_v52 }
 0x20b   : > { %6502 = vst [vmem:[#allocation34_spill] sm:$0xff] %v5265_v55  ;;  %3794 = vmatmul.msk.bf16.gmra.mxu2 %vm666_vm3, %v6504_v25  ;;  %3810 = vmatmul.msk.bf16.gmra.mxu3 %vm666_vm3, %v6504_v25 }
 0x20c   : > { %6503 = vst [vmem:[#allocation35_spill] sm:$0xff] %v5267_v16  ;;  %v6509_v16 = vld [vmem:[#allocation65_spill] sm:$0xff] }
 0x20d   : > { %v1537_v43 = vpop.f32.mrf.mxu0  ;;  %v1626_v8 = vpop.f32.mrf.mxu1 }
 0x20e   : > { %v1118_v5 = vpop.f32.mrf.mxu2  ;;  %v1207_v37 = vpop.f32.mrf.mxu3 }
 0x20f   : > { %v1119_v48 = vadd.f32 %v1118_v5, %v6505_v19  ;;  %v1208_v34 = vadd.f32 %v1207_v37, %v6506_v27  ;;  %v6516_v27 = vld [vmem:[#allocation71_spill] sm:$0xff] }
 0x211   : > { %v5275_v22 = vadd.f32 %v1535_v17, %v1119_v48  ;;  %v5277_v21 = vadd.f32 %v1624_v29, %v1208_v34  ;;  %v6514_v29 = vld [vmem:[#allocation75_spill] sm:$0xff] }
 0x213   : > { %6507 = vst [vmem:[#allocation37_spill] sm:$0xff] %v5275_v22  ;;  %v6519_v22 = vld [vmem:[#allocation8_spill] sm:$0xff] }
 0x214   : > { %6508 = vst [vmem:[#allocation38_spill] sm:$0xff] %v5277_v21  ;;  %v6518_v21 = vld [vmem:[#allocation74_spill] sm:$0xff] }
 0x215   : > { %v1540_v31 = vpop.f32.mrf.mxu0  ;;  %v1629_v41 = vpop.f32.mrf.mxu1 }
 0x216   : > { %v1120_v52 = vpop.f32.mrf.mxu2  ;;  %v1209_v57 = vpop.f32.mrf.mxu3 }
 0x217   : > { %v1121_v55 = vadd.f32 %v1120_v52, %v6509_v16  ;;  %v1210_v25 = vadd.f32 %v1209_v57, %v6510_v3  ;;  %v6515_v3 = vld [vmem:[#allocation70_spill] sm:$0xff] }
 0x218   : > { %3827 = vmatmul.msk.bf16.gmra.mxu0 %vm666_vm3, %v6511_v20  ;;  %3843 = vmatmul.msk.bf16.gmra.mxu1 %vm666_vm3, %v6511_v20 }
 0x219   : > { %v5285_v5 = vadd.f32 %v1537_v43, %v1121_v55  ;;  %v5287_v17 = vadd.f32 %v1626_v8, %v1210_v25 }
 0x21b   : > { %6512 = vst [vmem:[#allocation45_spill] sm:$0xff] %v5285_v5  ;;  %3795 = vmatmul.msk.bf16.gmra.mxu2 %vm666_vm3, %v6514_v29  ;;  %3811 = vmatmul.msk.bf16.gmra.mxu3 %vm666_vm3, %v6514_v29 }
 0x21c   : > { %6513 = vst [vmem:[#allocation40_spill] sm:$0xff] %v5287_v17  ;;  %v6517_v17 = vld [vmem:[#allocation73_spill] sm:$0xff] }
 0x21d   : > { %v1542_v37 = vpop.f32.mrf.mxu0  ;;  %v1631_v16 = vpop.f32.mrf.mxu1 }
 0x21e   : > { %v1123_v19 = vpop.f32.mrf.mxu2  ;;  %v1212_v57 = vpop.f32.mrf.mxu3 }
 0x21f   : > { %v1124_v48 = vadd.f32 %v1123_v19, %v6515_v3  ;;  %v1213_v34 = vadd.f32 %v1212_v57, %v6516_v27 }
 0x221   : > { %v5295_v52 = vadd.f32 %v1540_v31, %v1124_v48  ;;  %v5297_v55 = vadd.f32 %v1629_v41, %v1213_v34 }
 0x225   : > { %v2011_v43 = vpop.f32.mrf.mxu0  ;;  %v2100_v8 = vpop.f32.mrf.mxu1 }
 0x226   : > { %v1125_v25 = vpop.f32.mrf.mxu2  ;;  %v1214_v20 = vpop.f32.mrf.mxu3 }
 0x227   : > { %v1126_v5 = vadd.f32 %v1125_v25, %v6517_v17  ;;  %v1215_v29 = vadd.f32 %v1214_v20, %v6518_v21 }
 0x228   : > { %3828 = vmatmul.msk.bf16.gmra.mxu0 %vm666_vm3, %v6519_v22  ;;  %3844 = vmatmul.msk.bf16.gmra.mxu1 %vm666_vm3, %v6519_v22 }
 0x229   : > { %v5305_v19 = vadd.f32 %v1542_v37, %v1126_v5  ;;  %v5307_v31 = vadd.f32 %v1631_v16, %v1215_v29  ;;  %v6520_v29 = vld [vmem:[#allocation10_spill] sm:$0xff] }
 0x22b   : > { %3796 = vmatmul.msk.bf16.gmra.mxu2 %vm666_vm3, %v4918_v10  ;;  %3812 = vmatmul.msk.bf16.gmra.mxu3 %vm666_vm3, %v4918_v10 }
 0x22d   : > { %v2013_v41 = vpop.f32.mrf.mxu0  ;;  %v2102_v17 = vpop.f32.mrf.mxu1 }
 0x22e   : > { %v1727_v57 = vpop.f32.mrf.mxu2  ;;  %v1816_v20 = vpop.f32.mrf.mxu3 }
 0x22f   : > { %v1896_v21 = vadd.f32 %v1727_v57, %v4908_v4  ;;  %v1897_v3 = vadd.f32 %v1816_v20, %v4910_v46 }
 0x231   : > { %v5315_v48 = vadd.f32 %v2011_v43, %v1896_v21  ;;  %v5317_v5 = vadd.f32 %v2100_v8, %v1897_v3 }
 0x235   : > { %v2016_v37 = vpop.f32.mrf.mxu0  ;;  %v2105_v16 = vpop.f32.mrf.mxu1 }
 0x236   : > { %v1729_v27 = vpop.f32.mrf.mxu2  ;;  %v1818_v34 = vpop.f32.mrf.mxu3 }
 0x237   : > { %v1898_v25 = vadd.f32 %v1729_v27, %v4926_v13  ;;  %v1899_v10 = vadd.f32 %v1818_v34, %v4928_v63 }
 0x238   : > { %3829 = vmatmul.msk.bf16.gmra.mxu0 %vm666_vm3, %v6520_v29  ;;  %3845 = vmatmul.msk.bf16.gmra.mxu1 %vm666_vm3, %v6520_v29 }
 0x239   : > { %v5325_v4 = vadd.f32 %v2013_v41, %v1898_v25  ;;  %v5327_v46 = vadd.f32 %v2102_v17, %v1899_v10  ;;  %v6521_v10 = vld [vmem:[#allocation12_spill] sm:$0xff] }
 0x23b   : > { %3797 = vmatmul.msk.bf16.gmra.mxu2 %vm666_vm3, %v4950_v7  ;;  %3813 = vmatmul.msk.bf16.gmra.mxu3 %vm666_vm3, %v4950_v7 }
 0x23d   : > { %v2018_v43 = vpop.f32.mrf.mxu0  ;;  %v2107_v13 = vpop.f32.mrf.mxu1 }
 0x23e   : > { %v1732_v8 = vpop.f32.mrf.mxu2  ;;  %v1821_v63 = vpop.f32.mrf.mxu3 }
 0x23f   : > { %v1900_v57 = vadd.f32 %v1732_v8, %v4940_v38  ;;  %v1901_v20 = vadd.f32 %v1821_v63, %v4942_v1 }
 0x241   : > { %v5335_v21 = vadd.f32 %v2016_v37, %v1900_v57  ;;  %v5337_v41 = vadd.f32 %v2105_v16, %v1901_v20 }
 0x245   : > { %v2021_v17 = vpop.f32.mrf.mxu0  ;;  %v2110_v3 = vpop.f32.mrf.mxu1 }
 0x246   : > { %v1734_v27 = vpop.f32.mrf.mxu2  ;;  %v1823_v34 = vpop.f32.mrf.mxu3 }
 0x247   : > { %v1902_v25 = vadd.f32 %v1734_v27, %v4958_v39  ;;  %v1903_v7 = vadd.f32 %v1823_v34, %v4960_v59 }
 0x248   : > { %3830 = vmatmul.msk.bf16.gmra.mxu0 %vm666_vm3, %v6521_v10  ;;  %3846 = vmatmul.msk.bf16.gmra.mxu1 %vm666_vm3, %v6521_v10 }
 0x249   : > { %v5345_v38 = vadd.f32 %v2018_v43, %v1902_v25  ;;  %v5347_v1 = vadd.f32 %v2107_v13, %v1903_v7  ;;  %v6522_v7 = vld [vmem:[#allocation14_spill] sm:$0xff] }
 0x24b   : > { %3798 = vmatmul.msk.bf16.gmra.mxu2 %vm666_vm3, %v4982_v35  ;;  %3814 = vmatmul.msk.bf16.gmra.mxu3 %vm666_vm3, %v4982_v35 }
 0x24d   : > { %v2023_v37 = vpop.f32.mrf.mxu0  ;;  %v2112_v39 = vpop.f32.mrf.mxu1 }
 0x24e   : > { %v1737_v16 = vpop.f32.mrf.mxu2  ;;  %v1826_v59 = vpop.f32.mrf.mxu3 }
 0x24f   : > { %v1904_v8 = vadd.f32 %v1737_v16, %v4972_v36  ;;  %v1905_v63 = vadd.f32 %v1826_v59, %v4974_v33 }
 0x251   : > { %v5355_v57 = vadd.f32 %v2021_v17, %v1904_v8  ;;  %v5357_v43 = vadd.f32 %v2110_v3, %v1905_v63 }
 0x255   : > { %v2026_v13 = vpop.f32.mrf.mxu0  ;;  %v2115_v20 = vpop.f32.mrf.mxu1 }
 0x256   : > { %v1739_v27 = vpop.f32.mrf.mxu2  ;;  %v1828_v34 = vpop.f32.mrf.mxu3 }
 0x257   : > { %v1906_v25 = vadd.f32 %v1739_v27, %v4990_v28  ;;  %v1907_v35 = vadd.f32 %v1828_v34, %v4992_v12 }
 0x258   : > { %3831 = vmatmul.msk.bf16.gmra.mxu0 %vm666_vm3, %v6522_v7  ;;  %3847 = vmatmul.msk.bf16.gmra.mxu1 %vm666_vm3, %v6522_v7 }
 0x259   : > { %v5365_v36 = vadd.f32 %v2023_v37, %v1906_v25  ;;  %v5367_v33 = vadd.f32 %v2112_v39, %v1907_v35  ;;  %v6523_v35 = vld [vmem:[#allocation16_spill] sm:$0xff] }
 0x25b   : > { %3799 = vmatmul.msk.bf16.gmra.mxu2 %vm666_vm3, %v5014_v2  ;;  %3815 = vmatmul.msk.bf16.gmra.mxu3 %vm666_vm3, %v5014_v2 }
 0x25d   : > { %v2028_v17 = vpop.f32.mrf.mxu0  ;;  %v2117_v28 = vpop.f32.mrf.mxu1 }
 0x25e   : > { %v1742_v3 = vpop.f32.mrf.mxu2  ;;  %v1831_v12 = vpop.f32.mrf.mxu3 }
 0x25f   : > { %v1908_v16 = vadd.f32 %v1742_v3, %v5004_v51  ;;  %v1909_v59 = vadd.f32 %v1831_v12, %v5006_v53 }
 0x261   : > { %v5375_v8 = vadd.f32 %v2026_v13, %v1908_v16  ;;  %v5377_v37 = vadd.f32 %v2115_v20, %v1909_v59 }
 0x265   : > { %v2031_v39 = vpop.f32.mrf.mxu0  ;;  %v2120_v63 = vpop.f32.mrf.mxu1 }
 0x266   : > { %v1744_v27 = vpop.f32.mrf.mxu2  ;;  %v1833_v34 = vpop.f32.mrf.mxu3 }
 0x267   : > { %v1910_v25 = vadd.f32 %v1744_v27, %v5022_v42  ;;  %v1911_v2 = vadd.f32 %v1833_v34, %v5024_v32 }
 0x268   : > { %3832 = vmatmul.msk.bf16.gmra.mxu0 %vm666_vm3, %v6523_v35  ;;  %3848 = vmatmul.msk.bf16.gmra.mxu1 %vm666_vm3, %v6523_v35  ;;  %v5426_v35 = vld [vmem:[%s4227_s7 + $0xc8] sm:$0x1] }
 0x269   : > { %v5385_v51 = vadd.f32 %v2028_v17, %v1910_v25  ;;  %v5387_v53 = vadd.f32 %v2117_v28, %v1911_v2  ;;  %v6524_v2 = vld [vmem:[#allocation18_spill] sm:$0xff] }
 0x26b   : > { %3800 = vmatmul.msk.bf16.gmra.mxu2 %vm666_vm3, %v5046_v11  ;;  %3816 = vmatmul.msk.bf16.gmra.mxu3 %vm666_vm3, %v5046_v11 }
 0x26d   : > { %v2033_v13 = vpop.f32.mrf.mxu0  ;;  %v2122_v42 = vpop.f32.mrf.mxu1 }
 0x26e   : > { %v1747_v32 = vpop.f32.mrf.mxu2  ;;  %v1836_v20 = vpop.f32.mrf.mxu3 }
 0x26f   : > { %v1912_v3 = vadd.f32 %v1747_v32, %v5036_v49  ;;  %v1913_v12 = vadd.f32 %v1836_v20, %v5038_v9  ;;  %v5406_v49 = vld [vmem:[%s4227_s7 + $0xc0] sm:$0xf]  ;;  %v5409_v9 = vld [vmem:[%s4227_s7 + $0xc4] sm:$0xf] }
 0x270   : > { %6525 = vst [vmem:[#allocation41_spill] sm:$0xff] %v5406_v49  ;;  %v1961_v32 = vshrl.u32 %v5406_v49, 16  ;;  %v1964_v20 = vshll.u32 %v5406_v49, 16 }
 0x271   : > { %v5395_v17 = vadd.f32 %v2031_v39, %v1912_v3  ;;  %v5397_v28 = vadd.f32 %v2120_v63, %v1913_v12  ;;  %6526 = vst [vmem:[#allocation43_spill] sm:$0xff] %v5409_v9  ;;  %v1970_v3 = vshll.u32 %v5409_v9, 16 }
 0x275   : > { %v2036_v16 = vpop.f32.mrf.mxu0  ;;  %v2125_v59 = vpop.f32.mrf.mxu1 }
 0x276   : > { %v1749_v27 = vpop.f32.mrf.mxu2  ;;  %v1838_v34 = vpop.f32.mrf.mxu3 }
 0x277   : > { %v1914_v11 = vadd.f32 %v1749_v27, %v5054_v58  ;;  %v1915_v25 = vadd.f32 %v1838_v34, %v5056_v47 }
 0x278   : > { %3833 = vmatmul.msk.bf16.gmra.mxu0 %vm666_vm3, %v6524_v2  ;;  %3849 = vmatmul.msk.bf16.gmra.mxu1 %vm666_vm3, %v6524_v2  ;;  %v1972_v2 = vrot.slane %v1970_v3, 5 }
 0x279   : > { %v5411_v39 = vadd.f32 %v2033_v13, %v1914_v11  ;;  %v5413_v63 = vadd.f32 %v2122_v42, %v1915_v25  ;;  %v1974_v13 = vshrl.u32 %v5409_v9, 16  ;;  %v1963_v11 = vrot.slane %v1961_v32, 4 }
 0x27a   : > { %v1966_v25 = vrot.slane %v1964_v20, 5  ;;  %v6529_v20 = vld [vmem:[#allocation20_spill] sm:$0xff] }
 0x27b   : > { %6527 = vst [vmem:[#allocation44_spill] sm:$0xff] %v5411_v39  ;;  %3801 = vmatmul.msk.bf16.gmra.mxu2 %vm666_vm3, %v5078_v45  ;;  %3817 = vmatmul.msk.bf16.gmra.mxu3 %vm666_vm3, %v5078_v45  ;;  %v1976_v45 = vrot.slane %v1974_v13, 4 }
 0x27c   : > { %6528 = vst [vmem:[#allocation51_spill] sm:$0xff] %v5413_v63  ;;  %v1967_v49 = vor.u32 %v1966_v25, %v1963_v11  ;;  %v1980_v63 = vshll.u32 %v5426_v35, 16 }
 0x27d   : > { %v2038_v58 = vpop.f32.mrf.mxu0  ;;  %v2127_v47 = vpop.f32.mrf.mxu1  ;;  %v1977_v9 = vor.u32 %v1976_v45, %v1972_v2 }
 0x27e   : > { %v1752_v12 = vpop.f32.mrf.mxu2  ;;  %v1841_v42 = vpop.f32.mrf.mxu3  ;;  %v1982_v3 = vrot.slane %v1980_v63, 5 }
 0x27f   : > { %v1916_v27 = vadd.f32 %v1752_v12, %v5068_v24  ;;  %v1917_v34 = vadd.f32 %v1841_v42, %v5070_v26  ;;  %v4065_v42 = vld [vmem:[%s4227_s7 + $0x30] sm:$0xff] }
 0x281   : > { %v5428_v7 = vadd.f32 %v2036_v16, %v1916_v27  ;;  %v5430_v10 = vadd.f32 %v2125_v59, %v1917_v34  ;;  %v1968_v16 = vrot.slane %v1967_v49, 4  ;;  %v1978_v59 = vrot.slane %v1977_v9, 4 }
 0x283   : > { %v1973_v49 = vsel %vm4258_vm4, %v1968_v16, %v1972_v2  ;;  %v1983_v9 = vsel %vm4258_vm4, %v1978_v59, %v1982_v3 }
 0x284   : > { %v1985_v45 = vunpack.c.l.b16 %v1973_v49 }
 0x285   : > { %v2041_v29 = vpop.f32.mrf.mxu0  ;;  %v2130_v22 = vpop.f32.mrf.mxu1 }
 0x286   : > { %v1754_v39 = vpop.f32.mrf.mxu2  ;;  %v1843_v24 = vpop.f32.mrf.mxu3 }
 0x287   : > { %v1918_v26 = vadd.f32 %v1754_v39, %v5086_v61  ;;  %v1919_v32 = vadd.f32 %v1843_v24, %v5088_v15  ;;  %v2798_v61 = vld [vmem:[%s6250_s1 + $0x38] sm:$0xff]  ;;  %v1986_v24 = vunpack.c.l.b16 %v1983_v9 }
 0x288   : > { %3834 = vmatmul.msk.bf16.gmra.mxu0 %vm666_vm3, %v6529_v20  ;;  %3850 = vmatmul.msk.bf16.gmra.mxu1 %vm666_vm3, %v6529_v20  ;;  %v2803_v63 = vunpack.c.l.b16 %v2798_v61 }
 0x289   : > { %v5439_v13 = vadd.f32 %v2038_v58, %v1918_v26  ;;  %v5441_v12 = vadd.f32 %v2127_v47, %v1919_v32  ;;  %v2804_v58 = vunpack.c.h.b16 %v2798_v61  ;;  %v3066_v26 = vld [vmem:[%s6250_s1 + $0x40] sm:$0xff]  ;;  %v5465_v49 = vpack.c.b16 %v1986_v24, %v1985_v45 }
 0x28a   : > { %v2805_v34 = vpack.c.b16 %v2803_v63, %v2803_v63  ;;  %v3071_v16 = vunpack.c.l.b16 %v3066_v26  ;;  %v3072_v59 = vunpack.c.h.b16 %v3066_v26 }
 0x28b   : > { %3802 = vmatmul.msk.bf16.gmra.mxu2 %vm666_vm3, %v5119_v14  ;;  %3818 = vmatmul.msk.bf16.gmra.mxu3 %vm666_vm3, %v5119_v14  ;;  %v2806_v11 = vpack.c.b16 %v2804_v58, %v2804_v58  ;;  %6531 = vst [vmem:[#allocation46_spill] sm:$0xff] %v5465_v49 }
 0x28c   : > { %v2811_v2 = vsel %vm715_vm0, %v2805_v34, 0  ;;  %v3074_v61 = vpack.c.b16 %v3072_v59, %v3072_v59 }
 0x28d   : > { %v2043_v15 = vpop.f32.mrf.mxu0  ;;  %v2132_v39 = vpop.f32.mrf.mxu1  ;;  %v2814_v32 = vsel %vm715_vm0, %v2806_v11, 0  ;;  %2823 = vmatpush.bf16.msra.mxu2 %v2811_v2 }
 0x28e   : > { %v1757_v47 = vpop.f32.mrf.mxu2  ;;  %v1846_v27 = vpop.f32.mrf.mxu3  ;;  %2912 = vmatpush.bf16.msra.mxu3 %v2814_v32 }
 0x28f   : > { %v1920_v14 = vadd.f32 %v1757_v47, %v5108_v18  ;;  %v1921_v25 = vadd.f32 %v1846_v27, %v5110_v54  ;;  %v3073_v54 = vpack.c.b16 %v3071_v16, %v3071_v16  ;;  %v3082_v47 = vsel %vm715_vm0, %v3074_v61, 0 }
 0x290   : > { %3180 = vmatpush.bf16.msra.mxu1 %v3082_v47  ;;  %v4063_v47 = vld [vmem:[%s4227_s7 + $0x18] sm:$0xff] }
 0x291   : > { %v5461_v3 = vadd.f32 %v2041_v29, %v1920_v14  ;;  %v5463_v18 = vadd.f32 %v2130_v22, %v1921_v25  ;;  %v3079_v58 = vsel %vm715_vm0, %v3073_v54, 0  ;;  %v5472_v22 = vld [vmem:[%s4227_s7 + $0xc0] sm:$0xff] }
 0x292   : > { %3091 = vmatpush.bf16.msra.mxu0 %v3079_v58 }
 0x295   : > { %v2046_v9 = vpop.f32.mrf.mxu0  ;;  %v2135_v63 = vpop.f32.mrf.mxu1 }
 0x296   : > { %v1759_v27 = vpop.f32.mrf.mxu2  ;;  %v1848_v34 = vpop.f32.mrf.mxu3 }
 0x297   : > { %v1922_v11 = vadd.f32 %v1759_v27, %v5125_v6  ;;  %v1923_v29 = vadd.f32 %v1848_v34, %v5127_v50 }
 0x298   : > { %3835 = vmatmul.msk.bf16.gmra.mxu0 %vm666_vm3, %v5465_v49  ;;  %3851 = vmatmul.msk.bf16.gmra.mxu1 %vm666_vm3, %v5465_v49  ;;  %v6546_v49 = vld [vmem:[#allocation7_spill] sm:$0xff] }
 0x299   : > { %v5478_v14 = vadd.f32 %v2043_v15, %v1922_v11  ;;  %v5480_v25 = vadd.f32 %v2132_v39, %v1923_v29 }
 0x29b   : > { %3803 = vmatmul.msk.bf16.gmra.mxu2 %vm666_vm3, %v5472_v22  ;;  %3819 = vmatmul.msk.bf16.gmra.mxu3 %vm666_vm3, %v5472_v22 }
 0x29d   : > { %v2048_v6 = vpop.f32.mrf.mxu0  ;;  %v2137_v50 = vpop.f32.mrf.mxu1 }
 0x29e   : > { %v1762_v45 = vpop.f32.mrf.mxu2  ;;  %v1851_v24 = vpop.f32.mrf.mxu3 }
 0x29f   : > { %v1924_v26 = vadd.f32 %v1762_v45, %v5135_v56  ;;  %v1925_v2 = vadd.f32 %v1851_v24, %v5137_v62 }
 0x2a1   : > { %v5488_v32 = vadd.f32 %v2046_v9, %v1924_v26  ;;  %v5490_v15 = vadd.f32 %v2135_v63, %v1925_v2  ;;  %v6532_v9 = vld [vmem:[#allocation24_spill] sm:$0xff] }
 0x2a5   : > { %v2051_v39 = vpop.f32.mrf.mxu0  ;;  %v2140_v16 = vpop.f32.mrf.mxu1 }
 0x2a6   : > { %v1764_v59 = vpop.f32.mrf.mxu2  ;;  %v1853_v54 = vpop.f32.mrf.mxu3 }
 0x2a7   : > { %v1926_v61 = vadd.f32 %v1764_v59, %v5145_v60  ;;  %v1927_v58 = vadd.f32 %v1853_v54, %v5147_v30  ;;  %v4064_v54 = vld [vmem:[%s4227_s7 + $0x24] sm:$0xff] }
 0x2a8   : > { %3889 = vmatmul.msk.bf16.vlgmr.msrb.gmra.mxu0 %vm666_vm3, %v4063_v47  ;;  %3905 = vmatmul.msk.bf16.vlgmr.msrb.gmra.mxu1 %vm666_vm3, %v4063_v47 }
 0x2a9   : > { %v5497_v56 = vadd.f32 %v2048_v6, %v1926_v61  ;;  %v5499_v62 = vadd.f32 %v2137_v50, %v1927_v58  ;;  %v6534_v58 = vld [vmem:[#allocation58_spill] sm:$0xff] }
 0x2ab   : > { %3853 = vmatmul.msk.bf16.vlgmr.msrb.gmra.mxu2 %vm666_vm3, %v6532_v9  ;;  %3869 = vmatmul.msk.bf16.vlgmr.msrb.gmra.mxu3 %vm666_vm3, %v6532_v9  ;;  %v6535_v9 = vld [vmem:[#allocation59_spill] sm:$0xff] }
 0x2ad   : > { %v2053_v63 = vpop.f32.mrf.mxu0  ;;  %v2142_v60 = vpop.f32.mrf.mxu1 }
 0x2ae   : > { %v1767_v27 = vpop.f32.mrf.mxu2  ;;  %v1856_v30 = vpop.f32.mrf.mxu3 }
 0x2af   : > { %v1928_v34 = vadd.f32 %v1767_v27, %v5155_v40  ;;  %v1929_v11 = vadd.f32 %v1856_v30, %v5157_v0 }
 0x2b1   : > { %v5507_v29 = vadd.f32 %v2051_v39, %v1928_v34  ;;  %v5509_v6 = vadd.f32 %v2140_v16, %v1929_v11  ;;  %v6533_v39 = vld [vmem:[#allocation30_spill] sm:$0xff] }
 0x2b5   : > { %v2056_v50 = vpop.f32.mrf.mxu0  ;;  %v2145_v45 = vpop.f32.mrf.mxu1 }
 0x2b6   : > { %v1769_v24 = vpop.f32.mrf.mxu2  ;;  %v1858_v26 = vpop.f32.mrf.mxu3 }
 0x2b7   : > { %v1930_v2 = vadd.f32 %v1769_v24, %v5165_v44  ;;  %v1931_v59 = vadd.f32 %v1858_v26, %v5167_v23  ;;  %v6537_v26 = vld [vmem:[#allocation63_spill] sm:$0xff] }
 0x2b8   : > { %3890 = vmatmul.msk.bf16.gmra.mxu0 %vm666_vm3, %v4064_v54  ;;  %3906 = vmatmul.msk.bf16.gmra.mxu1 %vm666_vm3, %v4064_v54 }
 0x2b9   : > { %v5516_v40 = vadd.f32 %v2053_v63, %v1930_v2  ;;  %v5518_v0 = vadd.f32 %v2142_v60, %v1931_v59  ;;  %v6538_v59 = vld [vmem:[#allocation64_spill] sm:$0xff] }
 0x2bb   : > { %3854 = vmatmul.msk.bf16.gmra.mxu2 %vm666_vm3, %v6533_v39  ;;  %3870 = vmatmul.msk.bf16.gmra.mxu3 %vm666_vm3, %v6533_v39 }
 0x2bd   : > { %v2058_v16 = vpop.f32.mrf.mxu0  ;;  %v2147_v44 = vpop.f32.mrf.mxu1 }
 0x2be   : > { %v1772_v61 = vpop.f32.mrf.mxu2  ;;  %v1861_v23 = vpop.f32.mrf.mxu3 }
 0x2bf   : > { %v1932_v47 = vadd.f32 %v1772_v61, %v6534_v58  ;;  %v1933_v27 = vadd.f32 %v1861_v23, %v6535_v9 }
 0x2c1   : > { %v5526_v30 = vadd.f32 %v2056_v50, %v1932_v47  ;;  %v5528_v63 = vadd.f32 %v2145_v45, %v1933_v27  ;;  %v6541_v50 = vld [vmem:[#allocation36_spill] sm:$0xff] }
 0x2c2   : > { %v6542_v27 = vld [vmem:[#allocation68_spill] sm:$0xff] }
 0x2c3   : > { %6536 = vst [vmem:[#allocation47_spill] sm:$0xff] %v5528_v63  ;;  %v4066_v63 = vld [vmem:[%s4227_s7 + $0x3c] sm:$0xff] }
 0x2c5   : > { %v2061_v60 = vpop.f32.mrf.mxu0  ;;  %v2150_v34 = vpop.f32.mrf.mxu1 }
 0x2c6   : > { %v1774_v11 = vpop.f32.mrf.mxu2  ;;  %v1863_v24 = vpop.f32.mrf.mxu3 }
 0x2c7   : > { %v1934_v2 = vadd.f32 %v1774_v11, %v6537_v26  ;;  %v1935_v54 = vadd.f32 %v1863_v24, %v6538_v59  ;;  %v6543_v24 = vld [vmem:[#allocation69_spill] sm:$0xff] }
 0x2c8   : > { %3891 = vmatmul.msk.bf16.gmra.mxu0 %vm666_vm3, %v4065_v42  ;;  %3907 = vmatmul.msk.bf16.gmra.mxu1 %vm666_vm3, %v4065_v42 }
 0x2c9   : > { %v5535_v61 = vadd.f32 %v2058_v16, %v1934_v2  ;;  %v5537_v23 = vadd.f32 %v2147_v44, %v1935_v54 }
 0x2cb   : > { %6539 = vst [vmem:[#allocation49_spill] sm:$0xff] %v5535_v61  ;;  %3855 = vmatmul.msk.bf16.gmra.mxu2 %vm666_vm3, %v6541_v50  ;;  %3871 = vmatmul.msk.bf16.gmra.mxu3 %vm666_vm3, %v6541_v50 }
 0x2cc   : > { %6540 = vst [vmem:[#allocation50_spill] sm:$0xff] %v5537_v23  ;;  %v6547_v23 = vld [vmem:[#allocation27_spill] sm:$0xff] }
 0x2cd   : > { %v2063_v45 = vpop.f32.mrf.mxu0  ;;  %v2152_v58 = vpop.f32.mrf.mxu1 }
 0x2ce   : > { %v1777_v47 = vpop.f32.mrf.mxu2  ;;  %v1866_v9 = vpop.f32.mrf.mxu3 }
 0x2cf   : > { %v1936_v11 = vadd.f32 %v1777_v47, %v6542_v27  ;;  %v1937_v26 = vadd.f32 %v1866_v9, %v6543_v24 }
 0x2d1   : > { %v5545_v42 = vadd.f32 %v2061_v60, %v1936_v11  ;;  %v5547_v16 = vadd.f32 %v2150_v34, %v1937_v26  ;;  %v6550_v60 = vld [vmem:[#allocation42_spill] sm:$0xff]  ;;  %v6552_v26 = vld [vmem:[#allocation23_spill] sm:$0xff] }
 0x2d2   : > { %v6551_v11 = vld [vmem:[#allocation22_spill] sm:$0xff] }
 0x2d3   : > { %6544 = vst [vmem:[#allocation57_spill] sm:$0xff] %v5545_v42 }
 0x2d4   : > { %6545 = vst [vmem:[#allocation52_spill] sm:$0xff] %v5547_v16  ;;  %v6556_v16 = vld [vmem:[#allocation26_spill] sm:$0xff] }
 0x2d5   : > { %v2066_v44 = vpop.f32.mrf.mxu0  ;;  %v2155_v2 = vpop.f32.mrf.mxu1 }
 0x2d6   : > { %v1779_v59 = vpop.f32.mrf.mxu2  ;;  %v1868_v54 = vpop.f32.mrf.mxu3 }
 0x2d7   : > { %v1938_v20 = vadd.f32 %v1779_v59, %v6546_v49  ;;  %v1939_v61 = vadd.f32 %v1868_v54, %v6547_v23 }
 0x2d8   : > { %3892 = vmatmul.msk.bf16.gmra.mxu0 %vm666_vm3, %v4066_v63  ;;  %3908 = vmatmul.msk.bf16.gmra.mxu1 %vm666_vm3, %v4066_v63 }
 0x2d9   : > { %v5554_v47 = vadd.f32 %v2063_v45, %v1938_v20  ;;  %v5556_v9 = vadd.f32 %v2152_v58, %v1939_v61 }
 0x2db   : > { %6548 = vst [vmem:[#allocation53_spill] sm:$0xff] %v5554_v47  ;;  %3856 = vmatmul.msk.bf16.gmra.mxu2 %vm666_vm3, %v6550_v60  ;;  %3872 = vmatmul.msk.bf16.gmra.mxu3 %vm666_vm3, %v6550_v60  ;;  %v4067_v60 = vld [vmem:[%s4227_s7 + $0x48] sm:$0xff] }
 0x2dc   : > { %6549 = vst [vmem:[#allocation55_spill] sm:$0xff] %v5556_v9  ;;  %v6555_v9 = vld [vmem:[#allocation25_spill] sm:$0xff] }
 0x2dd   : > { %v2068_v34 = vpop.f32.mrf.mxu0  ;;  %v2157_v49 = vpop.f32.mrf.mxu1 }
 0x2de   : > { %v1782_v27 = vpop.f32.mrf.mxu2  ;;  %v1871_v23 = vpop.f32.mrf.mxu3 }
 0x2df   : > { %v1940_v24 = vadd.f32 %v1782_v27, %v6551_v11  ;;  %v1941_v59 = vadd.f32 %v1871_v23, %v6552_v26 }
 0x2e1   : > { %v5564_v63 = vadd.f32 %v2066_v44, %v1940_v24  ;;  %v5566_v20 = vadd.f32 %v2155_v2, %v1941_v59  ;;  %v6559_v44 = vld [vmem:[#allocation48_spill] sm:$0xff]  ;;  %v6560_v24 = vld [vmem:[#allocation33_spill] sm:$0xff] }
 0x2e2   : > { %v6561_v59 = vld [vmem:[#allocation28_spill] sm:$0xff] }
 0x2e3   : > { %6553 = vst [vmem:[#allocation56_spill] sm:$0xff] %v5564_v63 }
 0x2e4   : > { %6554 = vst [vmem:[#allocation67_spill] sm:$0xff] %v5566_v20  ;;  %v6565_v20 = vld [vmem:[#allocation31_spill] sm:$0xff] }
 0x2e5   : > { %v2071_v61 = vpop.f32.mrf.mxu0  ;;  %v2160_v45 = vpop.f32.mrf.mxu1 }
 0x2e6   : > { %v1784_v58 = vpop.f32.mrf.mxu2  ;;  %v1873_v54 = vpop.f32.mrf.mxu3 }
 0x2e7   : > { %v1942_v47 = vadd.f32 %v1784_v58, %v6555_v9  ;;  %v1943_v42 = vadd.f32 %v1873_v54, %v6556_v16 }
 0x2e8   : > { %3893 = vmatmul.msk.bf16.gmra.mxu0 %vm666_vm3, %v4067_v60  ;;  %3909 = vmatmul.msk.bf16.gmra.mxu1 %vm666_vm3, %v4067_v60 }
 0x2e9   : > { %v5573_v27 = vadd.f32 %v2068_v34, %v1942_v47  ;;  %v5575_v23 = vadd.f32 %v2157_v49, %v1943_v42 }
 0x2eb   : > { %6557 = vst [vmem:[#allocation60_spill] sm:$0xff] %v5573_v27  ;;  %3857 = vmatmul.msk.bf16.gmra.mxu2 %vm666_vm3, %v6559_v44  ;;  %3873 = vmatmul.msk.bf16.gmra.mxu3 %vm666_vm3, %v6559_v44  ;;  %v4068_v44 = vld [vmem:[%s4227_s7 + $0x54] sm:$0xff] }
 0x2ec   : > { %6558 = vst [vmem:[#allocation61_spill] sm:$0xff] %v5575_v23  ;;  %v6564_v23 = vld [vmem:[#allocation29_spill] sm:$0xff] }
 0x2ed   : > { %v2073_v2 = vpop.f32.mrf.mxu0  ;;  %v2162_v9 = vpop.f32.mrf.mxu1 }
 0x2ee   : > { %v1787_v11 = vpop.f32.mrf.mxu2  ;;  %v1876_v16 = vpop.f32.mrf.mxu3 }
 0x2ef   : > { %v1944_v26 = vadd.f32 %v1787_v11, %v6560_v24  ;;  %v1945_v58 = vadd.f32 %v1876_v16, %v6561_v59 }
 0x2f1   : > { %v5583_v60 = vadd.f32 %v2071_v61, %v1944_v26  ;;  %v5585_v47 = vadd.f32 %v2160_v45, %v1945_v58  ;;  %v6568_v61 = vld [vmem:[#allocation54_spill] sm:$0xff]  ;;  %v6569_v26 = vld [vmem:[#allocation32_spill] sm:$0xff]  ;;  %v6570_v58 = vld [vmem:[#allocation39_spill] sm:$0xff] }
 0x2f3   : > { %6562 = vst [vmem:[#allocation65_spill] sm:$0xff] %v5583_v60 }
 0x2f4   : > { %6563 = vst [vmem:[#allocation66_spill] sm:$0xff] %v5585_v47  ;;  %v6574_v47 = vld [vmem:[#allocation35_spill] sm:$0xff] }
 0x2f5   : > { %v2076_v42 = vpop.f32.mrf.mxu0  ;;  %v2165_v34 = vpop.f32.mrf.mxu1 }
 0x2f6   : > { %v1789_v49 = vpop.f32.mrf.mxu2  ;;  %v1878_v54 = vpop.f32.mrf.mxu3 }
 0x2f7   : > { %v1946_v27 = vadd.f32 %v1789_v49, %v6564_v23  ;;  %v1947_v63 = vadd.f32 %v1878_v54, %v6565_v20 }
 0x2f8   : > { %3894 = vmatmul.msk.bf16.gmra.mxu0 %vm666_vm3, %v4068_v44  ;;  %3910 = vmatmul.msk.bf16.gmra.mxu1 %vm666_vm3, %v4068_v44 }
 0x2f9   : > { %v5592_v11 = vadd.f32 %v2073_v2, %v1946_v27  ;;  %v5594_v16 = vadd.f32 %v2162_v9, %v1947_v63 }
 0x2fb   : > { %6566 = vst [vmem:[#allocation75_spill] sm:$0xff] %v5592_v11  ;;  %3858 = vmatmul.msk.bf16.gmra.mxu2 %vm666_vm3, %v6568_v61  ;;  %3874 = vmatmul.msk.bf16.gmra.mxu3 %vm666_vm3, %v6568_v61  ;;  %v4069_v61 = vld [vmem:[%s4227_s7 + $0x60] sm:$0xff] }
 0x2fc   : > { %6567 = vst [vmem:[#allocation70_spill] sm:$0xff] %v5594_v16  ;;  %v6573_v16 = vld [vmem:[#allocation34_spill] sm:$0xff] }
 0x2fd   : > { %v2078_v45 = vpop.f32.mrf.mxu0  ;;  %v2167_v23 = vpop.f32.mrf.mxu1 }
 0x2fe   : > { %v1792_v24 = vpop.f32.mrf.mxu2  ;;  %v1881_v20 = vpop.f32.mrf.mxu3 }
 0x2ff   : > { %v1948_v59 = vadd.f32 %v1792_v24, %v6569_v26  ;;  %v1949_v49 = vadd.f32 %v1881_v20, %v6570_v58 }
 0x301   : > { %v5602_v44 = vadd.f32 %v2076_v42, %v1948_v59  ;;  %v5604_v27 = vadd.f32 %v2165_v34, %v1949_v49  ;;  %v6577_v42 = vld [vmem:[#allocation62_spill] sm:$0xff]  ;;  %v6578_v59 = vld [vmem:[#allocation37_spill] sm:$0xff] }
 0x302   : > { %v6579_v49 = vld [vmem:[#allocation38_spill] sm:$0xff] }
 0x303   : > { %6571 = vst [vmem:[#allocation71_spill] sm:$0xff] %v5602_v44 }
 0x304   : > { %6572 = vst [vmem:[#allocation73_spill] sm:$0xff] %v5604_v27  ;;  %v6581_v27 = vld [vmem:[#allocation40_spill] sm:$0xff] }
 0x305   : > { %v2081_v63 = vpop.f32.mrf.mxu0  ;;  %v2170_v2 = vpop.f32.mrf.mxu1 }
 0x306   : > { %v1794_v9 = vpop.f32.mrf.mxu2  ;;  %v1883_v54 = vpop.f32.mrf.mxu3 }
 0x307   : > { %v1950_v11 = vadd.f32 %v1794_v9, %v6573_v16  ;;  %v1951_v60 = vadd.f32 %v1883_v54, %v6574_v47 }
 0x308   : > { %3895 = vmatmul.msk.bf16.gmra.mxu0 %vm666_vm3, %v4069_v61  ;;  %3911 = vmatmul.msk.bf16.gmra.mxu1 %vm666_vm3, %v4069_v61 }
 0x309   : > { %v5611_v24 = vadd.f32 %v2078_v45, %v1950_v11  ;;  %v5613_v20 = vadd.f32 %v2167_v23, %v1951_v60 }
 0x30b   : > { %6575 = vst [vmem:[#allocation74_spill] sm:$0xff] %v5611_v24  ;;  %3859 = vmatmul.msk.bf16.gmra.mxu2 %vm666_vm3, %v6577_v42  ;;  %3875 = vmatmul.msk.bf16.gmra.mxu3 %vm666_vm3, %v6577_v42  ;;  %v4070_v42 = vld [vmem:[%s4227_s7 + $0x6c] sm:$0xff] }
 0x30c   : > { %6576 = vst [vmem:[#allocation24_spill] sm:$0xff] %v5613_v20  ;;  %v6580_v20 = vld [vmem:[#allocation45_spill] sm:$0xff] }
 0x30d   : > { %v2083_v34 = vpop.f32.mrf.mxu0  ;;  %v2172_v16 = vpop.f32.mrf.mxu1 }
 0x30e   : > { %v1797_v26 = vpop.f32.mrf.mxu2  ;;  %v1886_v47 = vpop.f32.mrf.mxu3 }
 0x30f   : > { %v1952_v58 = vadd.f32 %v1797_v26, %v6578_v59  ;;  %v1953_v9 = vadd.f32 %v1886_v47, %v6579_v49 }
 0x311   : > { %v5621_v61 = vadd.f32 %v2081_v63, %v1952_v58  ;;  %v5623_v11 = vadd.f32 %v2170_v2, %v1953_v9  ;;  %v6583_v63 = vld [vmem:[#allocation72_spill] sm:$0xff] }
 0x315   : > { %v2086_v60 = vpop.f32.mrf.mxu0  ;;  %v2175_v45 = vpop.f32.mrf.mxu1 }
 0x316   : > { %v1799_v23 = vpop.f32.mrf.mxu2  ;;  %v1888_v54 = vpop.f32.mrf.mxu3 }
 0x317   : > { %v1954_v24 = vadd.f32 %v1799_v23, %v6580_v20  ;;  %v1955_v44 = vadd.f32 %v1888_v54, %v6581_v27 }
 0x318   : > { %3896 = vmatmul.msk.bf16.gmra.mxu0 %vm666_vm3, %v4070_v42  ;;  %3912 = vmatmul.msk.bf16.gmra.mxu1 %vm666_vm3, %v4070_v42 }
 0x319   : > { %v5630_v26 = vadd.f32 %v2083_v34, %v1954_v24  ;;  %v5632_v47 = vadd.f32 %v2172_v16, %v1955_v44 }
 0x31b   : > { %6582 = vst [vmem:[#allocation30_spill] sm:$0xff] %v5632_v47  ;;  %3860 = vmatmul.msk.bf16.gmra.mxu2 %vm666_vm3, %v6583_v63  ;;  %3876 = vmatmul.msk.bf16.gmra.mxu3 %vm666_vm3, %v6583_v63  ;;  %v4071_v47 = vld [vmem:[%s4227_s7 + $0x78] sm:$0xff] }
 0x31d   : > { %v2088_v2 = vpop.f32.mrf.mxu0  ;;  %v2177_v20 = vpop.f32.mrf.mxu1 }
 0x31e   : > { %v1802_v59 = vpop.f32.mrf.mxu2  ;;  %v1891_v27 = vpop.f32.mrf.mxu3 }
 0x31f   : > { %v1956_v58 = vadd.f32 %v1802_v59, %v5295_v52  ;;  %v1957_v49 = vadd.f32 %v1891_v27, %v5297_v55 }
 0x321   : > { %v5640_v42 = vadd.f32 %v2086_v60, %v1956_v58  ;;  %v5642_v24 = vadd.f32 %v2175_v45, %v1957_v49  ;;  %v6585_v60 = vld [vmem:[#allocation76_spill] sm:$0xff] }
 0x325   : > { %v2541_v44 = vpop.f32.mrf.mxu0  ;;  %v2630_v34 = vpop.f32.mrf.mxu1 }
 0x326   : > { %v1804_v16 = vpop.f32.mrf.mxu2  ;;  %v1893_v9 = vpop.f32.mrf.mxu3 }
 0x327   : > { %v1958_v23 = vadd.f32 %v1804_v16, %v5305_v19  ;;  %v1959_v54 = vadd.f32 %v1893_v9, %v5307_v31 }
 0x328   : > { %3897 = vmatmul.msk.bf16.gmra.mxu0 %vm666_vm3, %v4071_v47  ;;  %3913 = vmatmul.msk.bf16.gmra.mxu1 %vm666_vm3, %v4071_v47 }
 0x329   : > { %v5649_v52 = vadd.f32 %v2088_v2, %v1958_v23  ;;  %v5651_v55 = vadd.f32 %v2177_v20, %v1959_v54 }
 0x32b   : > { %6584 = vst [vmem:[#allocation58_spill] sm:$0xff] %v5651_v55  ;;  %3861 = vmatmul.msk.bf16.gmra.mxu2 %vm666_vm3, %v6585_v60  ;;  %3877 = vmatmul.msk.bf16.gmra.mxu3 %vm666_vm3, %v6585_v60  ;;  %v4072_v55 = vld [vmem:[%s4227_s7 + $0x84] sm:$0xff] }
 0x32d   : > { %v2543_v45 = vpop.f32.mrf.mxu0  ;;  %v2632_v19 = vpop.f32.mrf.mxu1 }
 0x32e   : > { %v2279_v59 = vpop.f32.mrf.mxu2  ;;  %v2368_v31 = vpop.f32.mrf.mxu3 }
 0x32f   : > { %v2448_v27 = vadd.f32 %v2279_v59, %v5315_v48  ;;  %v2449_v58 = vadd.f32 %v2368_v31, %v5317_v5 }
 0x331   : > { %v5659_v47 = vadd.f32 %v2541_v44, %v2448_v27  ;;  %v5661_v2 = vadd.f32 %v2630_v34, %v2449_v58  ;;  %v6587_v44 = vld [vmem:[#allocation77_spill] sm:$0xff] }
 0x335   : > { %v2546_v20 = vpop.f32.mrf.mxu0  ;;  %v2635_v49 = vpop.f32.mrf.mxu1 }
 0x336   : > { %v2281_v16 = vpop.f32.mrf.mxu2  ;;  %v2370_v9 = vpop.f32.mrf.mxu3 }
 0x337   : > { %v2450_v23 = vadd.f32 %v2281_v16, %v5325_v4  ;;  %v2451_v54 = vadd.f32 %v2370_v9, %v5327_v46 }
 0x338   : > { %3898 = vmatmul.msk.bf16.gmra.mxu0 %vm666_vm3, %v4072_v55  ;;  %3914 = vmatmul.msk.bf16.gmra.mxu1 %vm666_vm3, %v4072_v55 }
 0x339   : > { %v5668_v48 = vadd.f32 %v2543_v45, %v2450_v23  ;;  %v5670_v5 = vadd.f32 %v2632_v19, %v2451_v54 }
 0x33b   : > { %6586 = vst [vmem:[#allocation59_spill] sm:$0xff] %v5670_v5  ;;  %3862 = vmatmul.msk.bf16.gmra.mxu2 %vm666_vm3, %v6587_v44  ;;  %3878 = vmatmul.msk.bf16.gmra.mxu3 %vm666_vm3, %v6587_v44  ;;  %v4073_v5 = vld [vmem:[%s4227_s7 + $0x90] sm:$0xff] }
 0x33d   : > { %v2548_v34 = vpop.f32.mrf.mxu0  ;;  %v2637_v4 = vpop.f32.mrf.mxu1 }
 0x33e   : > { %v2284_v59 = vpop.f32.mrf.mxu2  ;;  %v2373_v46 = vpop.f32.mrf.mxu3 }
 0x33f   : > { %v2452_v31 = vadd.f32 %v2284_v59, %v5335_v21  ;;  %v2453_v27 = vadd.f32 %v2373_v46, %v5337_v41 }
 0x341   : > { %v5678_v55 = vadd.f32 %v2546_v20, %v2452_v31  ;;  %v5680_v45 = vadd.f32 %v2635_v49, %v2453_v27  ;;  %v6589_v20 = vld [vmem:[#allocation78_spill] sm:$0xff] }
 0x345   : > { %v2551_v19 = vpop.f32.mrf.mxu0  ;;  %v2640_v58 = vpop.f32.mrf.mxu1 }
 0x346   : > { %v2286_v16 = vpop.f32.mrf.mxu2  ;;  %v2375_v9 = vpop.f32.mrf.mxu3 }
 0x347   : > { %v2454_v23 = vadd.f32 %v2286_v16, %v5345_v38  ;;  %v2455_v54 = vadd.f32 %v2375_v9, %v5347_v1 }
 0x348   : > { %3899 = vmatmul.msk.bf16.gmra.mxu0 %vm666_vm3, %v4073_v5  ;;  %3915 = vmatmul.msk.bf16.gmra.mxu1 %vm666_vm3, %v4073_v5 }
 0x349   : > { %v5687_v21 = vadd.f32 %v2548_v34, %v2454_v23  ;;  %v5689_v41 = vadd.f32 %v2637_v4, %v2455_v54 }
 0x34b   : > { %6588 = vst [vmem:[#allocation63_spill] sm:$0xff] %v5689_v41  ;;  %3863 = vmatmul.msk.bf16.gmra.mxu2 %vm666_vm3, %v6589_v20  ;;  %3879 = vmatmul.msk.bf16.gmra.mxu3 %vm666_vm3, %v6589_v20  ;;  %v4074_v41 = vld [vmem:[%s4227_s7 + $0x9c] sm:$0xff] }
 0x34d   : > { %v2553_v49 = vpop.f32.mrf.mxu0  ;;  %v2642_v38 = vpop.f32.mrf.mxu1 }
 0x34e   : > { %v2289_v59 = vpop.f32.mrf.mxu2  ;;  %v2378_v1 = vpop.f32.mrf.mxu3 }
 0x34f   : > { %v2456_v46 = vadd.f32 %v2289_v59, %v5355_v57  ;;  %v2457_v31 = vadd.f32 %v2378_v1, %v5357_v43 }
 0x351   : > { %v5697_v5 = vadd.f32 %v2551_v19, %v2456_v46  ;;  %v5699_v34 = vadd.f32 %v2640_v58, %v2457_v31  ;;  %v6591_v19 = vld [vmem:[#allocation79_spill] sm:$0xff] }
 0x355   : > { %v2556_v4 = vpop.f32.mrf.mxu0  ;;  %v2645_v27 = vpop.f32.mrf.mxu1 }
 0x356   : > { %v2291_v16 = vpop.f32.mrf.mxu2  ;;  %v2380_v9 = vpop.f32.mrf.mxu3 }
 0x357   : > { %v2458_v23 = vadd.f32 %v2291_v16, %v5365_v36  ;;  %v2459_v54 = vadd.f32 %v2380_v9, %v5367_v33 }
 0x358   : > { %3900 = vmatmul.msk.bf16.gmra.mxu0 %vm666_vm3, %v4074_v41  ;;  %3916 = vmatmul.msk.bf16.gmra.mxu1 %vm666_vm3, %v4074_v41 }
 0x359   : > { %v5706_v57 = vadd.f32 %v2553_v49, %v2458_v23  ;;  %v5708_v43 = vadd.f32 %v2642_v38, %v2459_v54 }
 0x35b   : > { %6590 = vst [vmem:[#allocation64_spill] sm:$0xff] %v5708_v43  ;;  %3864 = vmatmul.msk.bf16.gmra.mxu2 %vm666_vm3, %v6591_v19  ;;  %3880 = vmatmul.msk.bf16.gmra.mxu3 %vm666_vm3, %v6591_v19  ;;  %v4075_v43 = vld [vmem:[%s4227_s7 + $0xa8] sm:$0xff] }
 0x35d   : > { %v2558_v58 = vpop.f32.mrf.mxu0  ;;  %v2647_v36 = vpop.f32.mrf.mxu1 }
 0x35e   : > { %v2294_v59 = vpop.f32.mrf.mxu2  ;;  %v2383_v33 = vpop.f32.mrf.mxu3 }
 0x35f   : > { %v2460_v1 = vadd.f32 %v2294_v59, %v5375_v8  ;;  %v2461_v46 = vadd.f32 %v2383_v33, %v5377_v37 }
 0x361   : > { %v5716_v41 = vadd.f32 %v2556_v4, %v2460_v1  ;;  %v5718_v49 = vadd.f32 %v2645_v27, %v2461_v46  ;;  %v6595_v4 = vld [vmem:[#allocation80_spill] sm:$0xff] }
 0x363   : > { %6592 = vst [vmem:[#allocation36_spill] sm:$0xff] %v5718_v49  ;;  %v4076_v49 = vld [vmem:[%s4227_s7 + $0xb4] sm:$0xff] }
 0x365   : > { %v2561_v38 = vpop.f32.mrf.mxu0  ;;  %v2650_v31 = vpop.f32.mrf.mxu1 }
 0x366   : > { %v2296_v16 = vpop.f32.mrf.mxu2  ;;  %v2385_v9 = vpop.f32.mrf.mxu3 }
 0x367   : > { %v2462_v23 = vadd.f32 %v2296_v16, %v5385_v51  ;;  %v2463_v54 = vadd.f32 %v2385_v9, %v5387_v53 }
 0x368   : > { %3901 = vmatmul.msk.bf16.gmra.mxu0 %vm666_vm3, %v4075_v43  ;;  %3917 = vmatmul.msk.bf16.gmra.mxu1 %vm666_vm3, %v4075_v43 }
 0x369   : > { %v5725_v8 = vadd.f32 %v2558_v58, %v2462_v23  ;;  %v5727_v37 = vadd.f32 %v2647_v36, %v2463_v54  ;;  %v6596_v23 = vld [vmem:[#allocation44_spill] sm:$0xff] }
 0x36b   : > { %6593 = vst [vmem:[#allocation68_spill] sm:$0xff] %v5725_v8  ;;  %3865 = vmatmul.msk.bf16.gmra.mxu2 %vm666_vm3, %v6595_v4  ;;  %3881 = vmatmul.msk.bf16.gmra.mxu3 %vm666_vm3, %v6595_v4 }
 0x36c   : > { %6594 = vst [vmem:[#allocation69_spill] sm:$0xff] %v5727_v37  ;;  %v6597_v37 = vld [vmem:[#allocation51_spill] sm:$0xff] }
 0x36d   : > { %v2563_v27 = vpop.f32.mrf.mxu0  ;;  %v2652_v51 = vpop.f32.mrf.mxu1 }
 0x36e   : > { %v2299_v59 = vpop.f32.mrf.mxu2  ;;  %v2388_v53 = vpop.f32.mrf.mxu3 }
 0x36f   : > { %v2464_v33 = vadd.f32 %v2299_v59, %v5395_v17  ;;  %v2465_v1 = vadd.f32 %v2388_v53, %v5397_v28 }
 0x371   : > { %v5735_v43 = vadd.f32 %v2561_v38, %v2464_v33  ;;  %v5737_v58 = vadd.f32 %v2650_v31, %v2465_v1  ;;  %v6600_v38 = vld [vmem:[#allocation81_spill] sm:$0xff] }
 0x375   : > { %v2566_v36 = vpop.f32.mrf.mxu0  ;;  %v2655_v46 = vpop.f32.mrf.mxu1 }
 0x376   : > { %v2301_v16 = vpop.f32.mrf.mxu2  ;;  %v2390_v9 = vpop.f32.mrf.mxu3 }
 0x377   : > { %v2466_v54 = vadd.f32 %v2301_v16, %v6596_v23  ;;  %v2467_v8 = vadd.f32 %v2390_v9, %v6597_v37 }
 0x378   : > { %3902 = vmatmul.msk.bf16.gmra.mxu0 %vm666_vm3, %v4076_v49  ;;  %3918 = vmatmul.msk.bf16.gmra.mxu1 %vm666_vm3, %v4076_v49 }
 0x379   : > { %v5744_v17 = vadd.f32 %v2563_v27, %v2466_v54  ;;  %v5746_v28 = vadd.f32 %v2652_v51, %v2467_v8 }
 0x37b   : > { %6598 = vst [vmem:[#allocation7_spill] sm:$0xff] %v5744_v17  ;;  %3866 = vmatmul.msk.bf16.gmra.mxu2 %vm666_vm3, %v6600_v38  ;;  %3882 = vmatmul.msk.bf16.gmra.mxu3 %vm666_vm3, %v6600_v38 }
 0x37c   : > { %6599 = vst [vmem:[#allocation27_spill] sm:$0xff] %v5746_v28 }
 0x37d   : > { %v2568_v31 = vpop.f32.mrf.mxu0  ;;  %v2657_v59 = vpop.f32.mrf.mxu1 }
 0x37e   : > { %v2304_v53 = vpop.f32.mrf.mxu2  ;;  %v2393_v33 = vpop.f32.mrf.mxu3 }
 0x37f   : > { %v2468_v37 = vadd.f32 %v2304_v53, %v5428_v7  ;;  %v2469_v1 = vadd.f32 %v2393_v33, %v5430_v10  ;;  %v6603_v7 = vld [vmem:[#allocation43_spill] sm:$0xff]  ;;  %v6606_v53 = vld [vmem:[#allocation82_spill] sm:$0xff]  ;;  %v6607_v33 = vld [vmem:[#allocation41_spill] sm:$0xff] }
 0x380   : > { %v2247_v10 = vrot.slane %v6603_v7, 5 }
 0x381   : > { %v5754_v16 = vadd.f32 %v2566_v36, %v2468_v37  ;;  %v5756_v49 = vadd.f32 %v2655_v46, %v2469_v1  ;;  %v3852_v37 = vrot.slane %v6607_v33, 9 }
 0x382   : > { %v2249_v1 = vrot.slane %v2247_v10, 4 }
 0x383   : > { %6601 = vst [vmem:[#allocation22_spill] sm:$0xff] %v5754_v16  ;;  %v4008_v16 = vld [vmem:[%s4227_s7 + $0xcc] sm:$0xff] }
 0x384   : > { %6602 = vst [vmem:[#allocation23_spill] sm:$0xff] %v5756_v49 }
 0x385   : > { %v2571_v8 = vpop.f32.mrf.mxu0  ;;  %v2660_v27 = vpop.f32.mrf.mxu1 }
 0x386   : > { %v2306_v51 = vpop.f32.mrf.mxu2  ;;  %v2395_v9 = vpop.f32.mrf.mxu3 }
 0x387   : > { %v2470_v23 = vadd.f32 %v2306_v51, %v5439_v13  ;;  %v2471_v54 = vadd.f32 %v2395_v9, %v5441_v12 }
 0x388   : > { %3903 = vmatmul.msk.bf16.gmra.mxu0 %vm666_vm3, %v5472_v22  ;;  %3919 = vmatmul.msk.bf16.gmra.mxu1 %vm666_vm3, %v5472_v22  ;;  %v2250_v22 = vrot.slane %v5426_v35, 5 }
 0x389   : > { %v5765_v36 = vadd.f32 %v2568_v31, %v2470_v23  ;;  %v5767_v46 = vadd.f32 %v2657_v59, %v2471_v54  ;;  %v2248_v54 = vsel %vm4594_vm7, %v3852_v37, %v2247_v10 }
 0x38a   : > { %v2251_v7 = vsel %vm4594_vm7, %v2249_v1, %v2250_v22  ;;  %v2253_v33 = vunpack.c.l.b16 %v2248_v54 }
 0x38b   : > { %6604 = vst [vmem:[#allocation25_spill] sm:$0xff] %v5765_v36  ;;  %3867 = vmatmul.msk.bf16.gmra.mxu2 %vm666_vm3, %v6606_v53  ;;  %3883 = vmatmul.msk.bf16.gmra.mxu3 %vm666_vm3, %v6606_v53  ;;  %v2254_v49 = vunpack.c.l.b16 %v2251_v7 }
 0x38c   : > { %6605 = vst [vmem:[#allocation26_spill] sm:$0xff] %v5767_v46 }
 0x38d   : > { %v2573_v13 = vpop.f32.mrf.mxu0  ;;  %v2662_v12 = vpop.f32.mrf.mxu1 }
 0x38e   : > { %v2309_v51 = vpop.f32.mrf.mxu2  ;;  %v2398_v9 = vpop.f32.mrf.mxu3 }
 0x38f   : > { %v2472_v31 = vadd.f32 %v2309_v51, %v5461_v3  ;;  %v2473_v59 = vadd.f32 %v2398_v9, %v5463_v18  ;;  %v5788_v51 = vpack.c.b16 %v2254_v49, %v2253_v33 }
 0x391   : > { %v5781_v46 = vadd.f32 %v2571_v8, %v2472_v31  ;;  %v5783_v36 = vadd.f32 %v2660_v27, %v2473_v59 }
 0x395   : > { %v2576_v35 = vpop.f32.mrf.mxu0  ;;  %v2665_v53 = vpop.f32.mrf.mxu1 }
 0x396   : > { %v2311_v28 = vpop.f32.mrf.mxu2  ;;  %v2400_v17 = vpop.f32.mrf.mxu3 }
 0x397   : > { %v2474_v3 = vadd.f32 %v2311_v28, %v5478_v14  ;;  %v2475_v18 = vadd.f32 %v2400_v17, %v5480_v25 }
 0x398   : > { %3904 = vmatmul.msk.bf16.gmra.mxu0 %vm666_vm3, %v4008_v16  ;;  %3920 = vmatmul.msk.bf16.gmra.mxu1 %vm666_vm3, %v4008_v16 }
 0x399   : > { %v5792_v8 = vadd.f32 %v2573_v13, %v2474_v3  ;;  %v5794_v27 = vadd.f32 %v2662_v12, %v2475_v18 }
 0x39b   : > { %3868 = vmatmul.msk.bf16.gmra.mxu2 %vm666_vm3, %v5788_v51  ;;  %3884 = vmatmul.msk.bf16.gmra.mxu3 %vm666_vm3, %v5788_v51 }
 0x39d   : > { %v2578_v10 = vpop.f32.mrf.mxu0  ;;  %v2667_v14 = vpop.f32.mrf.mxu1 }
 0x39e   : > { %v2314_v28 = vpop.f32.mrf.mxu2  ;;  %v2403_v25 = vpop.f32.mrf.mxu3 }
 0x39f   : > { %v2476_v17 = vadd.f32 %v2314_v28, %v5488_v32  ;;  %v2477_v49 = vadd.f32 %v2403_v25, %v5490_v15 }
 0x3a1   : > { %v5802_v37 = vadd.f32 %v2576_v35, %v2476_v17  ;;  %v5804_v16 = vadd.f32 %v2665_v53, %v2477_v49  ;;  %v6609_v53 = vld [vmem:[#allocation9_spill] sm:$0xff]  ;;  %v6610_v17 = vld [vmem:[#allocation11_spill] sm:$0xff] }
 0x3a5   : > { %v2581_v13 = vpop.f32.mrf.mxu0  ;;  %v2670_v12 = vpop.f32.mrf.mxu1 }
 0x3a6   : > { %v2316_v1 = vpop.f32.mrf.mxu2  ;;  %v2405_v22 = vpop.f32.mrf.mxu3 }
 0x3a7   : > { %v2478_v9 = vadd.f32 %v2316_v1, %v5497_v56  ;;  %v2479_v31 = vadd.f32 %v2405_v22, %v5499_v62  ;;  %v6611_v1 = vld [vmem:[#allocation47_spill] sm:$0xff] }
 0x3a8   : > { %3954 = vmatmul.msk.bf16.vlgmr.msra.gmra.mxu0 %vm666_vm3, %v6533_v39  ;;  %3970 = vmatmul.msk.bf16.vlgmr.msra.gmra.mxu1 %vm666_vm3, %v6533_v39 }
 0x3a9   : > { %v5812_v32 = vadd.f32 %v2578_v10, %v2478_v9  ;;  %v5814_v15 = vadd.f32 %v2667_v14, %v2479_v31 }
 0x3ab   : > { %3921 = vmatmul.msk.bf16.vlgmr.msra.gmra.mxu2 %vm666_vm3, %v6609_v53  ;;  %3937 = vmatmul.msk.bf16.vlgmr.msra.gmra.mxu3 %vm666_vm3, %v6609_v53 }
 0x3ad   : > { %v2583_v59 = vpop.f32.mrf.mxu0  ;;  %v2672_v56 = vpop.f32.mrf.mxu1 }
 0x3ae   : > { %v2319_v54 = vpop.f32.mrf.mxu2  ;;  %v2408_v62 = vpop.f32.mrf.mxu3 }
 0x3af   : > { %v2480_v7 = vadd.f32 %v2319_v54, %v5507_v29  ;;  %v2481_v33 = vadd.f32 %v2408_v62, %v5509_v6  ;;  %v6612_v54 = vld [vmem:[#allocation49_spill] sm:$0xff] }
 0x3b1   : > { %v5822_v35 = vadd.f32 %v2581_v13, %v2480_v7  ;;  %v5824_v39 = vadd.f32 %v2670_v12, %v2481_v33  ;;  %v6613_v7 = vld [vmem:[#allocation50_spill] sm:$0xff] }
 0x3b5   : > { %v2586_v3 = vpop.f32.mrf.mxu0  ;;  %v2675_v18 = vpop.f32.mrf.mxu1 }
 0x3b6   : > { %v2321_v10 = vpop.f32.mrf.mxu2  ;;  %v2410_v14 = vpop.f32.mrf.mxu3 }
 0x3b7   : > { %v2482_v28 = vadd.f32 %v2321_v10, %v5516_v40  ;;  %v2483_v25 = vadd.f32 %v2410_v14, %v5518_v0  ;;  %v6614_v10 = vld [vmem:[#allocation42_spill] sm:$0xff] }
 0x3b8   : > { %3955 = vmatmul.msk.bf16.gmra.mxu0 %vm666_vm3, %v6541_v50  ;;  %3971 = vmatmul.msk.bf16.gmra.mxu1 %vm666_vm3, %v6541_v50 }
 0x3b9   : > { %v5832_v29 = vadd.f32 %v2583_v59, %v2482_v28  ;;  %v5834_v6 = vadd.f32 %v2672_v56, %v2483_v25 }
 0x3bb   : > { %3922 = vmatmul.msk.bf16.gmra.mxu2 %vm666_vm3, %v6610_v17  ;;  %3938 = vmatmul.msk.bf16.gmra.mxu3 %vm666_vm3, %v6610_v17 }
 0x3bd   : > { %v2588_v49 = vpop.f32.mrf.mxu0  ;;  %v2677_v40 = vpop.f32.mrf.mxu1 }
 0x3be   : > { %v2324_v13 = vpop.f32.mrf.mxu2  ;;  %v2413_v0 = vpop.f32.mrf.mxu3 }
 0x3bf   : > { %v2484_v12 = vadd.f32 %v2324_v13, %v5526_v30  ;;  %v2485_v22 = vadd.f32 %v2413_v0, %v6611_v1  ;;  %v6616_v13 = vld [vmem:[#allocation57_spill] sm:$0xff] }
 0x3c1   : > { %v5842_v9 = vadd.f32 %v2586_v3, %v2484_v12  ;;  %v5844_v50 = vadd.f32 %v2675_v18, %v2485_v22  ;;  %v6615_v18 = vld [vmem:[#allocation13_spill] sm:$0xff]  ;;  %v6617_v12 = vld [vmem:[#allocation52_spill] sm:$0xff] }
 0x3c5   : > { %v2591_v31 = vpop.f32.mrf.mxu0  ;;  %v2680_v53 = vpop.f32.mrf.mxu1 }
 0x3c6   : > { %v2326_v59 = vpop.f32.mrf.mxu2  ;;  %v2415_v56 = vpop.f32.mrf.mxu3 }
 0x3c7   : > { %v2486_v62 = vadd.f32 %v2326_v59, %v6612_v54  ;;  %v2487_v33 = vadd.f32 %v2415_v56, %v6613_v7 }
 0x3c8   : > { %3956 = vmatmul.msk.bf16.gmra.mxu0 %vm666_vm3, %v6614_v10  ;;  %3972 = vmatmul.msk.bf16.gmra.mxu1 %vm666_vm3, %v6614_v10 }
 0x3c9   : > { %v5852_v30 = vadd.f32 %v2588_v49, %v2486_v62  ;;  %v5854_v3 = vadd.f32 %v2677_v40, %v2487_v33  ;;  %v6620_v62 = vld [vmem:[#allocation53_spill] sm:$0xff]  ;;  %v6621_v33 = vld [vmem:[#allocation55_spill] sm:$0xff] }
 0x3cb   : > { %3923 = vmatmul.msk.bf16.gmra.mxu2 %vm666_vm3, %v6615_v18  ;;  %3939 = vmatmul.msk.bf16.gmra.mxu3 %vm666_vm3, %v6615_v18  ;;  %v6622_v18 = vld [vmem:[#allocation48_spill] sm:$0xff] }
 0x3cd   : > { %v2593_v14 = vpop.f32.mrf.mxu0  ;;  %v2682_v28 = vpop.f32.mrf.mxu1 }
 0x3ce   : > { %v2329_v25 = vpop.f32.mrf.mxu2  ;;  %v2418_v17 = vpop.f32.mrf.mxu3 }
 0x3cf   : > { %v2488_v0 = vadd.f32 %v2329_v25, %v6616_v13  ;;  %v2489_v1 = vadd.f32 %v2418_v17, %v6617_v12 }
 0x3d1   : > { %v5862_v22 = vadd.f32 %v2591_v31, %v2488_v0  ;;  %v5864_v49 = vadd.f32 %v2680_v53, %v2489_v1  ;;  %v6625_v53 = vld [vmem:[#allocation15_spill] sm:$0xff]  ;;  %v6626_v1 = vld [vmem:[#allocation56_spill] sm:$0xff] }
 0x3d3   : > { %6618 = vst [vmem:[#allocation33_spill] sm:$0xff] %v5862_v22  ;;  %v6632_v22 = vld [vmem:[#allocation54_spill] sm:$0xff] }
 0x3d4   : > { %6619 = vst [vmem:[#allocation28_spill] sm:$0xff] %v5864_v49  ;;  %v6631_v49 = vld [vmem:[#allocation61_spill] sm:$0xff] }
 0x3d5   : > { %v2596_v40 = vpop.f32.mrf.mxu0  ;;  %v2685_v59 = vpop.f32.mrf.mxu1 }
 0x3d6   : > { %v2331_v56 = vpop.f32.mrf.mxu2  ;;  %v2420_v54 = vpop.f32.mrf.mxu3 }
 0x3d7   : > { %v2490_v7 = vadd.f32 %v2331_v56, %v6620_v62  ;;  %v2491_v10 = vadd.f32 %v2420_v54, %v6621_v33  ;;  %v6627_v54 = vld [vmem:[#allocation67_spill] sm:$0xff] }
 0x3d8   : > { %3957 = vmatmul.msk.bf16.gmra.mxu0 %vm666_vm3, %v6622_v18  ;;  %3973 = vmatmul.msk.bf16.gmra.mxu1 %vm666_vm3, %v6622_v18 }
 0x3d9   : > { %v5872_v25 = vadd.f32 %v2593_v14, %v2490_v7  ;;  %v5874_v31 = vadd.f32 %v2682_v28, %v2491_v10 }
 0x3db   : > { %6623 = vst [vmem:[#allocation29_spill] sm:$0xff] %v5872_v25  ;;  %3924 = vmatmul.msk.bf16.gmra.mxu2 %vm666_vm3, %v6625_v53  ;;  %3940 = vmatmul.msk.bf16.gmra.mxu3 %vm666_vm3, %v6625_v53 }
 0x3dc   : > { %6624 = vst [vmem:[#allocation31_spill] sm:$0xff] %v5874_v31  ;;  %v6630_v31 = vld [vmem:[#allocation60_spill] sm:$0xff] }
 0x3dd   : > { %v2598_v17 = vpop.f32.mrf.mxu0  ;;  %v2687_v13 = vpop.f32.mrf.mxu1 }
 0x3de   : > { %v2334_v0 = vpop.f32.mrf.mxu2  ;;  %v2423_v12 = vpop.f32.mrf.mxu3 }
 0x3df   : > { %v2492_v56 = vadd.f32 %v2334_v0, %v6626_v1  ;;  %v2493_v62 = vadd.f32 %v2423_v12, %v6627_v54 }
 0x3e1   : > { %v5882_v33 = vadd.f32 %v2596_v40, %v2492_v56  ;;  %v5884_v14 = vadd.f32 %v2685_v59, %v2493_v62  ;;  %v6635_v59 = vld [vmem:[#allocation17_spill] sm:$0xff]  ;;  %v6637_v62 = vld [vmem:[#allocation66_spill] sm:$0xff] }
 0x3e2   : > { %v6636_v56 = vld [vmem:[#allocation65_spill] sm:$0xff] }
 0x3e3   : > { %6628 = vst [vmem:[#allocation32_spill] sm:$0xff] %v5882_v33  ;;  %v6641_v33 = vld [vmem:[#allocation62_spill] sm:$0xff] }
 0x3e4   : > { %6629 = vst [vmem:[#allocation39_spill] sm:$0xff] %v5884_v14  ;;  %v6640_v14 = vld [vmem:[#allocation70_spill] sm:$0xff] }
 0x3e5   : > { %v2601_v28 = vpop.f32.mrf.mxu0  ;;  %v2690_v7 = vpop.f32.mrf.mxu1 }
 0x3e6   : > { %v2336_v10 = vpop.f32.mrf.mxu2  ;;  %v2425_v18 = vpop.f32.mrf.mxu3 }
 0x3e7   : > { %v2494_v25 = vadd.f32 %v2336_v10, %v6630_v31  ;;  %v2495_v53 = vadd.f32 %v2425_v18, %v6631_v49 }
 0x3e8   : > { %3958 = vmatmul.msk.bf16.gmra.mxu0 %vm666_vm3, %v6632_v22  ;;  %3974 = vmatmul.msk.bf16.gmra.mxu1 %vm666_vm3, %v6632_v22 }
 0x3e9   : > { %v5892_v0 = vadd.f32 %v2598_v17, %v2494_v25  ;;  %v5894_v40 = vadd.f32 %v2687_v13, %v2495_v53 }
 0x3eb   : > { %6633 = vst [vmem:[#allocation34_spill] sm:$0xff] %v5892_v0  ;;  %3925 = vmatmul.msk.bf16.gmra.mxu2 %vm666_vm3, %v6635_v59  ;;  %3941 = vmatmul.msk.bf16.gmra.mxu3 %vm666_vm3, %v6635_v59 }
 0x3ec   : > { %6634 = vst [vmem:[#allocation35_spill] sm:$0xff] %v5894_v40  ;;  %v6639_v40 = vld [vmem:[#allocation75_spill] sm:$0xff] }
 0x3ed   : > { %v2603_v12 = vpop.f32.mrf.mxu0  ;;  %v2692_v31 = vpop.f32.mrf.mxu1 }
 0x3ee   : > { %v2339_v1 = vpop.f32.mrf.mxu2  ;;  %v2428_v49 = vpop.f32.mrf.mxu3 }
 0x3ef   : > { %v2496_v54 = vadd.f32 %v2339_v1, %v6636_v56  ;;  %v2497_v10 = vadd.f32 %v2428_v49, %v6637_v62 }
 0x3f1   : > { %v5902_v18 = vadd.f32 %v2601_v28, %v2496_v54  ;;  %v5904_v22 = vadd.f32 %v2690_v7, %v2497_v10  ;;  %v6644_v7 = vld [vmem:[#allocation19_spill] sm:$0xff]  ;;  %v6646_v10 = vld [vmem:[#allocation73_spill] sm:$0xff] }
 0x3f2   : > { %v6645_v54 = vld [vmem:[#allocation71_spill] sm:$0xff] }
 0x3f3   : > { %6638 = vst [vmem:[#allocation37_spill] sm:$0xff] %v5904_v22  ;;  %v6648_v22 = vld [vmem:[#allocation24_spill] sm:$0xff] }
 0x3f5   : > { %v2606_v25 = vpop.f32.mrf.mxu0  ;;  %v2695_v17 = vpop.f32.mrf.mxu1 }
 0x3f6   : > { %v2341_v13 = vpop.f32.mrf.mxu2  ;;  %v2430_v53 = vpop.f32.mrf.mxu3 }
 0x3f7   : > { %v2498_v0 = vadd.f32 %v2341_v13, %v6639_v40  ;;  %v2499_v59 = vadd.f32 %v2430_v53, %v6640_v14 }
 0x3f8   : > { %3959 = vmatmul.msk.bf16.gmra.mxu0 %vm666_vm3, %v6641_v33  ;;  %3975 = vmatmul.msk.bf16.gmra.mxu1 %vm666_vm3, %v6641_v33 }
 0x3f9   : > { %v5912_v1 = vadd.f32 %v2603_v12, %v2498_v0  ;;  %v5914_v28 = vadd.f32 %v2692_v31, %v2499_v59 }
 0x3fb   : > { %6642 = vst [vmem:[#allocation38_spill] sm:$0xff] %v5912_v1  ;;  %3926 = vmatmul.msk.bf16.gmra.mxu2 %vm666_vm3, %v6644_v7  ;;  %3942 = vmatmul.msk.bf16.gmra.mxu3 %vm666_vm3, %v6644_v7 }
 0x3fc   : > { %6643 = vst [vmem:[#allocation45_spill] sm:$0xff] %v5914_v28  ;;  %v6647_v28 = vld [vmem:[#allocation74_spill] sm:$0xff] }
 0x3fd   : > { %v2608_v49 = vpop.f32.mrf.mxu0  ;;  %v2697_v40 = vpop.f32.mrf.mxu1 }
 0x3fe   : > { %v2344_v56 = vpop.f32.mrf.mxu2  ;;  %v2433_v14 = vpop.f32.mrf.mxu3 }
 0x3ff   : > { %v2500_v62 = vadd.f32 %v2344_v56, %v6645_v54  ;;  %v2501_v13 = vadd.f32 %v2433_v14, %v6646_v10 }
 0x401   : > { %v5922_v53 = vadd.f32 %v2606_v25, %v2500_v62  ;;  %v5924_v33 = vadd.f32 %v2695_v17, %v2501_v13  ;;  %v6649_v17 = vld [vmem:[#allocation6_spill] sm:$0xff] }
 0x405   : > { %v2611_v0 = vpop.f32.mrf.mxu0  ;;  %v2700_v12 = vpop.f32.mrf.mxu1 }
 0x406   : > { %v2346_v31 = vpop.f32.mrf.mxu2  ;;  %v2435_v59 = vpop.f32.mrf.mxu3 }
 0x407   : > { %v2502_v1 = vadd.f32 %v2346_v31, %v6647_v28  ;;  %v2503_v7 = vadd.f32 %v2435_v59, %v6648_v22 }
 0x408   : > { %3960 = vmatmul.msk.bf16.gmra.mxu0 %vm666_vm3, %v6583_v63  ;;  %3976 = vmatmul.msk.bf16.gmra.mxu1 %vm666_vm3, %v6583_v63 }
 0x409   : > { %v5932_v56 = vadd.f32 %v2608_v49, %v2502_v1  ;;  %v5934_v25 = vadd.f32 %v2697_v40, %v2503_v7  ;;  %v6650_v7 = vld [vmem:[#allocation30_spill] sm:$0xff] }
 0x40b   : > { %3927 = vmatmul.msk.bf16.gmra.mxu2 %vm666_vm3, %v6649_v17  ;;  %3943 = vmatmul.msk.bf16.gmra.mxu3 %vm666_vm3, %v6649_v17 }
 0x40d   : > { %v2613_v14 = vpop.f32.mrf.mxu0  ;;  %v2702_v28 = vpop.f32.mrf.mxu1 }
 0x40e   : > { %v2349_v54 = vpop.f32.mrf.mxu2  ;;  %v2438_v22 = vpop.f32.mrf.mxu3 }
 0x40f   : > { %v2504_v62 = vadd.f32 %v2349_v54, %v5621_v61  ;;  %v2505_v10 = vadd.f32 %v2438_v22, %v5623_v11 }
 0x411   : > { %v5942_v13 = vadd.f32 %v2611_v0, %v2504_v62  ;;  %v5944_v63 = vadd.f32 %v2700_v12, %v2505_v10  ;;  %v6651_v0 = vld [vmem:[#allocation8_spill] sm:$0xff] }
 0x415   : > { %v2616_v1 = vpop.f32.mrf.mxu0  ;;  %v2705_v49 = vpop.f32.mrf.mxu1 }
 0x416   : > { %v2351_v40 = vpop.f32.mrf.mxu2  ;;  %v2440_v31 = vpop.f32.mrf.mxu3 }
 0x417   : > { %v2506_v59 = vadd.f32 %v2351_v40, %v5630_v26  ;;  %v2507_v17 = vadd.f32 %v2440_v31, %v6650_v7 }
 0x418   : > { %3961 = vmatmul.msk.bf16.gmra.mxu0 %vm666_vm3, %v6585_v60  ;;  %3977 = vmatmul.msk.bf16.gmra.mxu1 %vm666_vm3, %v6585_v60 }
 0x419   : > { %v5952_v61 = vadd.f32 %v2613_v14, %v2506_v59  ;;  %v5954_v11 = vadd.f32 %v2702_v28, %v2507_v17  ;;  %v6653_v17 = vld [vmem:[#allocation58_spill] sm:$0xff] }
 0x41b   : > { %3928 = vmatmul.msk.bf16.gmra.mxu2 %vm666_vm3, %v6651_v0  ;;  %3944 = vmatmul.msk.bf16.gmra.mxu3 %vm666_vm3, %v6651_v0 }
 0x41d   : > { %v2618_v12 = vpop.f32.mrf.mxu0  ;;  %v2707_v26 = vpop.f32.mrf.mxu1 }
 0x41e   : > { %v2354_v54 = vpop.f32.mrf.mxu2  ;;  %v2443_v22 = vpop.f32.mrf.mxu3 }
 0x41f   : > { %v2508_v62 = vadd.f32 %v2354_v54, %v5640_v42  ;;  %v2509_v10 = vadd.f32 %v2443_v22, %v5642_v24 }
 0x421   : > { %v5962_v40 = vadd.f32 %v2616_v1, %v2508_v62  ;;  %v5964_v60 = vadd.f32 %v2705_v49, %v2509_v10  ;;  %v6656_v1 = vld [vmem:[#allocation10_spill] sm:$0xff] }
 0x423   : > { %6652 = vst [vmem:[#allocation40_spill] sm:$0xff] %v5964_v60 }
 0x425   : > { %v3093_v14 = vpop.f32.mrf.mxu0  ;;  %v3182_v28 = vpop.f32.mrf.mxu1 }
 0x426   : > { %v2356_v31 = vpop.f32.mrf.mxu2  ;;  %v2445_v59 = vpop.f32.mrf.mxu3 }
 0x427   : > { %v2510_v7 = vadd.f32 %v2356_v31, %v5649_v52  ;;  %v2511_v0 = vadd.f32 %v2445_v59, %v6653_v17  ;;  %v3326_v52 = vld [vmem:[%s6251_s2] sm:$0x3] }
 0x428   : > { %3962 = vmatmul.msk.bf16.gmra.mxu0 %vm666_vm3, %v6587_v44  ;;  %3978 = vmatmul.msk.bf16.gmra.mxu1 %vm666_vm3, %v6587_v44  ;;  %v5987_v10 = vperm.slane %v3326_v52, 1 }
 0x429   : > { %v5972_v42 = vadd.f32 %v2618_v12, %v2510_v7  ;;  %v5974_v24 = vadd.f32 %v2707_v26, %v2511_v0  ;;  %v5984_v12 = vperm.slane %v3326_v52, 0  ;;  %v6657_v52 = vld [vmem:[#allocation59_spill] sm:$0xff] }
 0x42b   : > { %6654 = vst [vmem:[#allocation72_spill] sm:$0xff] %v5972_v42  ;;  %3929 = vmatmul.msk.bf16.gmra.mxu2 %vm666_vm3, %v6656_v1  ;;  %3945 = vmatmul.msk.bf16.gmra.mxu3 %vm666_vm3, %v6656_v1 }
 0x42c   : > { %6655 = vst [vmem:[#allocation76_spill] sm:$0xff] %v5974_v24 }
 0x42d   : > { %v3095_v49 = vpop.f32.mrf.mxu0  ;;  %v3184_v54 = vpop.f32.mrf.mxu1 }
 0x42e   : > { %v2825_v22 = vpop.f32.mrf.mxu2  ;;  %v2914_v62 = vpop.f32.mrf.mxu3 }
 0x42f   : > { %v2994_v44 = vadd.f32 %v2825_v22, %v5659_v47  ;;  %v2995_v26 = vadd.f32 %v2914_v62, %v5661_v2 }
 0x431   : > { %v3262_v31 = vadd.f32 %v3093_v14, %v2994_v44  ;;  %v3263_v59 = vadd.f32 %v3182_v28, %v2995_v26 }
 0x433   : > { %v3332_v7 = vadd.f32 %v5984_v12, %v3262_v31  ;;  %v3333_v17 = vadd.f32 %v5987_v10, %v3263_v59 }
 0x435   : > { %v3098_v0 = vpop.f32.mrf.mxu0  ;;  %v3187_v1 = vpop.f32.mrf.mxu1  ;;  %v3396_v24 = vmax.f32 %v3332_v7, 0.0  ;;  %v3397_v42 = vmax.f32 %v3333_v17, 0.0 }
 0x436   : > { %v2827_v47 = vpop.f32.mrf.mxu2  ;;  %v2916_v22 = vpop.f32.mrf.mxu3 }
 0x437   : > { %v3460_v60 = vpack.c.bf16 %v3397_v42, %v3396_v24  ;;  %v2996_v2 = vadd.f32 %v2827_v47, %v5668_v48  ;;  %v2997_v62 = vadd.f32 %v2916_v22, %v6657_v52  ;;  %v6658_v48 = vld [vmem:[#allocation12_spill] sm:$0xff] }
 0x438   : > { %3963 = vmatmul.msk.bf16.gmra.mxu0 %vm666_vm3, %v6589_v20  ;;  %3979 = vmatmul.msk.bf16.gmra.mxu1 %vm666_vm3, %v6589_v20 }
 0x439   : > { %3492 = vst [vmem:[%s6000_s6] sm:$0xff] %v3460_v60  ;;  %v3264_v14 = vadd.f32 %v3095_v49, %v2996_v2  ;;  %v3265_v28 = vadd.f32 %v3184_v54, %v2997_v62 }
 0x43b   : > { %v3334_v44 = vadd.f32 %v5984_v12, %v3264_v14  ;;  %v3335_v42 = vadd.f32 %v5987_v10, %v3265_v28  ;;  %3930 = vmatmul.msk.bf16.gmra.mxu2 %vm666_vm3, %v6658_v48  ;;  %3946 = vmatmul.msk.bf16.gmra.mxu3 %vm666_vm3, %v6658_v48 }
 0x43d   : > { %v3100_v24 = vpop.f32.mrf.mxu0  ;;  %v3189_v26 = vpop.f32.mrf.mxu1  ;;  %v3398_v20 = vmax.f32 %v3334_v44, 0.0  ;;  %v3399_v31 = vmax.f32 %v3335_v42, 0.0 }
 0x43e   : > { %v2830_v59 = vpop.f32.mrf.mxu2  ;;  %v2919_v7 = vpop.f32.mrf.mxu3 }
 0x43f   : > { %v3461_v60 = vpack.c.bf16 %v3399_v31, %v3398_v20  ;;  %v2998_v49 = vadd.f32 %v2830_v59, %v5678_v55  ;;  %v2999_v54 = vadd.f32 %v2919_v7, %v5680_v45  ;;  %v6659_v55 = vld [vmem:[#allocation63_spill] sm:$0xff]  ;;  %v6660_v7 = vld [vmem:[#allocation14_spill] sm:$0xff] }
 0x441   : > { %3493 = vst [vmem:[%s6000_s6 + $0x8] sm:$0xff] %v3461_v60  ;;  %v3266_v17 = vadd.f32 %v3098_v0, %v2998_v49  ;;  %v3267_v47 = vadd.f32 %v3187_v1, %v2999_v54 }
 0x443   : > { %v3336_v22 = vadd.f32 %v5984_v12, %v3266_v17  ;;  %v3337_v2 = vadd.f32 %v5987_v10, %v3267_v47 }
 0x445   : > { %v3103_v52 = vpop.f32.mrf.mxu0  ;;  %v3192_v62 = vpop.f32.mrf.mxu1  ;;  %v3400_v14 = vmax.f32 %v3336_v22, 0.0  ;;  %v3401_v28 = vmax.f32 %v3337_v2, 0.0 }
 0x446   : > { %v2832_v44 = vpop.f32.mrf.mxu2  ;;  %v2921_v42 = vpop.f32.mrf.mxu3 }
 0x447   : > { %v3462_v48 = vpack.c.bf16 %v3401_v28, %v3400_v14  ;;  %v3000_v20 = vadd.f32 %v2832_v44, %v5687_v21  ;;  %v3001_v31 = vadd.f32 %v2921_v42, %v6659_v55 }
 0x448   : > { %3964 = vmatmul.msk.bf16.gmra.mxu0 %vm666_vm3, %v6591_v19  ;;  %3980 = vmatmul.msk.bf16.gmra.mxu1 %vm666_vm3, %v6591_v19 }
 0x449   : > { %3494 = vst [vmem:[%s6000_s6 + $0x10] sm:$0xff] %v3462_v48  ;;  %v3268_v45 = vadd.f32 %v3100_v24, %v3000_v20  ;;  %v3269_v0 = vadd.f32 %v3189_v26, %v3001_v31 }
 0x44b   : > { %v3338_v1 = vadd.f32 %v5984_v12, %v3268_v45  ;;  %v3339_v59 = vadd.f32 %v5987_v10, %v3269_v0  ;;  %3931 = vmatmul.msk.bf16.gmra.mxu2 %vm666_vm3, %v6660_v7  ;;  %3947 = vmatmul.msk.bf16.gmra.mxu3 %vm666_vm3, %v6660_v7  ;;  %v6662_v7 = vld [vmem:[#allocation16_spill] sm:$0xff] }
 0x44d   : > { %v3105_v21 = vpop.f32.mrf.mxu0  ;;  %v3194_v60 = vpop.f32.mrf.mxu1  ;;  %v3402_v49 = vmax.f32 %v3338_v1, 0.0  ;;  %v3403_v54 = vmax.f32 %v3339_v59, 0.0 }
 0x44e   : > { %v2835_v17 = vpop.f32.mrf.mxu2  ;;  %v2924_v19 = vpop.f32.mrf.mxu3 }
 0x44f   : > { %v3463_v47 = vpack.c.bf16 %v3403_v54, %v3402_v49  ;;  %v3002_v24 = vadd.f32 %v2835_v17, %v5697_v5  ;;  %v3003_v26 = vadd.f32 %v2924_v19, %v5699_v34  ;;  %v6661_v5 = vld [vmem:[#allocation64_spill] sm:$0xff] }
 0x451   : > { %3495 = vst [vmem:[%s6000_s6 + $0x18] sm:$0xff] %v3463_v47  ;;  %v3270_v22 = vadd.f32 %v3103_v52, %v3002_v24  ;;  %v3271_v2 = vadd.f32 %v3192_v62, %v3003_v26 }
 0x453   : > { %v3340_v14 = vadd.f32 %v5984_v12, %v3270_v22  ;;  %v3341_v28 = vadd.f32 %v5987_v10, %v3271_v2 }
 0x455   : > { %v3108_v44 = vpop.f32.mrf.mxu0  ;;  %v3197_v42 = vpop.f32.mrf.mxu1  ;;  %v3404_v48 = vmax.f32 %v3340_v14, 0.0  ;;  %v3405_v20 = vmax.f32 %v3341_v28, 0.0 }
 0x456   : > { %v2837_v55 = vpop.f32.mrf.mxu2  ;;  %v2926_v31 = vpop.f32.mrf.mxu3 }
 0x457   : > { %v3464_v45 = vpack.c.bf16 %v3405_v20, %v3404_v48  ;;  %v3004_v0 = vadd.f32 %v2837_v55, %v5706_v57  ;;  %v3005_v1 = vadd.f32 %v2926_v31, %v6661_v5  ;;  %v6664_v5 = vld [vmem:[#allocation68_spill] sm:$0xff] }
 0x458   : > { %3965 = vmatmul.msk.bf16.gmra.mxu0 %vm666_vm3, %v6595_v4  ;;  %3981 = vmatmul.msk.bf16.gmra.mxu1 %vm666_vm3, %v6595_v4 }
 0x459   : > { %3496 = vst [vmem:[%s6000_s6 + $0x20] sm:$0xff] %v3464_v45  ;;  %v3272_v34 = vadd.f32 %v3105_v21, %v3004_v0  ;;  %v3273_v52 = vadd.f32 %v3194_v60, %v3005_v1  ;;  %v6663_v60 = vld [vmem:[#allocation36_spill] sm:$0xff] }
 0x45b   : > { %v3342_v62 = vadd.f32 %v5984_v12, %v3272_v34  ;;  %v3343_v59 = vadd.f32 %v5987_v10, %v3273_v52  ;;  %3932 = vmatmul.msk.bf16.gmra.mxu2 %vm666_vm3, %v6662_v7  ;;  %3948 = vmatmul.msk.bf16.gmra.mxu3 %vm666_vm3, %v6662_v7 }
 0x45d   : > { %v3110_v57 = vpop.f32.mrf.mxu0  ;;  %v3199_v49 = vpop.f32.mrf.mxu1  ;;  %v3406_v54 = vmax.f32 %v3342_v62, 0.0  ;;  %v3407_v17 = vmax.f32 %v3343_v59, 0.0  ;;  %v6666_v59 = vld [vmem:[#allocation18_spill] sm:$0xff] }
 0x45e   : > { %v2840_v19 = vpop.f32.mrf.mxu2  ;;  %v2929_v4 = vpop.f32.mrf.mxu3 }
 0x45f   : > { %v3465_v47 = vpack.c.bf16 %v3407_v17, %v3406_v54  ;;  %v3006_v21 = vadd.f32 %v2840_v19, %v5716_v41  ;;  %v3007_v24 = vadd.f32 %v2929_v4, %v6663_v60  ;;  %v6665_v41 = vld [vmem:[#allocation69_spill] sm:$0xff] }
 0x461   : > { %3497 = vst [vmem:[%s6000_s6 + $0x28] sm:$0xff] %v3465_v47  ;;  %v3274_v26 = vadd.f32 %v3108_v44, %v3006_v21  ;;  %v3275_v22 = vadd.f32 %v3197_v42, %v3007_v24 }
 0x463   : > { %v3344_v2 = vadd.f32 %v5984_v12, %v3274_v26  ;;  %v3345_v14 = vadd.f32 %v5987_v10, %v3275_v22 }
 0x465   : > { %v3113_v28 = vpop.f32.mrf.mxu0  ;;  %v3202_v48 = vpop.f32.mrf.mxu1  ;;  %v3408_v20 = vmax.f32 %v3344_v2, 0.0  ;;  %v3409_v55 = vmax.f32 %v3345_v14, 0.0 }
 0x466   : > { %v2842_v31 = vpop.f32.mrf.mxu2  ;;  %v2931_v45 = vpop.f32.mrf.mxu3 }
 0x467   : > { %v3466_v0 = vpack.c.bf16 %v3409_v55, %v3408_v20  ;;  %v3008_v1 = vadd.f32 %v2842_v31, %v6664_v5  ;;  %v3009_v34 = vadd.f32 %v2931_v45, %v6665_v41 }
 0x468   : > { %3966 = vmatmul.msk.bf16.gmra.mxu0 %vm666_vm3, %v6600_v38  ;;  %3982 = vmatmul.msk.bf16.gmra.mxu1 %vm666_vm3, %v6600_v38 }
 0x469   : > { %3498 = vst [vmem:[%s6000_s6 + $0x30] sm:$0xff] %v3466_v0  ;;  %v3276_v44 = vadd.f32 %v3110_v57, %v3008_v1  ;;  %v3277_v42 = vadd.f32 %v3199_v49, %v3009_v34  ;;  %v6669_v1 = vld [vmem:[#allocation82_spill] sm:$0xff] }
 0x46b   : > { %v3346_v52 = vadd.f32 %v5984_v12, %v3276_v44  ;;  %v3347_v62 = vadd.f32 %v5987_v10, %v3277_v42  ;;  %3933 = vmatmul.msk.bf16.gmra.mxu2 %vm666_vm3, %v6666_v59  ;;  %3949 = vmatmul.msk.bf16.gmra.mxu3 %vm666_vm3, %v6666_v59  ;;  %v6670_v44 = vld [vmem:[#allocation20_spill] sm:$0xff]  ;;  %v221_v42 = vld [vmem:[%s4227_s7 + $0xcc] sm:$0xf] }
 0x46d   : > { %v3115_v7 = vpop.f32.mrf.mxu0  ;;  %v3204_v54 = vpop.f32.mrf.mxu1  ;;  %v3410_v17 = vmax.f32 %v3346_v52, 0.0  ;;  %v3411_v19 = vmax.f32 %v3347_v62, 0.0  ;;  %v222_v52 = vld [vmem:[%s4227_s7 + $0xd0] sm:$0xf] }
 0x46e   : > { %v2845_v4 = vpop.f32.mrf.mxu2  ;;  %v2934_v38 = vpop.f32.mrf.mxu3 }
 0x46f   : > { %v3467_v47 = vpack.c.bf16 %v3411_v19, %v3410_v17  ;;  %v3010_v57 = vadd.f32 %v2845_v4, %v5735_v43  ;;  %v3011_v49 = vadd.f32 %v2934_v38, %v5737_v58  ;;  %v6667_v43 = vld [vmem:[#allocation7_spill] sm:$0xff]  ;;  %v2778_v38 = vshll.u32 %v221_v42, 16 }
 0x470   : > { %v6668_v58 = vld [vmem:[#allocation27_spill] sm:$0xff] }
 0x471   : > { %3499 = vst [vmem:[%s6000_s6 + $0x38] sm:$0xff] %v3467_v47  ;;  %v3278_v21 = vadd.f32 %v3113_v28, %v3010_v57  ;;  %v3279_v60 = vadd.f32 %v3202_v48, %v3011_v49  ;;  %v2784_v47 = vshll.u32 %v222_v52, 16  ;;  %v2788_v57 = vshrl.u32 %v222_v52, 16 }
 0x473   : > { %v3348_v24 = vadd.f32 %v5984_v12, %v3278_v21  ;;  %v3349_v26 = vadd.f32 %v5987_v10, %v3279_v60  ;;  %v6671_v21 = vld [vmem:[#allocation22_spill] sm:$0xff] }
 0x475   : > { %v3118_v22 = vpop.f32.mrf.mxu0  ;;  %v3207_v2 = vpop.f32.mrf.mxu1  ;;  %v3412_v14 = vmax.f32 %v3348_v24, 0.0  ;;  %v3413_v20 = vmax.f32 %v3349_v26, 0.0  ;;  %v6672_v24 = vld [vmem:[#allocation23_spill] sm:$0xff] }
 0x476   : > { %v2847_v55 = vpop.f32.mrf.mxu2  ;;  %v2936_v31 = vpop.f32.mrf.mxu3 }
 0x477   : > { %v3468_v45 = vpack.c.bf16 %v3413_v20, %v3412_v14  ;;  %v3012_v0 = vadd.f32 %v2847_v55, %v6667_v43  ;;  %v3013_v5 = vadd.f32 %v2936_v31, %v6668_v58  ;;  %v2780_v31 = vrot.slane %v2778_v38, 5  ;;  %v6674_v38 = vld [vmem:[#allocation26_spill] sm:$0xff] }
 0x478   : > { %3967 = vmatmul.msk.bf16.gmra.mxu0 %vm666_vm3, %v6669_v1  ;;  %3983 = vmatmul.msk.bf16.gmra.mxu1 %vm666_vm3, %v6669_v1  ;;  %v2790_v43 = vrot.slane %v2788_v57, 4 }
 0x479   : > { %3500 = vst [vmem:[%s6000_s6 + $0x40] sm:$0xff] %v3468_v45  ;;  %v3280_v28 = vadd.f32 %v3115_v7, %v3012_v0  ;;  %v3281_v48 = vadd.f32 %v3204_v54, %v3013_v5  ;;  %v2775_v54 = vshrl.u32 %v221_v42, 16  ;;  %v2786_v45 = vrot.slane %v2784_v47, 5  ;;  %v223_v5 = vld [vmem:[%s4227_s7 + $0xd4] sm:$0x1]  ;;  %s4009_s7 = sshll.u32 %s4184_s16, 8 }
 0x47a   : > { %s3536_s10 = scalar_lea.hbm %s6252_s3, %s4009_s7  ;;  %s3537_s16 = sshll.u32 %s6000_s6, 4  ;;  %s3538_s16 = int_to_ptr.vmem [resolvable:$true] %s3537_s16 }
 0x47b   : > { %v3350_v41 = vadd.f32 %v5984_v12, %v3280_v28  ;;  %v3351_v34 = vadd.f32 %v5987_v10, %v3281_v48  ;;  %3934 = vmatmul.msk.bf16.gmra.mxu2 %vm666_vm3, %v6670_v44  ;;  %3950 = vmatmul.msk.bf16.gmra.mxu3 %vm666_vm3, %v6670_v44  ;;  %v2777_v55 = vrot.slane %v2775_v54, 4  ;;  %v3061_v48 = vrot.slane %v222_v52, 5  ;;  %s3539_s11 = sshll.u32 %s3536_s10, 4  ;;  %s3540_s11 = int_to_ptr.hbm [resolvable:$true] %s3539_s11 }
 0x47c   : > { %v3953_v52 = vrot.slane %v221_v42, 9  ;;  %s4091_s19 = sshra.s32 %s3540_s11, 4  ;;  %s4092_s19 = int_to_ptr.hbm [resolvable:$true] %s4091_s19 }
 0x47d   : > { %v3120_v62 = vpop.f32.mrf.mxu0  ;;  %v3209_v59 = vpop.f32.mrf.mxu1  ;;  %v3414_v17 = vmax.f32 %v3350_v41, 0.0  ;;  %v3415_v19 = vmax.f32 %v3351_v34, 0.0  ;;  %v3063_v57 = vrot.slane %v3061_v48, 4  ;;  %s4093_s20 = scalar_lea.hbm %s4092_s19, 256  ;;  %p4098_p0 = scmp.lt.s32.totalorder %s4092_s19, %s6252_s3 }
 0x47e   : > { %v2850_v4 = vpop.f32.mrf.mxu2  ;;  %v2939_v7 = vpop.f32.mrf.mxu3  ;;  %p4094_p11 = scmp.ne.s32.totalorder %s4092_s19, %s4093_s20  ;;  %p4099_p1 = scmp.lt.s32.totalorder %s4097_s26, %s4093_s20 }
 0x47f   : > { %v3469_v49 = vpack.c.bf16 %v3415_v19, %v3414_v17  ;;  %v3014_v60 = vadd.f32 %v2850_v4, %v6671_v21  ;;  %v3015_v26 = vadd.f32 %v2939_v7, %v6672_v24  ;;  %v2781_v19 = vor.u32 %v2780_v31, %v2777_v55  ;;  %v6673_v7 = vld [vmem:[#allocation25_spill] sm:$0xff]  ;;  %v6675_v31 = vld [vmem:[#allocation46_spill] sm:$0xff] }
 0x480   : > { %p4095_p12 = pnand %p4094_p11, %p4201_p5  ;;  %p4100_p2 = por %p4099_p1, %p4098_p0 }
 0x481   : > { %3501 = vst [vmem:[%s6000_s6 + $0x48] sm:$0xff] %v3469_v49  ;;  %v3282_v14 = vadd.f32 %v3118_v22, %v3014_v60  ;;  %v3283_v20 = vadd.f32 %v3207_v2, %v3015_v26  ;;  %v2791_v22 = vor.u32 %v2790_v43, %v2786_v45  ;;  %v2794_v2 = vshll.u32 %v223_v5, 16 }
 0x482   : > { %v3064_v49 = vrot.slane %v223_v5, 5  ;;  %v2782_v24 = vrot.slane %v2781_v19, 4  ;;  %p4096_p13 = pneg %p4095_p12 }
 0x483   : > { %v3352_v0 = vadd.f32 %v5984_v12, %v3282_v14  ;;  %v3353_v58 = vadd.f32 %v5987_v10, %v3283_v20  ;;  %v2792_v26 = vrot.slane %v2791_v22, 4  ;;  %v2796_v14 = vrot.slane %v2794_v2, 5 }
 0x484   : > { %p4101_p3 = pnand %p4100_p2, %p4096_p13 }
 0x485   : > { %v3123_v1 = vpop.f32.mrf.mxu0  ;;  %v3212_v28 = vpop.f32.mrf.mxu1  ;;  %v3416_v41 = vmax.f32 %v3352_v0, 0.0  ;;  %v3417_v34 = vmax.f32 %v3353_v58, 0.0 }
 0x486   : > { %v2852_v44 = vpop.f32.mrf.mxu2  ;;  %v2941_v17 = vpop.f32.mrf.mxu3 }
 0x487   : > { %v3470_v4 = vpack.c.bf16 %v3417_v34, %v3416_v41  ;;  %v3016_v54 = vadd.f32 %v2852_v44, %v6673_v7  ;;  %v3017_v47 = vadd.f32 %v2941_v17, %v6674_v38  ;;  %v2787_v34 = vsel %vm4258_vm4, %v2782_v24, %v2786_v45 }
 0x488   : > { %3968 = vmatmul.msk.bf16.gmra.mxu0 %vm666_vm3, %v5788_v51  ;;  %3984 = vmatmul.msk.bf16.gmra.mxu1 %vm666_vm3, %v5788_v51  ;;  %v3062_v51 = vsel %vm4594_vm7, %v3953_v52, %v3061_v48  ;;  %v2797_v44 = vsel %vm4258_vm4, %v2792_v26, %v2796_v14  ;;  %v2799_v7 = vunpack.c.l.b16 %v2787_v34 }
 0x489   : > { %3502 = vst [vmem:[%s6000_s6 + $0x50] sm:$0xff] %v3470_v4  ;;  %v3284_v21 = vadd.f32 %v3120_v62, %v3016_v54  ;;  %v3285_v60 = vadd.f32 %v3209_v59, %v3017_v47  ;;  %v3065_v59 = vsel %vm4594_vm7, %v3063_v57, %v3064_v49  ;;  %v3067_v17 = vunpack.c.l.b16 %v3062_v51 }
 0x48a   : > { %v3068_v2 = vunpack.c.l.b16 %v3065_v59  ;;  %v2800_v54 = vunpack.c.l.b16 %v2797_v44 }
 0x48b   : > { %v3354_v20 = vadd.f32 %v5984_v12, %v3284_v21  ;;  %v3355_v55 = vadd.f32 %v5987_v10, %v3285_v60  ;;  %3935 = vmatmul.msk.bf16.gmra.mxu2 %vm666_vm3, %v6675_v31  ;;  %3951 = vmatmul.msk.bf16.gmra.mxu3 %vm666_vm3, %v6675_v31 }
 0x48c   : > { %v3069_v47 = vpack.c.b16 %v3068_v2, %v3067_v17  ;;  %v2801_v24 = vpack.c.b16 %v2800_v54, %v2799_v7 }
 0x48d   : > { %v3125_v42 = vpop.f32.mrf.mxu0  ;;  %v3214_v62 = vpop.f32.mrf.mxu1  ;;  %v3418_v43 = vmax.f32 %v3354_v20, 0.0  ;;  %v3419_v0 = vmax.f32 %v3355_v55, 0.0 }
 0x48e   : > { %v2855_v58 = vpop.f32.mrf.mxu2  ;;  %v2944_v5 = vpop.f32.mrf.mxu3 }
 0x48f   : > { %v3471_v19 = vpack.c.bf16 %v3419_v0, %v3418_v43  ;;  %v3018_v22 = vadd.f32 %v2855_v58, %v5781_v46  ;;  %v3019_v48 = vadd.f32 %v2944_v5, %v5783_v36 }
 0x491   : > { %3503 = vst [vmem:[%s6000_s6 + $0x58] sm:$0xff] %v3471_v19  ;;  %v3286_v23 = vadd.f32 %v3123_v1, %v3018_v22  ;;  %v3287_v4 = vadd.f32 %v3212_v28, %v3019_v48 }
 0x493   : > { %v3356_v38 = vadd.f32 %v5984_v12, %v3286_v23  ;;  %v3357_v45 = vadd.f32 %v5987_v10, %v3287_v4 }
 0x495   : > { %v3128_v52 = vpop.f32.mrf.mxu0  ;;  %v3217_v57 = vpop.f32.mrf.mxu1  ;;  %v3420_v49 = vmax.f32 %v3356_v38, 0.0  ;;  %v3421_v21 = vmax.f32 %v3357_v45, 0.0 }
 0x496   : > { %v2857_v60 = vpop.f32.mrf.mxu2  ;;  %v2946_v46 = vpop.f32.mrf.mxu3 }
 0x497   : > { %v3472_v36 = vpack.c.bf16 %v3421_v21, %v3420_v49  ;;  %v3020_v26 = vadd.f32 %v2857_v60, %v5792_v8  ;;  %v3021_v1 = vadd.f32 %v2946_v46, %v5794_v27 }
 0x498   : > { %3969 = vmatmul.msk.bf16.gmra.mxu0 %vm666_vm3, %v3069_v47  ;;  %3985 = vmatmul.msk.bf16.gmra.mxu1 %vm666_vm3, %v3069_v47 }
 0x499   : > { %3504 = vst [vmem:[%s6000_s6 + $0x60] sm:$0xff] %v3472_v36  ;;  %v3288_v28 = vadd.f32 %v3125_v42, %v3020_v26  ;;  %v3289_v14 = vadd.f32 %v3214_v62, %v3021_v1 }
 0x49b   : > { %v3358_v20 = vadd.f32 %v5984_v12, %v3288_v28  ;;  %v3359_v55 = vadd.f32 %v5987_v10, %v3289_v14  ;;  %3936 = vmatmul.msk.bf16.gmra.mxu2 %vm666_vm3, %v2801_v24  ;;  %3952 = vmatmul.msk.bf16.gmra.mxu3 %vm666_vm3, %v2801_v24 }
 0x49d   : > { %v3130_v31 = vpop.f32.mrf.mxu0  ;;  %v3219_v8 = vpop.f32.mrf.mxu1  ;;  %v3422_v51 = vmax.f32 %v3358_v20, 0.0  ;;  %v3423_v27 = vmax.f32 %v3359_v55, 0.0 }
 0x49e   : > { %v2860_v59 = vpop.f32.mrf.mxu2  ;;  %v2949_v43 = vpop.f32.mrf.mxu3 }
 0x49f   : > { %v3473_v0 = vpack.c.bf16 %v3423_v27, %v3422_v51  ;;  %v3022_v58 = vadd.f32 %v2860_v59, %v5802_v37  ;;  %v3023_v42 = vadd.f32 %v2949_v43, %v5804_v16 }
 0x4a1   : > { %3505 = vst [vmem:[%s6000_s6 + $0x68] sm:$0xff] %v3473_v0  ;;  %v3290_v62 = vadd.f32 %v3128_v52, %v3022_v58  ;;  %v3291_v5 = vadd.f32 %v3217_v57, %v3023_v42 }
 0x4a3   : > { %v3360_v41 = vadd.f32 %v5984_v12, %v3290_v62  ;;  %v3361_v34 = vadd.f32 %v5987_v10, %v3291_v5 }
 0x4a5   : > { %v3133_v44 = vpop.f32.mrf.mxu0  ;;  %v3222_v17 = vpop.f32.mrf.mxu1  ;;  %v3424_v19 = vmax.f32 %v3360_v41, 0.0  ;;  %v3425_v22 = vmax.f32 %v3361_v34, 0.0 }
 0x4a6   : > { %v2862_v48 = vpop.f32.mrf.mxu2  ;;  %v2951_v2 = vpop.f32.mrf.mxu3 }
 0x4a7   : > { %v3474_v23 = vpack.c.bf16 %v3425_v22, %v3424_v19  ;;  %v3024_v4 = vadd.f32 %v2862_v48, %v5812_v32  ;;  %v3025_v37 = vadd.f32 %v2951_v2, %v5814_v15 }
 0x4a9   : > { %3506 = vst [vmem:[%s6000_s6 + $0x70] sm:$0xff] %v3474_v23  ;;  %v3292_v16 = vadd.f32 %v3130_v31, %v3024_v4  ;;  %v3293_v7 = vadd.f32 %v3219_v8, %v3025_v37 }
 0x4ab   : > { %v3362_v54 = vadd.f32 %v5984_v12, %v3292_v16  ;;  %v3363_v38 = vadd.f32 %v5987_v10, %v3293_v7 }
 0x4ad   : > { %v3135_v45 = vpop.f32.mrf.mxu0  ;;  %v3224_v47 = vpop.f32.mrf.mxu1  ;;  %v3426_v52 = vmax.f32 %v3362_v54, 0.0  ;;  %v3427_v57 = vmax.f32 %v3363_v38, 0.0 }
 0x4ae   : > { %v2865_v49 = vpop.f32.mrf.mxu2  ;;  %v2954_v21 = vpop.f32.mrf.mxu3 }
 0x4af   : > { %v3475_v60 = vpack.c.bf16 %v3427_v57, %v3426_v52  ;;  %v3026_v46 = vadd.f32 %v2865_v49, %v5822_v35  ;;  %v3027_v32 = vadd.f32 %v2954_v21, %v5824_v39 }
 0x4b1   : > { %3507 = vst [vmem:[%s6000_s6 + $0x78] sm:$0xff] %v3475_v60  ;;  %v3294_v15 = vadd.f32 %v3133_v44, %v3026_v46  ;;  %v3295_v24 = vadd.f32 %v3222_v17, %v3027_v32 }
 0x4b3   : > { %v3364_v36 = vadd.f32 %v5984_v12, %v3294_v15  ;;  %v3365_v26 = vadd.f32 %v5987_v10, %v3295_v24  ;;  %v6677_v15 = vld [vmem:[#allocation33_spill] sm:$0xff] }
 0x4b5   : > { %v3138_v1 = vpop.f32.mrf.mxu0  ;;  %v3227_v28 = vpop.f32.mrf.mxu1  ;;  %v3428_v14 = vmax.f32 %v3364_v36, 0.0  ;;  %v3429_v20 = vmax.f32 %v3365_v26, 0.0 }
 0x4b6   : > { %v2867_v55 = vpop.f32.mrf.mxu2  ;;  %v2956_v31 = vpop.f32.mrf.mxu3 }
 0x4b7   : > { %v3476_v8 = vpack.c.bf16 %v3429_v20, %v3428_v14  ;;  %v3028_v51 = vadd.f32 %v2867_v55, %v5832_v29  ;;  %v3029_v35 = vadd.f32 %v2956_v31, %v5834_v6 }
 0x4b9   : > { %3508 = vst [vmem:[%s6000_s6 + $0x80] sm:$0xff] %v3476_v8  ;;  %v3296_v39 = vadd.f32 %v3135_v45, %v3028_v51  ;;  %v3297_v27 = vadd.f32 %v3224_v47, %v3029_v35 }
 0x4bb   : > { %v3366_v59 = vadd.f32 %v5984_v12, %v3296_v39  ;;  %v3367_v43 = vadd.f32 %v5987_v10, %v3297_v27  ;;  %v6679_v39 = vld [vmem:[#allocation29_spill] sm:$0xff] }
 0x4bd   : > { %v3140_v0 = vpop.f32.mrf.mxu0  ;;  %v3229_v58 = vpop.f32.mrf.mxu1  ;;  %v3430_v42 = vmax.f32 %v3366_v59, 0.0  ;;  %v3431_v62 = vmax.f32 %v3367_v43, 0.0  ;;  %v6680_v59 = vld [vmem:[#allocation31_spill] sm:$0xff] }
 0x4be   : > { %v2870_v5 = vpop.f32.mrf.mxu2  ;;  %v2959_v41 = vpop.f32.mrf.mxu3 }
 0x4bf   : > { %v3477_v34 = vpack.c.bf16 %v3431_v62, %v3430_v42  ;;  %v3030_v44 = vadd.f32 %v2870_v5, %v5842_v9  ;;  %v3031_v29 = vadd.f32 %v2959_v41, %v5844_v50 }
 0x4c1   : > { %3509 = vst [vmem:[%s6000_s6 + $0x88] sm:$0xff] %v3477_v34  ;;  %v3298_v6 = vadd.f32 %v3138_v1, %v3030_v44  ;;  %v3299_v17 = vadd.f32 %v3227_v28, %v3031_v29 }
 0x4c3   : > { %v3368_v19 = vadd.f32 %v5984_v12, %v3298_v6  ;;  %v3369_v22 = vadd.f32 %v5987_v10, %v3299_v17 }
 0x4c5   : > { %v3143_v48 = vpop.f32.mrf.mxu0  ;;  %v3232_v2 = vpop.f32.mrf.mxu1  ;;  %v3432_v23 = vmax.f32 %v3368_v19, 0.0  ;;  %v3433_v4 = vmax.f32 %v3369_v22, 0.0  ;;  %v6681_v19 = vld [vmem:[#allocation32_spill] sm:$0xff] }
 0x4c6   : > { %v2872_v37 = vpop.f32.mrf.mxu2  ;;  %v2961_v16 = vpop.f32.mrf.mxu3 }
 0x4c7   : > { %v3478_v7 = vpack.c.bf16 %v3433_v4, %v3432_v23  ;;  %v3032_v54 = vadd.f32 %v2872_v37, %v5852_v30  ;;  %v3033_v9 = vadd.f32 %v2961_v16, %v5854_v3  ;;  %v6678_v30 = vld [vmem:[#allocation28_spill] sm:$0xff] }
 0x4c9   : > { %3510 = vst [vmem:[%s6000_s6 + $0x90] sm:$0xff] %v3478_v7  ;;  %v3300_v50 = vadd.f32 %v3140_v0, %v3032_v54  ;;  %v3301_v38 = vadd.f32 %v3229_v58, %v3033_v9 }
 0x4cb   : > { %v3370_v45 = vadd.f32 %v5984_v12, %v3300_v50  ;;  %v3371_v47 = vadd.f32 %v5987_v10, %v3301_v38 }
 0x4cd   : > { %v3145_v52 = vpop.f32.mrf.mxu0  ;;  %v3234_v57 = vpop.f32.mrf.mxu1  ;;  %v3434_v49 = vmax.f32 %v3370_v45, 0.0  ;;  %v3435_v21 = vmax.f32 %v3371_v47, 0.0 }
 0x4ce   : > { %v2875_v60 = vpop.f32.mrf.mxu2  ;;  %v2964_v46 = vpop.f32.mrf.mxu3 }
 0x4cf   : > { %v3479_v32 = vpack.c.bf16 %v3435_v21, %v3434_v49  ;;  %v3034_v24 = vadd.f32 %v2875_v60, %v6677_v15  ;;  %v3035_v36 = vadd.f32 %v2964_v46, %v6678_v30  ;;  %v6684_v49 = vld [vmem:[#allocation35_spill] sm:$0xff] }
 0x4d1   : > { %3511 = vst [vmem:[%s6000_s6 + $0x98] sm:$0xff] %v3479_v32  ;;  %v3302_v3 = vadd.f32 %v3143_v48, %v3034_v24  ;;  %v3303_v26 = vadd.f32 %v3232_v2, %v3035_v36  ;;  %v6682_v48 = vld [vmem:[#allocation39_spill] sm:$0xff] }
 0x4d3   : > { %v3372_v1 = vadd.f32 %v5984_v12, %v3302_v3  ;;  %v3373_v28 = vadd.f32 %v5987_v10, %v3303_v26 }
 0x4d5   : > { %v3148_v14 = vpop.f32.mrf.mxu0  ;;  %v3237_v20 = vpop.f32.mrf.mxu1  ;;  %v3436_v55 = vmax.f32 %v3372_v1, 0.0  ;;  %v3437_v31 = vmax.f32 %v3373_v28, 0.0 }
 0x4d6   : > { %v2877_v8 = vpop.f32.mrf.mxu2  ;;  %v2966_v51 = vpop.f32.mrf.mxu3 }
 0x4d7   : > { %v3480_v35 = vpack.c.bf16 %v3437_v31, %v3436_v55  ;;  %v3036_v27 = vadd.f32 %v2877_v8, %v6679_v39  ;;  %v3037_v43 = vadd.f32 %v2966_v51, %v6680_v59 }
 0x4d9   : > { %3512 = vst [vmem:[%s6000_s6 + $0xa0] sm:$0xff] %v3480_v35  ;;  %v3304_v0 = vadd.f32 %v3145_v52, %v3036_v27  ;;  %v3305_v58 = vadd.f32 %v3234_v57, %v3037_v43  ;;  %v6683_v52 = vld [vmem:[#allocation34_spill] sm:$0xff] }
 0x4db   : > { %v3374_v42 = vadd.f32 %v5984_v12, %v3304_v0  ;;  %v3375_v62 = vadd.f32 %v5987_v10, %v3305_v58 }
 0x4dd   : > { %v3150_v5 = vpop.f32.mrf.mxu0  ;;  %v3239_v41 = vpop.f32.mrf.mxu1  ;;  %v3438_v34 = vmax.f32 %v3374_v42, 0.0  ;;  %v3439_v44 = vmax.f32 %v3375_v62, 0.0  ;;  %v6686_v62 = vld [vmem:[#allocation38_spill] sm:$0xff] }
 0x4de   : > { %v2880_v29 = vpop.f32.mrf.mxu2  ;;  %v2969_v6 = vpop.f32.mrf.mxu3 }
 0x4df   : > { %v3481_v17 = vpack.c.bf16 %v3439_v44, %v3438_v34  ;;  %v3038_v22 = vadd.f32 %v2880_v29, %v6681_v19  ;;  %v3039_v2 = vadd.f32 %v2969_v6, %v6682_v48 }
 0x4e1   : > { %3513 = vst [vmem:[%s6000_s6 + $0xa8] sm:$0xff] %v3481_v17  ;;  %v3306_v23 = vadd.f32 %v3148_v14, %v3038_v22  ;;  %v3307_v4 = vadd.f32 %v3237_v20, %v3039_v2  ;;  %v6685_v20 = vld [vmem:[#allocation37_spill] sm:$0xff] }
 0x4e3   : > { %v3376_v37 = vadd.f32 %v5984_v12, %v3306_v23  ;;  %v3377_v16 = vadd.f32 %v5987_v10, %v3307_v4 }
 0x4e5   : > { %v3153_v7 = vpop.f32.mrf.mxu0  ;;  %v3242_v54 = vpop.f32.mrf.mxu1  ;;  %v3440_v9 = vmax.f32 %v3376_v37, 0.0  ;;  %v3441_v50 = vmax.f32 %v3377_v16, 0.0 }
 0x4e6   : > { %v2882_v38 = vpop.f32.mrf.mxu2  ;;  %v2971_v45 = vpop.f32.mrf.mxu3 }
 0x4e7   : > { %v3482_v47 = vpack.c.bf16 %v3441_v50, %v3440_v9  ;;  %v3040_v57 = vadd.f32 %v2882_v38, %v6683_v52  ;;  %v3041_v21 = vadd.f32 %v2971_v45, %v6684_v49 }
 0x4e9   : > { %3514 = vst [vmem:[%s6000_s6 + $0xb0] sm:$0xff] %v3482_v47  ;;  %v3308_v60 = vadd.f32 %v3150_v5, %v3040_v57  ;;  %v3309_v46 = vadd.f32 %v3239_v41, %v3041_v21 }
 0x4eb   : > { %v3378_v32 = vadd.f32 %v5984_v12, %v3308_v60  ;;  %v3379_v15 = vadd.f32 %v5987_v10, %v3309_v46 }
 0x4ed   : > { %v3155_v24 = vpop.f32.mrf.mxu0  ;;  %v3244_v30 = vpop.f32.mrf.mxu1  ;;  %v3442_v36 = vmax.f32 %v3378_v32, 0.0  ;;  %v3443_v3 = vmax.f32 %v3379_v15, 0.0 }
 0x4ee   : > { %v2885_v26 = vpop.f32.mrf.mxu2  ;;  %v2974_v1 = vpop.f32.mrf.mxu3 }
 0x4ef   : > { %v3483_v28 = vpack.c.bf16 %v3443_v3, %v3442_v36  ;;  %v3042_v14 = vadd.f32 %v2885_v26, %v5902_v18  ;;  %v3043_v55 = vadd.f32 %v2974_v1, %v6685_v20  ;;  %v6687_v18 = vld [vmem:[#allocation45_spill] sm:$0xff] }
 0x4f1   : > { %3515 = vst [vmem:[%s6000_s6 + $0xb8] sm:$0xff] %v3483_v28  ;;  %v3310_v31 = vadd.f32 %v3153_v7, %v3042_v14  ;;  %v3311_v8 = vadd.f32 %v3242_v54, %v3043_v55 }
 0x4f3   : > { %v3380_v51 = vadd.f32 %v5984_v12, %v3310_v31  ;;  %v3381_v35 = vadd.f32 %v5987_v10, %v3311_v8 }
 0x4f5   : > { %v3444_v39 = vmax.f32 %v3380_v51, 0.0  ;;  %v3445_v27 = vmax.f32 %v3381_v35, 0.0  ;;  %v3158_v59 = vpop.f32.mrf.mxu0  ;;  %v3247_v43 = vpop.f32.mrf.mxu1 }
 0x4f6   : > { %v2887_v0 = vpop.f32.mrf.mxu2  ;;  %v2976_v58 = vpop.f32.mrf.mxu3 }
 0x4f7   : > { %v3484_v42 = vpack.c.bf16 %v3445_v27, %v3444_v39  ;;  %v3044_v5 = vadd.f32 %v2887_v0, %v6686_v62  ;;  %v3045_v41 = vadd.f32 %v2976_v58, %v6687_v18 }
 0x4f9   : > { %3516 = vst [vmem:[%s6000_s6 + $0xc0] sm:$0xff] %v3484_v42  ;;  %v3312_v34 = vadd.f32 %v3155_v24, %v3044_v5  ;;  %v3313_v44 = vadd.f32 %v3244_v30, %v3045_v41 }
 0x4fb   : > { %v3382_v29 = vadd.f32 %v5984_v12, %v3312_v34  ;;  %v3383_v6 = vadd.f32 %v5987_v10, %v3313_v44 }
 0x4fd   : > { %v3446_v17 = vmax.f32 %v3382_v29, 0.0  ;;  %v3447_v19 = vmax.f32 %v3383_v6, 0.0  ;;  %v3160_v37 = vpop.f32.mrf.mxu0  ;;  %v3249_v16 = vpop.f32.mrf.mxu1  ;;  %v6688_v29 = vld [vmem:[#allocation40_spill] sm:$0xff] }
 0x4fe   : > { %v2890_v22 = vpop.f32.mrf.mxu2  ;;  %v2979_v48 = vpop.f32.mrf.mxu3 }
 0x4ff   : > { %v3485_v2 = vpack.c.bf16 %v3447_v19, %v3446_v17  ;;  %v3046_v23 = vadd.f32 %v2890_v22, %v5922_v53  ;;  %v3047_v4 = vadd.f32 %v2979_v48, %v5924_v33 }
 0x501   : > { %3517 = vst [vmem:[%s6000_s6 + $0xc8] sm:$0xff] %v3485_v2  ;;  %v3314_v7 = vadd.f32 %v3158_v59, %v3046_v23  ;;  %v3315_v54 = vadd.f32 %v3247_v43, %v3047_v4 }
 0x503   : > { %v3384_v9 = vadd.f32 %v5984_v12, %v3314_v7  ;;  %v3385_v50 = vadd.f32 %v5987_v10, %v3315_v54 }
 0x505   : > { %v3448_v38 = vmax.f32 %v3384_v9, 0.0  ;;  %v3449_v45 = vmax.f32 %v3385_v50, 0.0  ;;  %v3163_v60 = vpop.f32.mrf.mxu0  ;;  %v3252_v46 = vpop.f32.mrf.mxu1 }
 0x506   : > { %v2892_v47 = vpop.f32.mrf.mxu2  ;;  %v2981_v52 = vpop.f32.mrf.mxu3 }
 0x507   : > { %v3486_v57 = vpack.c.bf16 %v3449_v45, %v3448_v38  ;;  %v3048_v49 = vadd.f32 %v2892_v47, %v5932_v56  ;;  %v3049_v53 = vadd.f32 %v2981_v52, %v5934_v25 }
 0x509   : > { %3518 = vst [vmem:[%s6000_s6 + $0xd0] sm:$0xff] %v3486_v57  ;;  %v3316_v33 = vadd.f32 %v3160_v37, %v3048_v49  ;;  %v3317_v21 = vadd.f32 %v3249_v16, %v3049_v53  ;;  %v6689_v16 = vld [vmem:[#allocation72_spill] sm:$0xff] }
 0x50b   : > { %v3386_v32 = vadd.f32 %v5984_v12, %v3316_v33  ;;  %v3387_v15 = vadd.f32 %v5987_v10, %v3317_v21 }
 0x50d   : > { %v3450_v24 = vmax.f32 %v3386_v32, 0.0  ;;  %v3451_v30 = vmax.f32 %v3387_v15, 0.0  ;;  %v3165_v55 = vpop.f32.mrf.mxu0  ;;  %v3254_v31 = vpop.f32.mrf.mxu1 }
 0x50e   : > { %v2895_v36 = vpop.f32.mrf.mxu2  ;;  %v2984_v3 = vpop.f32.mrf.mxu3 }
 0x50f   : > { %v3487_v26 = vpack.c.bf16 %v3451_v30, %v3450_v24  ;;  %v3050_v1 = vadd.f32 %v2895_v36, %v5942_v13  ;;  %v3051_v56 = vadd.f32 %v2984_v3, %v5944_v63 }
 0x511   : > { %3519 = vst [vmem:[%s6000_s6 + $0xd8] sm:$0xff] %v3487_v26  ;;  %v3318_v25 = vadd.f32 %v3163_v60, %v3050_v1  ;;  %v3319_v28 = vadd.f32 %v3252_v46, %v3051_v56 }
 0x513   : > { %v3388_v14 = vadd.f32 %v5984_v12, %v3318_v25  ;;  %v3389_v20 = vadd.f32 %v5987_v10, %v3319_v28 }
 0x515   : > { %v3452_v8 = vmax.f32 %v3388_v14, 0.0  ;;  %v3453_v51 = vmax.f32 %v3389_v20, 0.0  ;;  %v3168_v5 = vpop.f32.mrf.mxu0  ;;  %v3257_v18 = vpop.f32.mrf.mxu1 }
 0x516   : > { %v2897_v35 = vpop.f32.mrf.mxu2  ;;  %v2986_v39 = vpop.f32.mrf.mxu3 }
 0x517   : > { %v3488_v27 = vpack.c.bf16 %v3453_v51, %v3452_v8  ;;  %v3052_v59 = vadd.f32 %v2897_v35, %v5952_v61  ;;  %v3053_v13 = vadd.f32 %v2986_v39, %v5954_v11 }
 0x519   : > { %3520 = vst [vmem:[%s6000_s6 + $0xe0] sm:$0xff] %v3488_v27  ;;  %v3320_v63 = vadd.f32 %v3165_v55, %v3052_v59  ;;  %v3321_v43 = vadd.f32 %v3254_v31, %v3053_v13 }
 0x51b   : > { %v3390_v0 = vadd.f32 %v5984_v12, %v3320_v63  ;;  %v3391_v58 = vadd.f32 %v5987_v10, %v3321_v43 }
 0x51d   : > { %v3454_v42 = vmax.f32 %v3390_v0, 0.0  ;;  %v3455_v62 = vmax.f32 %v3391_v58, 0.0  ;;  %v3170_v9 = vpop.f32.mrf.mxu0  ;;  %v3259_v50 = vpop.f32.mrf.mxu1 }
 0x51e   : > { %v2900_v41 = vpop.f32.mrf.mxu2  ;;  %v2989_v34 = vpop.f32.mrf.mxu3 }
 0x51f   : > { %v3489_v44 = vpack.c.bf16 %v3455_v62, %v3454_v42  ;;  %v3054_v61 = vadd.f32 %v2900_v41, %v5962_v40  ;;  %v3055_v6 = vadd.f32 %v2989_v34, %v6688_v29  ;;  %v6690_v40 = vld [vmem:[#allocation76_spill] sm:$0xff] }
 0x521   : > { %3521 = vst [vmem:[%s6000_s6 + $0xe8] sm:$0xff] %v3489_v44  ;;  %v3322_v11 = vadd.f32 %v3168_v5, %v3054_v61  ;;  %v3323_v17 = vadd.f32 %v3257_v18, %v3055_v6 }
 0x523   : > { %v3392_v19 = vadd.f32 %v5984_v12, %v3322_v11  ;;  %v3393_v22 = vadd.f32 %v5987_v10, %v3323_v17 }
 0x525   : > { %v3456_v48 = vmax.f32 %v3392_v19, 0.0  ;;  %v3457_v2 = vmax.f32 %v3393_v22, 0.0 }
 0x526   : > { %v2902_v23 = vpop.f32.mrf.mxu2  ;;  %v2991_v4 = vpop.f32.mrf.mxu3 }
 0x527   : > { %v3490_v37 = vpack.c.bf16 %v3457_v2, %v3456_v48  ;;  %v3056_v7 = vadd.f32 %v2902_v23, %v6689_v16  ;;  %v3057_v54 = vadd.f32 %v2991_v4, %v6690_v40 }
 0x529   : > { %3522 = vst [vmem:[%s6000_s6 + $0xf0] sm:$0xff] %v3490_v37  ;;  %v3324_v38 = vadd.f32 %v3170_v9, %v3056_v7  ;;  %v3325_v45 = vadd.f32 %v3259_v50, %v3057_v54 }
 0x52b   : > { %v3394_v47 = vadd.f32 %v5984_v12, %v3324_v38  ;;  %v3395_v52 = vadd.f32 %v5987_v10, %v3325_v45 }
 0x52d   : > { %v3458_v57 = vmax.f32 %v3394_v47, 0.0  ;;  %v3459_v49 = vmax.f32 %v3395_v52, 0.0 }
 0x52f   : > { %v3491_v53 = vpack.c.bf16 %v3459_v49, %v3458_v57 }
 0x531   : > { %3523 = vst [vmem:[%s6000_s6 + $0xf8] sm:$0xff] %v3491_v53 }
 0x532   : > { %4104 = shalt.err (!%p4101_p3)
}
 0x533   : > { %s4141_s29 = smov 128   ;;  %s4142_s30 = smov 8  }
 0x534   : > { %4013 = dma.vmem_to_hbm [thread:$0]  (%p4201_p5), %s3538_s16, 4096, %s3540_s11, %s3525_s17, %s4141_s29, %s4141_s29, %s4142_s30  }
 0x535 PF: > { %p4019_p4 = scmp.ge.s32.totalorder %s4139_s15, 2  ;;  %s3554_s4 = sand.u32 1, %s4127_s12  }
 0x536   : > { %s3555_s5 = scalar_lea.sflag [#allocation3], %s3554_s4 }
 0x537   : > { %p4016_p7 = pnand %p4019_p4, %p4205_p6 }
 0x539   : > { %p4017_p8 = pneg %p4016_p7 }
 0x53b   : > { %4122 = dma.done.wait (%p4017_p8), %s3555_s5, 4096  }
 0x53c   : > { %4124 = vsyncadd (%p4017_p8), %s3555_s5, 4294963200  ;;  %p13_p9 = scmp.ge.s32.totalorder %s4188_s18, 4   ;;  %s6691_s12 = smov %s4131_s13 }
 0x53d   : > { %s6692_s13 = smov %s4135_s14  ;;  %s6693_s14 = smov %s4199_s21 }
 0x53e   : > { %s6694_s15 = smov %s4188_s18  ;;  %15 = sbr.rel (!%p13_p9) target bundleno = 3 (0x3), region = 67 }
 0x543   :  { %3561 = vsyncpa [#allocation3], 1 }
 0x544   :  { %3563 = vsyncpa [#allocation3 + $0x1], 1 }

</bundles_post_ra>
